<compile_context>
chip_gen: v5e
topology: v5e:2x2
jax: 0.10.0
libtpu: 0.0.40
codegen_flags: <defaults>
</compile_context>

<pallas_src>
import functools
import math

import jax
import jax.numpy as jnp
from jax import lax
from jax.experimental import pallas as pl
from jax.experimental.pallas import tpu as pltpu

_LANE = 128


def _round_up(x, m):
    return (x + m - 1) // m * m


# ----------------------------------------------------------------------------
# Kernel: one (image, row-tile) grid step.
#   x_ref : (1, 1, Me, Cin+1) compute dtype, Me = (TH+4)*W flattened spatial
#           rows of the halo-extended tile; last channel is the "ones" channel
#           (zero in padded rows) that carries conv1's bias.
#   w1_ref: (Cin+1, Cp)       1x1 conv weight with bias folded in (row Cin).
#   w2/w3 : (3, 3*Cp, Cp)     3x3 conv weights grouped by kernel row (dy),
#                             K index = kx*Cp + input_channel.
#   b2/b3 : (1, Cp)           f32 biases, lane-padded with zeros.
#   o_ref : (1, 1, TH*W, Cp)  lane-dense output tile.
# ----------------------------------------------------------------------------
def _res_block_kernel(x_ref, w1_ref, w2_ref, b2_ref, w3_ref, b3_ref, o_ref,
                      *, H, W, TH, Cp):
    Me = x_ref.shape[2]                    # (TH + 4) * W
    cdt = w2_ref.dtype                     # matmul input dtype (bf16 or f32)

    # --- conv1 (1x1) + ReLU: bias folded into the matmul -> y1 is exactly 0
    # in every zero-padded row (no row mask needed for y1 at all).
    x = x_ref[0, 0]                                          # (Me, Cin+1)
    y1 = jnp.dot(x, w1_ref[...], preferred_element_type=jnp.float32)
    y1 = jnp.maximum(y1, 0.0)                                # (Me, Cp) f32

    # --- spatial-validity masks, shape (Me, 1); lane-broadcast in the wheres.
    m_id = lax.broadcasted_iota(jnp.int32, (Me, _LANE), 0)[:, :1]
    if W & (W - 1) == 0:
        col = m_id & (W - 1)
        row = m_id >> (W.bit_length() - 1)
    else:
        # exact integer division by W via f32 (valid since Me < 2**22)
        row = jnp.floor((m_id.astype(jnp.float32) + 0.5) * (1.0 / W))
        row = row.astype(jnp.int32)
        col = m_id - row * W
    not_first_col = col != 0               # valid source for dx = +1 taps
    not_last_col = col != (W - 1)          # valid source for dx = -1 taps
    true_row = row + (pl.program_id(1) * TH - 2)
    row_ok = jnp.logical_and(true_row >= 0, true_row < H)

    # --- 3x3 conv + bias + ReLU: taps grouped by kernel row (dy); each group
    # is one MXU dot with K = 3*Cp accumulated in f32. Column zero-padding is
    # handled by zeroing the last / first column of the *sources* (dx = -1
    # taps never read col W-1, dx = +1 taps never read col 0), so every tap is
    # a pure sublane roll and flat-buffer wraps land only on zeroed columns or
    # on the two unused outermost halo rows.
    def conv3x3_relu(src, src_m1, src_p1, w_ref, b_ref):
        acc = None
        for ky, dy in enumerate((-1, 0, 1)):
            taps = []
            for dx, s in ((-1, src_m1), (0, src), (1, src_p1)):
                shift = (-(dy * W + dx)) % Me
                taps.append(s if shift == 0
                            else pltpu.roll(s, shift=shift, axis=0))
            slab = jnp.concatenate(taps, axis=1)             # (Me, 3*Cp)
            d = jnp.dot(slab, w_ref[ky], preferred_element_type=jnp.float32)
            acc = d if acc is None else acc + d
        return jnp.maximum(acc + b_ref[...], 0.0)            # (Me, Cp) f32

    # conv2: cast once, build the two column-masked source variants.
    y1_c = y1.astype(cdt)
    y2 = conv3x3_relu(y1_c,
                      jnp.where(not_last_col, y1_c, 0),
                      jnp.where(not_first_col, y1_c, 0),
                      w2_ref, b2_ref)
    # Rows outside the true image must read as zero for conv3 (zero-padding
    # semantics); this is the only full-tile row mask left in the kernel.
    y2 = jnp.where(row_ok, y2, 0.0)

    # conv3 (its halo rows are never consumed -> no mask on the output).
    y2_c = y2.astype(cdt)
    y3 = conv3x3_relu(y2_c,
                      jnp.where(not_last_col, y2_c, 0),
                      jnp.where(not_first_col, y2_c, 0),
                      w3_ref, b3_ref)

    # --- residual add; store only the TH interior rows (lane-dense store). ---
    res = (y3 + y1)[2 * W:(TH + 2) * W, :]
    o_ref[0, 0] = res.astype(o_ref.dtype)


# ----------------------------------------------------------------------------
# Wrappers
# ----------------------------------------------------------------------------
def _pack_params(params, Cin, Cout, Cp, cdt):
    w1, b1, w2, b2, w3, b3 = params

    # conv1 weight with the bias folded in as the (Cin)-th input row.
    w1a = jnp.zeros((Cin + 1, Cp), cdt)
    w1a = w1a.at[:Cin, :Cout].set(w1.astype(cdt))
    w1a = w1a.at[Cin, :Cout].set(b1.astype(cdt).reshape(-1))

    def pack3(w):          # HWIO (3,3,Cout,Cout) -> (3 [dy], 3*Cp [kx,i], Cp)
        wp = jnp.zeros((3, 3, Cp, Cp), cdt).at[:, :, :Cout, :Cout].set(
            w.astype(cdt))
        return wp.reshape(3, 3 * Cp, Cp)

    def packb(b):
        return jnp.zeros((1, Cp), jnp.float32).at[0, :Cout].set(
            b.astype(jnp.float32).reshape(-1))

    return w1a, pack3(w2), packb(b2), pack3(w3), packb(b3)


def _vmem_capacity_bytes():
    try:
        return int(pltpu.get_tpu_info().vmem_capacity_bytes)
    except Exception:
        return 64 << 20            # conservative fallback (v7x per-TC size)


def _vmem_limit_bytes(Me, Cin1, Cp, TH, W, cdt, odt):
    cb = jnp.dtype(cdt).itemsize
    ob = jnp.dtype(odt).itemsize

    def pad2(r, c, item):
        return _round_up(r, 8) * _round_up(c, _LANE) * item

    est = 0
    est += 2 * pad2(Me, Cin1, cb)                       # x tile (2 buffers)
    est += 2 * pad2(TH * W, Cp, ob)                     # out tile (2 buffers)
    est += 2 * (pad2(Cin1, Cp, cb) + 2 * 3 * pad2(3 * Cp, Cp, cb)
                + 2 * pad2(1, Cp, 4))                   # weights / biases
    est += 3 * pad2(Me, Cp, 4)                          # y1 / y2(acc) / y3 f32
    est += 4 * pad2(Me, Cp, cb)                         # casts + masked srcs
    est += pad2(Me, 3 * Cp, cb)                         # one live dy slab
    est += 4 * pad2(Me, _LANE, 4)                       # iota / masks
    est = int(est * 1.6) + (4 << 20)
    cap = int(_vmem_capacity_bytes() * 0.85)
    return max(16 << 20, min(est, cap))


def res_block_pallas_nhwc(x_nhwc, params, *, row_tile=None,
                          compute_dtype=jnp.bfloat16, out_dtype=jnp.float32):
    """Fused Res_Block, NHWC in / NHWC out (preferred: no layout transposes)."""
    N, H, W, Cin = x_nhwc.shape
    Cout = params[0].shape[1]
    Cp = _round_up(Cout, _LANE)                  # lane-dense channel width
    TH = row_tile if row_tile is not None else min(64, _round_up(H, 8))
    Hp = _round_up(H, TH)                        # pad H so TH never collapses
    NH = Hp // TH
    Me = (TH + 4) * W
    Cin1 = Cin + 1

    w1a, w2p, b2p, w3p, b3p = _pack_params(params, Cin, Cout, Cp, compute_dtype)

    # Augment x with a constant "ones" channel (folds conv1's bias into the
    # matmul so zero-padded rows stay exactly zero), zero-pad rows by the 2-row
    # halo plus the Hp fill, pre-tile with replicated halos and flatten the
    # spatial dims so the kernel's x block is exactly the per-step tile.
    ones = jnp.ones((N, H, W, 1), x_nhwc.dtype)
    xa = jnp.concatenate([x_nhwc, ones], axis=-1)
    xa = jnp.pad(xa, ((0, 0), (2, 2 + Hp - H), (0, 0), (0, 0)))
    ridx = (jnp.arange(NH) * TH)[:, None] + jnp.arange(TH + 4)[None, :]
    xt = xa[:, ridx].reshape(N, NH, Me, Cin1).astype(compute_dtype)

    kernel = functools.partial(_res_block_kernel, H=H, W=W, TH=TH, Cp=Cp)

    out = pl.pallas_call(
        kernel,
        out_shape=jax.ShapeDtypeStruct((N, NH, TH * W, Cp), out_dtype),
        grid_spec=pltpu.PrefetchScalarGridSpec(
            num_scalar_prefetch=0,
            grid=(N, NH),
            in_specs=[
                pl.BlockSpec((1, 1, Me, Cin1), lambda n, h: (n, h, 0, 0)),
                # TODO(synk): single-buffer these constant operands
                # (pipeline_mode=pl.Buffered(1)) once that API is verified on
                # the target JAX version; double-buffering them wastes <1 MiB.
                pl.BlockSpec((Cin1, Cp), lambda n, h: (0, 0)),
                pl.BlockSpec((3, 3 * Cp, Cp), lambda n, h: (0, 0, 0)),
                pl.BlockSpec((1, Cp), lambda n, h: (0, 0)),
                pl.BlockSpec((3, 3 * Cp, Cp), lambda n, h: (0, 0, 0)),
                pl.BlockSpec((1, Cp), lambda n, h: (0, 0)),
            ],
            out_specs=pl.BlockSpec((1, 1, TH * W, Cp),
                                   lambda n, h: (n, h, 0, 0)),
        ),
        compiler_params=pltpu.CompilerParams(
            dimension_semantics=("parallel", "parallel"),
            vmem_limit_bytes=_vmem_limit_bytes(Me, Cin1, Cp, TH, W,
                                               compute_dtype, out_dtype)),
    )(xt, w1a, w2p, b2p, w3p, b3p)

    out = out.reshape(N, Hp, W, Cp)[:, :H, :, :Cout]
    # TODO(synk): for Cout << 128 consumers, return the Cp-padded slab instead
    # of slicing here to avoid the extra HBM read/write pass.
    return out


def res_block_pallas(x_nchw, params, **kw):
    """NCHW wrapper for nn.Conv2d API parity (prefer the NHWC entry point)."""
    x_nhwc = jnp.transpose(x_nchw, (0, 2, 3, 1))
    y = res_block_pallas_nhwc(x_nhwc, params, **kw)
    return jnp.transpose(y, (0, 3, 1, 2))


# ----------------------------------------------------------------------------
# Params + pure-JAX reference (mirrors the PyTorch forward) for validation.
# ----------------------------------------------------------------------------
def init_params(key, C_in, C_out):
    ks = jax.random.split(key, 6)

    def uinit(k, shape, fan_in):
        bound = 1.0 / math.sqrt(fan_in)
        return jax.random.uniform(k, shape, jnp.float32, -bound, bound)

    w1 = uinit(ks[0], (C_in, C_out), C_in)                 # 1x1 conv as matmul
    b1 = uinit(ks[1], (C_out,), C_in)
    w2 = uinit(ks[2], (3, 3, C_out, C_out), C_out * 9)     # HWIO
    b2 = uinit(ks[3], (C_out,), C_out * 9)
    w3 = uinit(ks[4], (3, 3, C_out, C_out), C_out * 9)
    b3 = uinit(ks[5], (C_out,), C_out * 9)
    return (w1, b1, w2, b2, w3, b3)


def res_block_ref(x_nchw, params):
    w1, b1, w2, b2, w3, b3 = params
    x = jnp.transpose(x_nchw, (0, 2, 3, 1))
    dn = ("NHWC", "HWIO", "NHWC")

    def conv(x, w, b, pad):
        y = lax.conv_general_dilated(x, w, (1, 1), [(pad, pad), (pad, pad)],
                                     dimension_numbers=dn)
        return jnp.maximum(y + b.reshape(1, 1, 1, -1), 0.0)

    y1 = conv(x, w1.reshape(1, 1, *w1.shape), b1, 0)
    y2 = conv(y1, w2, b2, 1)
    y2 = conv(y2, w3, b3, 1)
    return jnp.transpose(y2 + y1, (0, 3, 1, 2))


if __name__ == "__main__":
    key = jax.random.PRNGKey(0)
    kx, kp, kx2, kp2 = jax.random.split(key, 4)

    # ---- primary config ------------------------------------------------------
    N, C_in, C_out, H, W = 2, 4, 8, 16, 16
    x = jax.random.normal(kx, (N, C_in, H, W), jnp.float32)
    params = init_params(kp, C_in, C_out)
    ref = jax.block_until_ready(res_block_ref(x, params))

    # f32 compute path, 2 row tiles (exercises top/bottom boundary tiles).
    out = jax.block_until_ready(
        res_block_pallas(x, params, row_tile=8, compute_dtype=jnp.float32))
    assert out.shape == (N, C_out, H, W)
    err = float(jnp.max(jnp.abs(out - ref)))
    assert err < 1e-4, f"f32 path max abs err {err}"

    # f32 compute path, default (single) row tile.
    out1 = jax.block_until_ready(
        res_block_pallas(x, params, compute_dtype=jnp.float32))
    err1 = float(jnp.max(jnp.abs(out1 - ref)))
    assert err1 < 1e-4, f"f32 single-tile path max abs err {err1}"

    # bf16 MXU-input path (perf default): f32 accumulation, relaxed tolerance.
    # NOTE: the skip connection carries bf16-quantized activations on this path.
    outb = jax.block_until_ready(
        res_block_pallas(x, params, row_tile=8, compute_dtype=jnp.bfloat16))
    errb = float(jnp.max(jnp.abs(outb - ref)))
    assert errb < 5e-2, f"bf16 path max abs err {errb}"

    # ---- odd shapes: non-power-of-two W, H not a multiple of the row tile ----
    N2, Ci2, Co2, H2, W2 = 1, 3, 5, 10, 12
    x2 = jax.random.normal(kx2, (N2, Ci2, H2, W2), jnp.float32)
    params2 = init_params(kp2, Ci2, Co2)
    ref2 = jax.block_until_ready(res_block_ref(x2, params2))
    out2 = jax.block_until_ready(
        res_block_pallas(x2, params2, row_tile=8, compute_dtype=jnp.float32))
    assert out2.shape == (N2, Co2, H2, W2)
    err2 = float(jnp.max(jnp.abs(out2 - ref2)))
    assert err2 < 1e-4, f"odd-shape f32 path max abs err {err2}"

    print("KERNEL_OK")
</pallas_src>

<mosaic_0001>
module attributes {stable_mosaic.version = 11 : i64} {
  func.func @_res_block_kernel(%arg0: i32, %arg1: i32, %arg2: memref<1x1x192x5xf32, #tpu.memory_space<vmem>>, %arg3: memref<5x128xf32, #tpu.memory_space<vmem>>, %arg4: memref<3x384x128xf32, #tpu.memory_space<vmem>>, %arg5: memref<1x128xf32, #tpu.memory_space<vmem>>, %arg6: memref<3x384x128xf32, #tpu.memory_space<vmem>>, %arg7: memref<1x128xf32, #tpu.memory_space<vmem>>, %arg8: memref<1x1x128x128xf32, #tpu.memory_space<vmem>>) attributes {dimension_semantics = [#tpu.dimension_semantics<parallel>, #tpu.dimension_semantics<parallel>], iteration_bounds = array<i64: 2, 2>, scalar_prefetch = 0 : i64, scratch_operands = 0 : i64, tpu.core_type = #tpu.core_type<tc>, window_params = [{transform_indices = @transform_0, window_bounds = array<i64: 1, 1, 192, 5>}, {pipeline_mode = #tpu.pipeline_mode<synchronous>, transform_indices = @transform_1, window_bounds = array<i64: 5, 128>}, {pipeline_mode = #tpu.pipeline_mode<synchronous>, transform_indices = @transform_2, window_bounds = array<i64: 3, 384, 128>}, {pipeline_mode = #tpu.pipeline_mode<synchronous>, transform_indices = @transform_3, window_bounds = array<i64: 1, 128>}, {pipeline_mode = #tpu.pipeline_mode<synchronous>, transform_indices = @transform_4, window_bounds = array<i64: 3, 384, 128>}, {pipeline_mode = #tpu.pipeline_mode<synchronous>, transform_indices = @transform_5, window_bounds = array<i64: 1, 128>}, {transform_indices = @transform_6, window_bounds = array<i64: 1, 1, 128, 128>}]} {
    %c0 = arith.constant 0 : index
    %c0_0 = arith.constant 0 : index
    %c0_1 = arith.constant 0 : index
    %c0_2 = arith.constant 0 : index
    %0 = vector.load %arg2[%c0, %c0_0, %c0_1, %c0_2] : memref<1x1x192x5xf32, #tpu.memory_space<vmem>>, vector<1x1x192x5xf32>
    %1 = vector.shape_cast %0 : vector<1x1x192x5xf32> to vector<192x5xf32>
    %c0_3 = arith.constant 0 : index
    %c0_4 = arith.constant 0 : index
    %2 = vector.load %arg3[%c0_3, %c0_4] : memref<5x128xf32, #tpu.memory_space<vmem>>, vector<5x128xf32>
    %cst = arith.constant dense<0.000000e+00> : vector<192x128xf32>
    %3 = tpu.matmul %1, %2, %cst {dimension_numbers = #tpu.dot_dimension_numbers<[1], [0], [0], [1], [0, 0, 1, 1], [], []>} : vector<192x5xf32>, vector<5x128xf32>, vector<192x128xf32> -> vector<192x128xf32>
    %cst_5 = arith.constant 0.000000e+00 : f32
    %4 = vector.broadcast %cst_5 : f32 to vector<192x128xf32>
    %5 = arith.maximumf %3, %4 : vector<192x128xf32>
    %6 = tpu.iota {dimensions = array<i32: 0>} : vector<192x128xi32>
    %7 = vector.extract_strided_slice %6 {offsets = [0, 0], sizes = [192, 1], strides = [1, 1]} : vector<192x128xi32> to vector<192x1xi32>
    %c15_i32 = arith.constant 15 : i32
    %8 = vector.broadcast %c15_i32 : i32 to vector<192x1xi32>
    %9 = arith.andi %7, %8 : vector<192x1xi32>
    %c4_i32 = arith.constant 4 : i32
    %10 = vector.broadcast %c4_i32 : i32 to vector<192x1xi32>
    %11 = arith.shrsi %7, %10 : vector<192x1xi32>
    %c0_i32 = arith.constant 0 : i32
    %12 = vector.broadcast %c0_i32 : i32 to vector<192x1xi32>
    %13 = arith.cmpi ne, %9, %12 : vector<192x1xi32>
    %c15_i32_6 = arith.constant 15 : i32
    %14 = vector.broadcast %c15_i32_6 : i32 to vector<192x1xi32>
    %15 = arith.cmpi ne, %9, %14 : vector<192x1xi32>
    %c8_i32 = arith.constant 8 : i32
    %16 = arith.muli %arg1, %c8_i32 : i32
    %c2_i32 = arith.constant 2 : i32
    %17 = arith.subi %16, %c2_i32 : i32
    %18 = vector.broadcast %17 : i32 to vector<192x1xi32>
    %19 = arith.addi %11, %18 : vector<192x1xi32>
    %c0_i32_7 = arith.constant 0 : i32
    %20 = vector.broadcast %c0_i32_7 : i32 to vector<192x1xi32>
    %21 = arith.cmpi sge, %19, %20 : vector<192x1xi32>
    %c16_i32 = arith.constant 16 : i32
    %22 = vector.broadcast %c16_i32 : i32 to vector<192x1xi32>
    %23 = arith.cmpi slt, %19, %22 : vector<192x1xi32>
    %24 = arith.andi %21, %23 : vector<192x1xi1>
    %c0_i32_8 = arith.constant 0 : i32
    %25 = arith.sitofp %c0_i32_8 : i32 to f32
    %26 = vector.shape_cast %15 : vector<192x1xi1> to vector<192x1xi1>
    %27 = vector.broadcast %26 : vector<192x1xi1> to vector<192x128xi1>
    %28 = vector.broadcast %25 : f32 to vector<192x128xf32>
    %29 = arith.select %27, %5, %28 : vector<192x128xi1>, vector<192x128xf32>
    %c0_i32_9 = arith.constant 0 : i32
    %30 = arith.sitofp %c0_i32_9 : i32 to f32
    %31 = vector.shape_cast %13 : vector<192x1xi1> to vector<192x1xi1>
    %32 = vector.broadcast %31 : vector<192x1xi1> to vector<192x128xi1>
    %33 = vector.broadcast %30 : f32 to vector<192x128xf32>
    %34 = arith.select %32, %5, %33 : vector<192x128xi1>, vector<192x128xf32>
    %c17_i32 = arith.constant 17 : i32
    %35 = tpu.dynamic_rotate %29 by %c17_i32 dim 0 : vector<192x128xf32>, i32 -> vector<192x128xf32>
    %c16_i32_10 = arith.constant 16 : i32
    %36 = tpu.dynamic_rotate %5 by %c16_i32_10 dim 0 : vector<192x128xf32>, i32 -> vector<192x128xf32>
    %c15_i32_11 = arith.constant 15 : i32
    %37 = tpu.dynamic_rotate %34 by %c15_i32_11 dim 0 : vector<192x128xf32>, i32 -> vector<192x128xf32>
    %38 = tpu.concatenate %35, %36, %37 in 1 : vector<192x128xf32>, vector<192x128xf32>, vector<192x128xf32> -> vector<192x384xf32>
    %c0_12 = arith.constant 0 : index
    %c0_13 = arith.constant 0 : index
    %c0_14 = arith.constant 0 : index
    %39 = vector.load %arg4[%c0_12, %c0_13, %c0_14] : memref<3x384x128xf32, #tpu.memory_space<vmem>>, vector<1x384x128xf32>
    %40 = vector.shape_cast %39 : vector<1x384x128xf32> to vector<384x128xf32>
    %cst_15 = arith.constant dense<0.000000e+00> : vector<192x128xf32>
    %41 = tpu.matmul %38, %40, %cst_15 {dimension_numbers = #tpu.dot_dimension_numbers<[1], [0], [0], [1], [0, 0, 1, 1], [], []>} : vector<192x384xf32>, vector<384x128xf32>, vector<192x128xf32> -> vector<192x128xf32>
    %c1_i32 = arith.constant 1 : i32
    %42 = tpu.dynamic_rotate %29 by %c1_i32 dim 0 : vector<192x128xf32>, i32 -> vector<192x128xf32>
    %c191_i32 = arith.constant 191 : i32
    %43 = tpu.dynamic_rotate %34 by %c191_i32 dim 0 : vector<192x128xf32>, i32 -> vector<192x128xf32>
    %44 = tpu.concatenate %42, %5, %43 in 1 : vector<192x128xf32>, vector<192x128xf32>, vector<192x128xf32> -> vector<192x384xf32>
    %c1 = arith.constant 1 : index
    %c0_16 = arith.constant 0 : index
    %c0_17 = arith.constant 0 : index
    %45 = vector.load %arg4[%c1, %c0_16, %c0_17] : memref<3x384x128xf32, #tpu.memory_space<vmem>>, vector<1x384x128xf32>
    %46 = vector.shape_cast %45 : vector<1x384x128xf32> to vector<384x128xf32>
    %cst_18 = arith.constant dense<0.000000e+00> : vector<192x128xf32>
    %47 = tpu.matmul %44, %46, %cst_18 {dimension_numbers = #tpu.dot_dimension_numbers<[1], [0], [0], [1], [0, 0, 1, 1], [], []>} : vector<192x384xf32>, vector<384x128xf32>, vector<192x128xf32> -> vector<192x128xf32>
    %48 = arith.addf %41, %47 : vector<192x128xf32>
    %c177_i32 = arith.constant 177 : i32
    %49 = tpu.dynamic_rotate %29 by %c177_i32 dim 0 : vector<192x128xf32>, i32 -> vector<192x128xf32>
    %c176_i32 = arith.constant 176 : i32
    %50 = tpu.dynamic_rotate %5 by %c176_i32 dim 0 : vector<192x128xf32>, i32 -> vector<192x128xf32>
    %c175_i32 = arith.constant 175 : i32
    %51 = tpu.dynamic_rotate %34 by %c175_i32 dim 0 : vector<192x128xf32>, i32 -> vector<192x128xf32>
    %52 = tpu.concatenate %49, %50, %51 in 1 : vector<192x128xf32>, vector<192x128xf32>, vector<192x128xf32> -> vector<192x384xf32>
    %c2 = arith.constant 2 : index
    %c0_19 = arith.constant 0 : index
    %c0_20 = arith.constant 0 : index
    %53 = vector.load %arg4[%c2, %c0_19, %c0_20] : memref<3x384x128xf32, #tpu.memory_space<vmem>>, vector<1x384x128xf32>
    %54 = vector.shape_cast %53 : vector<1x384x128xf32> to vector<384x128xf32>
    %cst_21 = arith.constant dense<0.000000e+00> : vector<192x128xf32>
    %55 = tpu.matmul %52, %54, %cst_21 {dimension_numbers = #tpu.dot_dimension_numbers<[1], [0], [0], [1], [0, 0, 1, 1], [], []>} : vector<192x384xf32>, vector<384x128xf32>, vector<192x128xf32> -> vector<192x128xf32>
    %56 = arith.addf %48, %55 : vector<192x128xf32>
    %c0_22 = arith.constant 0 : index
    %c0_23 = arith.constant 0 : index
    %57 = vector.load %arg5[%c0_22, %c0_23] : memref<1x128xf32, #tpu.memory_space<vmem>>, vector<1x128xf32>
    %58 = vector.broadcast %57 : vector<1x128xf32> to vector<192x128xf32>
    %59 = arith.addf %56, %58 : vector<192x128xf32>
    %cst_24 = arith.constant 0.000000e+00 : f32
    %60 = vector.broadcast %cst_24 : f32 to vector<192x128xf32>
    %61 = arith.maximumf %59, %60 : vector<192x128xf32>
    %cst_25 = arith.constant 0.000000e+00 : f32
    %62 = vector.shape_cast %24 : vector<192x1xi1> to vector<192x1xi1>
    %63 = vector.broadcast %62 : vector<192x1xi1> to vector<192x128xi1>
    %64 = vector.broadcast %cst_25 : f32 to vector<192x128xf32>
    %65 = arith.select %63, %61, %64 : vector<192x128xi1>, vector<192x128xf32>
    %c0_i32_26 = arith.constant 0 : i32
    %66 = arith.sitofp %c0_i32_26 : i32 to f32
    %67 = vector.shape_cast %15 : vector<192x1xi1> to vector<192x1xi1>
    %68 = vector.broadcast %67 : vector<192x1xi1> to vector<192x128xi1>
    %69 = vector.broadcast %66 : f32 to vector<192x128xf32>
    %70 = arith.select %68, %65, %69 : vector<192x128xi1>, vector<192x128xf32>
    %c0_i32_27 = arith.constant 0 : i32
    %71 = arith.sitofp %c0_i32_27 : i32 to f32
    %72 = vector.shape_cast %13 : vector<192x1xi1> to vector<192x1xi1>
    %73 = vector.broadcast %72 : vector<192x1xi1> to vector<192x128xi1>
    %74 = vector.broadcast %71 : f32 to vector<192x128xf32>
    %75 = arith.select %73, %65, %74 : vector<192x128xi1>, vector<192x128xf32>
    %c17_i32_28 = arith.constant 17 : i32
    %76 = tpu.dynamic_rotate %70 by %c17_i32_28 dim 0 : vector<192x128xf32>, i32 -> vector<192x128xf32>
    %c16_i32_29 = arith.constant 16 : i32
    %77 = tpu.dynamic_rotate %65 by %c16_i32_29 dim 0 : vector<192x128xf32>, i32 -> vector<192x128xf32>
    %c15_i32_30 = arith.constant 15 : i32
    %78 = tpu.dynamic_rotate %75 by %c15_i32_30 dim 0 : vector<192x128xf32>, i32 -> vector<192x128xf32>
    %79 = tpu.concatenate %76, %77, %78 in 1 : vector<192x128xf32>, vector<192x128xf32>, vector<192x128xf32> -> vector<192x384xf32>
    %c0_31 = arith.constant 0 : index
    %c0_32 = arith.constant 0 : index
    %c0_33 = arith.constant 0 : index
    %80 = vector.load %arg6[%c0_31, %c0_32, %c0_33] : memref<3x384x128xf32, #tpu.memory_space<vmem>>, vector<1x384x128xf32>
    %81 = vector.shape_cast %80 : vector<1x384x128xf32> to vector<384x128xf32>
    %cst_34 = arith.constant dense<0.000000e+00> : vector<192x128xf32>
    %82 = tpu.matmul %79, %81, %cst_34 {dimension_numbers = #tpu.dot_dimension_numbers<[1], [0], [0], [1], [0, 0, 1, 1], [], []>} : vector<192x384xf32>, vector<384x128xf32>, vector<192x128xf32> -> vector<192x128xf32>
    %c1_i32_35 = arith.constant 1 : i32
    %83 = tpu.dynamic_rotate %70 by %c1_i32_35 dim 0 : vector<192x128xf32>, i32 -> vector<192x128xf32>
    %c191_i32_36 = arith.constant 191 : i32
    %84 = tpu.dynamic_rotate %75 by %c191_i32_36 dim 0 : vector<192x128xf32>, i32 -> vector<192x128xf32>
    %85 = tpu.concatenate %83, %65, %84 in 1 : vector<192x128xf32>, vector<192x128xf32>, vector<192x128xf32> -> vector<192x384xf32>
    %c1_37 = arith.constant 1 : index
    %c0_38 = arith.constant 0 : index
    %c0_39 = arith.constant 0 : index
    %86 = vector.load %arg6[%c1_37, %c0_38, %c0_39] : memref<3x384x128xf32, #tpu.memory_space<vmem>>, vector<1x384x128xf32>
    %87 = vector.shape_cast %86 : vector<1x384x128xf32> to vector<384x128xf32>
    %cst_40 = arith.constant dense<0.000000e+00> : vector<192x128xf32>
    %88 = tpu.matmul %85, %87, %cst_40 {dimension_numbers = #tpu.dot_dimension_numbers<[1], [0], [0], [1], [0, 0, 1, 1], [], []>} : vector<192x384xf32>, vector<384x128xf32>, vector<192x128xf32> -> vector<192x128xf32>
    %89 = arith.addf %82, %88 : vector<192x128xf32>
    %c177_i32_41 = arith.constant 177 : i32
    %90 = tpu.dynamic_rotate %70 by %c177_i32_41 dim 0 : vector<192x128xf32>, i32 -> vector<192x128xf32>
    %c176_i32_42 = arith.constant 176 : i32
    %91 = tpu.dynamic_rotate %65 by %c176_i32_42 dim 0 : vector<192x128xf32>, i32 -> vector<192x128xf32>
    %c175_i32_43 = arith.constant 175 : i32
    %92 = tpu.dynamic_rotate %75 by %c175_i32_43 dim 0 : vector<192x128xf32>, i32 -> vector<192x128xf32>
    %93 = tpu.concatenate %90, %91, %92 in 1 : vector<192x128xf32>, vector<192x128xf32>, vector<192x128xf32> -> vector<192x384xf32>
    %c2_44 = arith.constant 2 : index
    %c0_45 = arith.constant 0 : index
    %c0_46 = arith.constant 0 : index
    %94 = vector.load %arg6[%c2_44, %c0_45, %c0_46] : memref<3x384x128xf32, #tpu.memory_space<vmem>>, vector<1x384x128xf32>
    %95 = vector.shape_cast %94 : vector<1x384x128xf32> to vector<384x128xf32>
    %cst_47 = arith.constant dense<0.000000e+00> : vector<192x128xf32>
    %96 = tpu.matmul %93, %95, %cst_47 {dimension_numbers = #tpu.dot_dimension_numbers<[1], [0], [0], [1], [0, 0, 1, 1], [], []>} : vector<192x384xf32>, vector<384x128xf32>, vector<192x128xf32> -> vector<192x128xf32>
    %97 = arith.addf %89, %96 : vector<192x128xf32>
    %c0_48 = arith.constant 0 : index
    %c0_49 = arith.constant 0 : index
    %98 = vector.load %arg7[%c0_48, %c0_49] : memref<1x128xf32, #tpu.memory_space<vmem>>, vector<1x128xf32>
    %99 = vector.broadcast %98 : vector<1x128xf32> to vector<192x128xf32>
    %100 = arith.addf %97, %99 : vector<192x128xf32>
    %cst_50 = arith.constant 0.000000e+00 : f32
    %101 = vector.broadcast %cst_50 : f32 to vector<192x128xf32>
    %102 = arith.maximumf %100, %101 : vector<192x128xf32>
    %103 = arith.addf %102, %5 : vector<192x128xf32>
    %104 = vector.extract_strided_slice %103 {offsets = [32, 0], sizes = [128, 128], strides = [1, 1]} : vector<192x128xf32> to vector<128x128xf32>
    %c0_51 = arith.constant 0 : index
    %c0_52 = arith.constant 0 : index
    %c0_53 = arith.constant 0 : index
    %c0_54 = arith.constant 0 : index
    %105 = vector.load %arg8[%c0_51, %c0_52, %c0_53, %c0_54] : memref<1x1x128x128xf32, #tpu.memory_space<vmem>>, vector<1x1x128x128xf32>
    %106 = vector.shape_cast %105 : vector<1x1x128x128xf32> to vector<128x128xf32>
    %107 = vector.shape_cast %104 : vector<128x128xf32> to vector<1x1x128x128xf32>
    tpu.vector_store %arg8[%c0_51, %c0_52, %c0_53, %c0_54], %107 {strides = array<i32>} : memref<1x1x128x128xf32, #tpu.memory_space<vmem>>, vector<1x1x128x128xf32>,
    return
  }
  func.func @transform_0(%arg0: i32, %arg1: i32) -> (i32, i32, i32, i32) {
    %c0_i32 = arith.constant 0 : i32
    %c0_i32_0 = arith.constant 0 : i32
    %c0_i32_1 = arith.constant 0 : i32
    return %arg0, %arg1, %c0_i32, %c0_i32_0 : i32, i32, i32, i32
  }
  func.func @transform_1(%arg0: i32, %arg1: i32) -> (i32, i32) {
    %c0_i32 = arith.constant 0 : i32
    %c0_i32_0 = arith.constant 0 : i32
    %c0_i32_1 = arith.constant 0 : i32
    return %c0_i32, %c0_i32_0 : i32, i32
  }
  func.func @transform_2(%arg0: i32, %arg1: i32) -> (i32, i32, i32) {
    %c0_i32 = arith.constant 0 : i32
    %c0_i32_0 = arith.constant 0 : i32
    %c0_i32_1 = arith.constant 0 : i32
    %c0_i32_2 = arith.constant 0 : i32
    return %c0_i32, %c0_i32_0, %c0_i32_1 : i32, i32, i32
  }
  func.func @transform_3(%arg0: i32, %arg1: i32) -> (i32, i32) {
    %c0_i32 = arith.constant 0 : i32
    %c0_i32_0 = arith.constant 0 : i32
    %c0_i32_1 = arith.constant 0 : i32
    return %c0_i32, %c0_i32_0 : i32, i32
  }
  func.func @transform_4(%arg0: i32, %arg1: i32) -> (i32, i32, i32) {
    %c0_i32 = arith.constant 0 : i32
    %c0_i32_0 = arith.constant 0 : i32
    %c0_i32_1 = arith.constant 0 : i32
    %c0_i32_2 = arith.constant 0 : i32
    return %c0_i32, %c0_i32_0, %c0_i32_1 : i32, i32, i32
  }
  func.func @transform_5(%arg0: i32, %arg1: i32) -> (i32, i32) {
    %c0_i32 = arith.constant 0 : i32
    %c0_i32_0 = arith.constant 0 : i32
    %c0_i32_1 = arith.constant 0 : i32
    return %c0_i32, %c0_i32_0 : i32, i32
  }
  func.func @transform_6(%arg0: i32, %arg1: i32) -> (i32, i32, i32, i32) {
    %c0_i32 = arith.constant 0 : i32
    %c0_i32_0 = arith.constant 0 : i32
    %c0_i32_1 = arith.constant 0 : i32
    return %arg0, %arg1, %c0_i32, %c0_i32_0 : i32, i32, i32, i32
  }
}

</mosaic_0001>

<bundles_post_ra>
// kernel: tpu_custom_call.1
= control target key start
LH: loop header
LB: loop body
LE: loop exit
PB: predicated region body
PF: predicated region fallthrough
CT: control target
= control target key end

     0   :  { %11 = vsyncpa [#allocation3], 0  ;;  %s6622_s0 = inlined_call_operand.vmem [shape: f32[2,2,192,5], index: 0, kind: input, shape index: {}]   ;;  %s6623_s1 = inlined_call_operand.vmem [shape: f32[5,128], index: 1, kind: input, shape index: {}]   ;;  %s6624_s2 = inlined_call_operand.hbm [shape: f32[3,384,128], index: 2, kind: input, shape index: {}]   ;;  %s6625_s3 = inlined_call_operand.vmem [shape: f32[1,128], index: 3, kind: input, shape index: {}]   ;;  %s6626_s4 = inlined_call_operand.hbm [shape: f32[3,384,128], index: 4, kind: input, shape index: {}]   ;;  %s6627_s5 = inlined_call_operand.vmem [shape: f32[1,128], index: 5, kind: input, shape index: {}]   ;;  %s6628_s6 = inlined_call_operand.hbm [shape: f32[2,2,128,128], index: 6, kind: output, shape index: {}]  }
   0x1   :  { %12 = vsyncpa [#allocation6], 0 }
   0x2   :  { %13 = vsyncpa [#allocation4], 0 }
   0x3   :  { %15 = vsyncpa [#allocation4 + $0x1], 0  ;;  %s3767_s21 = smov 0   ;;  %s3769_s22 = smov 0  }
   0x4   :  { %s3771_s23 = smov 0   ;;  %s3773_s24 = smov 0  }
   0x5   :  { %s3775_s25 = smov 0   ;;  %s3777_s26 = smov 0  }
   0x6   :  { %s3779_s27 = smov 0   ;;  %s3781_s28 = smov 0  }
   0x7 LB: > { %6882 = sst [smem:[#allocation11_spill]] %s3716_s26  ;;  %s3312_s29 = sadd.s32 4294967295, %s3724_s28   ;;  %s3724_s28 = sphi %s3781_s28, %s21_s28   ;;  %s3720_s27 = sphi %s3779_s27, %s7559_s27   ;;  %s3716_s26 = sphi %s3777_s26, %s7558_s26   ;;  %s3712_s25 = sphi %s3775_s25, %s7557_s25   ;;  %s3708_s24 = sphi %s3773_s24, %s7556_s24   ;;  %s3704_s23 = sphi %s3771_s23, %s7562_s23   ;;  %s3700_s22 = sphi %s3769_s22, %s7561_s22   ;;  %s3696_s21 = sphi %s3767_s21, %s7560_s21  }
   0x8   : > { %6883 = sst [smem:[#allocation12_spill]] %s3720_s27  ;;  %s3313_s30 = sadd.s32 4294967294, %s3724_s28  }
   0x9   : > { %s30_s7 = sadd.s32 1, %s3716_s26  ;;  %s33_s8 = sadd.s32 1, %s3720_s27 }
   0xa   : > { %p31_p0 = scmp.ge.s32.totalorder %s30_s7, 2  ;;  %s175_s9 = sadd.s32 1, %s3704_s23 }
   0xb   : > { %p185_p1 = scmp.ne.s32.totalorder %s3704_s23, %s3700_s22  ;;  %p186_p2 = scmp.eq.s32.totalorder %s3312_s29, 3 }
   0xc   : > { %s7564_s7 = smov (%p31_p0, %s30_s7), 0  ;;  %s7566_s8 = smov (!%p31_p0, %s33_s8), %s3720_s27 }
   0xd   : > { %6884 = sst [smem:[#allocation13_spill]] %s7564_s7  ;;  %s171_s10 = ssub.s32 %s3716_s26, %s7564_s7 }
   0xe   : > { %p3819_p3 = por %p186_p2, %p185_p1  ;;  %p35_p4 = scmp.ge.s32.totalorder %s7566_s8, 2 }
   0xf   : > { %p191_p5 = scmp.ne.s32.totalorder %s3700_s22, %s3696_s21  ;;  %p192_p6 = scmp.eq.s32.totalorder %s3313_s30, 3 }
  0x10   : > { %p3314_p7 = scmp.ge.s32.totalorder %s3724_s28, 1  ;;  %s7568_s8 = smov (%p35_p4, %s7566_s8), 0 }
  0x11   : > { %6886 = sst [smem:[#allocation14_spill]] %s7568_s8  ;;  %p3828_p8 = por %p192_p6, %p191_p5 }
  0x12   : > { %p199_p9 = scmp.lt.s32.totalorder %s3724_s28, 5  ;;  %s170_s13 = ssub.s32 %s3720_s27, %s7568_s8 }
  0x13   : > { %s172_s14 = sor.u32 %s171_s10, %s170_s13  ;;  %p3839_p12 = scmp.eq.s32.totalorder %s3312_s29, 0 }
  0x14   : > { %p3835_p10 = pnand %p3314_p7, %p199_p9  ;;  %p173_p11 = scmp.eq.s32.totalorder %s172_s14, 0 }
  0x15   : > { %s213_s19 = sshll.u32 %s6624_s2, 4  ;;  %s3726_s30 = smov [#allocation2]   ;;  %s214_s19 = int_to_ptr.hbm [resolvable:$true] %s213_s19 }
  0x16   : > { %p3473_p13 = pneg %p3835_p10  ;;  %s215_s10 = sshll.u32 %s3726_s30, 4  ;;  %s216_s10 = int_to_ptr.vmem [resolvable:$true] %s215_s10 }
  0x17   : > { %s3849_s20 = scalar_select %p173_p11, %s3704_s23, %s175_s9  }
  0x18   : > { %p3474_p0 = pnand %p3839_p12, %p3473_p13  ;;  %s3727_s13 = smov 128  }
  0x19   : > { %s3728_s29 = smov 8   ;;  %s230_s7 = sshll.u32 %s6626_s4, 4  ;;  %s231_s7 = int_to_ptr.hbm [resolvable:$true] %s230_s7 }
  0x1a   : > { %3476 = dma.hbm_to_vmem [thread:$0]  (!%p3474_p0), %s214_s19, 18432, %s216_s10, [#allocation3], %s3727_s13, %s3727_s13, %s3728_s29  }
  0x1b   : > { %s3729_s27 = smov [#allocation5]   ;;  %263 = sbr.rel (%p3835_p10) target bundleno = 1649 (0x671), region = 44 }
  0x1c   : > { %s232_s26 = sshll.u32 %s3729_s27, 4  ;;  %s233_s26 = int_to_ptr.vmem [resolvable:$true] %s232_s26 }
  0x1d   : > { %3479 = dma.hbm_to_vmem [thread:$0]  (!%p3474_p0), %s231_s7, 18432, %s233_s26, [#allocation6], %s3727_s13, %s3727_s13, %s3728_s29  }
  0x20   : > { %3683 = dma.done.wait (%p3839_p12), [#allocation3], 18432  }
  0x21   : > { %3685 = vsyncadd (%p3839_p12), [#allocation3], 4294948864 }
  0x22   : > { %3687 = dma.done.wait (%p3839_p12), [#allocation6], 18432  }
  0x23   : > { %3689 = vsyncadd (%p3839_p12), [#allocation6], 4294948864  ;;  %p303_p1 = scmp.lt.s32.totalorder %s3712_s25, 1  ;;  %p305_p2 = scmp.lt.s32.totalorder %s3708_s24, 1  ;;  %vm410_vm0 = vcmask 1044480   ;;  %vm337_vm1 = vcmask 39936  }
  0x24   : > { %v336_v0 = vld [vmem:[%s6623_s1] sm:$0x1f]  ;;  %v3904_v14 = vld [vmem:[#allocation2 + $0x278] sm:$0xff]  ;;  %v3906_v15 = vld [vmem:[#allocation2 + $0x270] sm:$0xff]  ;;  %s3348_s10 = sshll.u32 %s3708_s24, 3  ;;  %s300_s9 = sand.u32 1, %s3700_s22  }
  0x25   : > { %s304_s26 = scalar_select %p303_p1, %s3712_s25, 1  ;;  %3323 = vmatpush.msk.msra.mxu0 %vm410_vm0, %v336_v0  ;;  %3428 = vmatpush.msk.msra.mxu3 %vm410_vm0, %v336_v0  ;;  %v3909_v16 = vld [vmem:[#allocation2 + $0x268] sm:$0xff]  ;;  %v3912_v17 = vld [vmem:[#allocation2 + $0x260] sm:$0xff]  ;;  %v3918_v19 = vld [vmem:[#allocation2 + $0x258] sm:$0xff] }
  0x26   : > { %s306_s27 = scalar_select %p305_p2, %s3708_s24, 1  ;;  %1175 = vmatpush.msra.mxu2 %v3904_v14  ;;  %v3920_v20 = vld [vmem:[#allocation2 + $0x250] sm:$0xff]  ;;  %v3923_v21 = vld [vmem:[#allocation2 + $0x248] sm:$0xff]  ;;  %v3926_v22 = vld [vmem:[#allocation2 + $0x240] sm:$0xff] }
  0x27   : > { %s3462_s7 = smul.u32 48, %s304_s26  ;;  %v3932_v24 = vld [vmem:[#allocation2 + $0x238] sm:$0xff]  ;;  %v3934_v25 = vld [vmem:[#allocation2 + $0x230] sm:$0xff]  ;;  %v3937_v26 = vld [vmem:[#allocation2 + $0x228] sm:$0xff]  ;;  %s3349_s13 = sadd.s32 4294967294, %s3348_s10 }
  0x28   : > { %s3461_s8 = smul.u32 24, %s306_s27  ;;  %1176 = vmatpush.msra.mxu2 %v3906_v15  ;;  %v3940_v27 = vld [vmem:[#allocation2 + $0x220] sm:$0xff]  ;;  %v3946_v29 = vld [vmem:[#allocation2 + $0x218] sm:$0xff]  ;;  %v3948_v30 = vld [vmem:[#allocation2 + $0x210] sm:$0xff]  ;;  %s3321_s15 = sshll.u32 %s300_s9, 7 }
  0x29   : > { %v3952_v31 = vld [vmem:[#allocation2 + $0x208] sm:$0xff]  ;;  %v3956_v33 = vld [vmem:[#allocation2 + $0x200] sm:$0xff]  ;;  %v1004_v34 = vld [vmem:[#allocation2 + $0x78] sm:$0xff]  ;;  %s3424_s18 = sshll.u32 %s3712_s25, 5  ;;  %s3188_s14 = scalar_lea.sflag [#allocation4], %s300_s9 }
  0x2a   : > { %s309_s17 = sadd.s32 %s3462_s7, %s3461_s8  ;;  %1177 = vmatpush.msra.mxu2 %v3909_v16  ;;  %1353 = vmatpush.msrb.mxu0 %v1004_v34  ;;  %v1053_v35 = vld [vmem:[#allocation2 + $0x1f8] sm:$0xff]  ;;  %v1003_v36 = vld [vmem:[#allocation2 + $0x70] sm:$0xff]  ;;  %v1002_v38 = vld [vmem:[#allocation2 + $0x68] sm:$0xff]  ;;  %v6892_v34 = vmov 0 }
  0x2b   : > { %s3322_s16 = sshll.u32 %s309_s17, 3  ;;  %1086 = vmatpush.msra.mxu1 %v1053_v35  ;;  %v1052_v37 = vld [vmem:[#allocation2 + $0x1f0] sm:$0xff]  ;;  %3429 = vmatpush.msrb.mxu3 %v1053_v35  ;;  %v1051_v40 = vld [vmem:[#allocation2 + $0x1e8] sm:$0xff]  ;;  %v1001_v41 = vld [vmem:[#allocation2 + $0x60] sm:$0xff]  ;;  %s6470_s17 = scalar_lea.vmem [#allocation7], %s3321_s15 }
  0x2c   : > { %s3876_s30 = scalar_lea.vmem %s6622_s0, %s3322_s16  ;;  %1178 = vmatpush.msra.mxu2 %v3912_v17  ;;  %1354 = vmatpush.msrb.mxu0 %v1003_v36  ;;  %v1050_v42 = vld [vmem:[#allocation2 + $0x1e0] sm:$0xff]  ;;  %v1000_v43 = vld [vmem:[#allocation2 + $0x58] sm:$0xff]  ;;  %v999_v45 = vld [vmem:[#allocation2 + $0x50] sm:$0xff]  ;;  %s3423_s16 = sshll.u32 %s3708_s24, 4 }
  0x2d   : > { %v312_v1 = vld [vmem:[%s3876_s30] sm:$0xff]  ;;  %v313_v3 = vld [vmem:[%s3876_s30 + $0x8] sm:$0xff]  ;;  %v314_v5 = vld [vmem:[%s3876_s30 + $0x10] sm:$0xff]  ;;  %1087 = vmatpush.msra.mxu1 %v1052_v37  ;;  %3430 = vmatpush.msrb.mxu3 %v1052_v37  ;;  %s3199_s19 = sadd.s32 %s3424_s18, %s3423_s16  ;;  %s3642_s15 = scalar_lea.hbm %s6628_s6, 512 }
  0x2e   : > { %v332_v2 = vld [vmem:[%s3876_s30 + $0xa0] sm:$0xff]  ;;  %3324 = vmatmul.msk.f32.vlgmr.msra.gmra.mxu0 %vm337_vm1, %v312_v1  ;;  %v333_v4 = vld [vmem:[%s3876_s30 + $0xa8] sm:$0xff]  ;;  %v334_v6 = vld [vmem:[%s3876_s30 + $0xb0] sm:$0xff]  ;;  %1179 = vmatpush.msra.mxu2 %v3918_v19 }
  0x2f   : > { %3344 = vmatmul.msk.f32.vlgmr.msra.gmra.mxu3 %vm337_vm1, %v332_v2  ;;  %v315_v7 = vld [vmem:[%s3876_s30 + $0x18] sm:$0xff]  ;;  %v316_v9 = vld [vmem:[%s3876_s30 + $0x20] sm:$0xff]  ;;  %v317_v10 = vld [vmem:[%s3876_s30 + $0x28] sm:$0xff]  ;;  %1355 = vmatpush.msrb.mxu0 %v1002_v38 }
  0x30   : > { %v335_v8 = vld [vmem:[%s3876_s30 + $0xb8] sm:$0xff]  ;;  %v318_v11 = vld [vmem:[%s3876_s30 + $0x30] sm:$0xff]  ;;  %v320_v13 = vld [vmem:[%s3876_s30 + $0x40] sm:$0xff]  ;;  %1180 = vmatpush.msra.mxu2 %v3920_v20  ;;  %1088 = vmatpush.msra.mxu1 %v1051_v40 }
  0x31   : > { %v319_v12 = vld [vmem:[%s3876_s30 + $0x38] sm:$0xff]  ;;  %v321_v18 = vld [vmem:[%s3876_s30 + $0x48] sm:$0xff]  ;;  %v322_v23 = vld [vmem:[%s3876_s30 + $0x50] sm:$0xff]  ;;  %1356 = vmatpush.msrb.mxu0 %v1001_v41  ;;  %3431 = vmatpush.msrb.mxu3 %v1051_v40  ;;  %v6897_v41 = vmov 0 }
  0x32   : > { %1181 = vmatpush.msra.mxu2 %v3923_v21  ;;  %v323_v28 = vld [vmem:[%s3876_s30 + $0x58] sm:$0xff]  ;;  %v324_v32 = vld [vmem:[%s3876_s30 + $0x60] sm:$0xff]  ;;  %v325_v39 = vld [vmem:[%s3876_s30 + $0x68] sm:$0xff]  ;;  %1089 = vmatpush.msra.mxu1 %v1050_v42 }
  0x33   : > { %1357 = vmatpush.msrb.mxu0 %v1000_v43  ;;  %v1049_v44 = vld [vmem:[#allocation2 + $0x1d8] sm:$0xff]  ;;  %3432 = vmatpush.msrb.mxu3 %v1050_v42  ;;  %v1048_v46 = vld [vmem:[#allocation2 + $0x1d0] sm:$0xff]  ;;  %v998_v47 = vld [vmem:[#allocation2 + $0x48] sm:$0xff] }
  0x34   : > { %1182 = vmatpush.msra.mxu2 %v3926_v22  ;;  %1090 = vmatpush.msra.mxu1 %v1049_v44  ;;  %v326_v48 = vld [vmem:[%s3876_s30 + $0x70] sm:$0xff]  ;;  %v1047_v49 = vld [vmem:[#allocation2 + $0x1c8] sm:$0xff]  ;;  %v997_v50 = vld [vmem:[#allocation2 + $0x40] sm:$0xff] }
  0x35   : > { %1358 = vmatpush.msrb.mxu0 %v999_v45  ;;  %3433 = vmatpush.msrb.mxu3 %v1049_v44  ;;  %v1046_v51 = vld [vmem:[#allocation2 + $0x1c0] sm:$0xff]  ;;  %v996_v52 = vld [vmem:[#allocation2 + $0x38] sm:$0xff]  ;;  %v995_v54 = vld [vmem:[#allocation2 + $0x30] sm:$0xff] }
  0x36   : > { %3325 = vmatmul.msk.f32.gmra.mxu0 %vm337_vm1, %v313_v3  ;;  %1183 = vmatpush.msra.mxu2 %v3932_v24  ;;  %v1045_v53 = vld [vmem:[#allocation2 + $0x1b8] sm:$0xff]  ;;  %v1044_v55 = vld [vmem:[#allocation2 + $0x1b0] sm:$0xff]  ;;  %v994_v56 = vld [vmem:[#allocation2 + $0x28] sm:$0xff] }
  0x37   : > { %3345 = vmatmul.msk.f32.gmra.mxu3 %vm337_vm1, %v333_v4  ;;  %1091 = vmatpush.msra.mxu1 %v1048_v46  ;;  %v327_v57 = vld [vmem:[%s3876_s30 + $0x78] sm:$0xff]  ;;  %v1043_v58 = vld [vmem:[#allocation2 + $0x1a8] sm:$0xff]  ;;  %v993_v59 = vld [vmem:[#allocation2 + $0x20] sm:$0xff] }
  0x38   : > { %1184 = vmatpush.msra.mxu2 %v3934_v25  ;;  %1359 = vmatpush.msrb.mxu0 %v998_v47  ;;  %v1042_v60 = vld [vmem:[#allocation2 + $0x1a0] sm:$0xff]  ;;  %v992_v61 = vld [vmem:[#allocation2 + $0x18] sm:$0xff]  ;;  %v991_v63 = vld [vmem:[#allocation2 + $0x10] sm:$0xff]  ;;  %v6902_v47 = vmov 0 }
  0x39   : > { %3434 = vmatpush.msrb.mxu3 %v1048_v46  ;;  %1092 = vmatpush.msra.mxu1 %v1047_v49  ;;  %v1041_v62 = vld [vmem:[#allocation2 + $0x198] sm:$0xff]  ;;  %v1040_v0 = vld [vmem:[#allocation2 + $0x190] sm:$0xff]  ;;  %v990_v1 = vld [vmem:[#allocation2 + $0x8] sm:$0xff] }
  0x3a   : > { %1185 = vmatpush.msra.mxu2 %v3937_v26  ;;  %1360 = vmatpush.msrb.mxu0 %v997_v50  ;;  %v328_v3 = vld [vmem:[%s3876_s30 + $0x80] sm:$0xff]  ;;  %v331_v36 = vld [vmem:[%s3876_s30 + $0x98] sm:$0xff] }
  0x3b   : > { %3435 = vmatpush.msrb.mxu3 %v1047_v49  ;;  %1093 = vmatpush.msra.mxu1 %v1046_v51 }
  0x3c   : > { %1186 = vmatpush.msra.mxu2 %v3940_v27  ;;  %1361 = vmatpush.msrb.mxu0 %v996_v52 }
  0x3d   : > { %3436 = vmatpush.msrb.mxu3 %v1046_v51  ;;  %1094 = vmatpush.msra.mxu1 %v1045_v53 }
  0x3e   : > { %3326 = vmatmul.msk.f32.gmra.mxu0 %vm337_vm1, %v314_v5  ;;  %1187 = vmatpush.msra.mxu2 %v3946_v29  ;;  %v1039_v5 = vld [vmem:[#allocation2 + $0x188] sm:$0xff] }
  0x3f   : > { %3346 = vmatmul.msk.f32.gmra.mxu3 %vm337_vm1, %v334_v6  ;;  %1362 = vmatpush.msrb.mxu0 %v995_v54  ;;  %v989_v6 = vld [vmem:[#allocation2] sm:$0xff] }
  0x40   : > { %1188 = vmatpush.msra.mxu2 %v3948_v30  ;;  %3437 = vmatpush.msrb.mxu3 %v1045_v53 }
  0x41   : > { %1095 = vmatpush.msra.mxu1 %v1044_v55  ;;  %1363 = vmatpush.msrb.mxu0 %v994_v56  ;;  %v6911_v56 = vmov 0 }
  0x42   : > { %1189 = vmatpush.msra.mxu2 %v3952_v31  ;;  %3438 = vmatpush.msrb.mxu3 %v1044_v55 }
  0x43   : > { %1096 = vmatpush.msra.mxu1 %v1043_v58  ;;  %1364 = vmatpush.msrb.mxu0 %v993_v59 }
  0x44   : > { %1190 = vmatpush.msra.mxu2 %v3956_v33  ;;  %3439 = vmatpush.msrb.mxu3 %v1043_v58 }
  0x45   : > { %1097 = vmatpush.msra.mxu1 %v1042_v60  ;;  %1365 = vmatpush.msrb.mxu0 %v992_v61 }
  0x46   : > { %3327 = vmatmul.msk.f32.gmra.mxu0 %vm337_vm1, %v315_v7  ;;  %3440 = vmatpush.msrb.mxu3 %v1042_v60  ;;  %v1038_v7 = vld [vmem:[#allocation2 + $0x180] sm:$0xff] }
  0x47   : > { %3347 = vmatmul.msk.f32.gmra.mxu3 %vm337_vm1, %v335_v8  ;;  %1098 = vmatpush.msra.mxu1 %v1041_v62 }
  0x48   : > { %1366 = vmatpush.msrb.mxu0 %v991_v63  ;;  %3441 = vmatpush.msrb.mxu3 %v1041_v62 }
  0x49   : > { %1099 = vmatpush.msra.mxu1 %v1040_v0 }
  0x4a   : > { %1367 = vmatpush.msrb.mxu0 %v990_v1  ;;  %3442 = vmatpush.msrb.mxu3 %v1040_v0 }
  0x4b   : > { %1100 = vmatpush.msra.mxu1 %v1039_v5 }
  0x4c   : > { %1368 = vmatpush.msrb.mxu0 %v989_v6  ;;  %3443 = vmatpush.msrb.mxu3 %v1039_v5  ;;  %v6919_v5 = vmov 0 }
  0x4d   : > { %1101 = vmatpush.msra.mxu1 %v1038_v7 }
  0x4e   : > { %3328 = vmatmul.msk.f32.gmra.mxu0 %vm337_vm1, %v316_v9  ;;  %3444 = vmatpush.msrb.mxu3 %v1038_v7 }
  0x50   : > { %3445 = vmatpush.msra.mxu3 %v3904_v14 }
  0x52   : > { %3446 = vmatpush.msra.mxu3 %v3906_v15 }
  0x54   : > { %3447 = vmatpush.msra.mxu3 %v3909_v16 }
  0x56   : > { %3329 = vmatmul.msk.f32.gmra.mxu0 %vm337_vm1, %v317_v10  ;;  %v329_v10 = vld [vmem:[%s3876_s30 + $0x88] sm:$0xff]  ;;  %3448 = vmatpush.msra.mxu3 %v3912_v17 }
  0x58   : > { %3449 = vmatpush.msra.mxu3 %v3918_v19 }
  0x5a   : > { %3450 = vmatpush.msra.mxu3 %v3920_v20 }
  0x5c   : > { %3451 = vmatpush.msra.mxu3 %v3923_v21 }
  0x5e   : > { %3330 = vmatmul.msk.f32.gmra.mxu0 %vm337_vm1, %v318_v11  ;;  %v527_v11 = vlaneseq  ;;  %3452 = vmatpush.msra.mxu3 %v3926_v22 }
  0x60   : > { %3453 = vmatpush.msra.mxu3 %v3932_v24 }
  0x62   : > { %3454 = vmatpush.msra.mxu3 %v3934_v25 }
  0x64   : > { %3455 = vmatpush.msra.mxu3 %v3937_v26 }
  0x66   : > { %3331 = vmatmul.msk.f32.gmra.mxu0 %vm337_vm1, %v319_v12  ;;  %3456 = vmatpush.msra.mxu3 %v3940_v27 }
  0x68   : > { %3457 = vmatpush.msra.mxu3 %v3946_v29 }
  0x6a   : > { %3458 = vmatpush.msra.mxu3 %v3948_v30 }
  0x6c   : > { %3459 = vmatpush.msra.mxu3 %v3952_v31 }
  0x6e   : > { %3332 = vmatmul.msk.f32.gmra.mxu0 %vm337_vm1, %v320_v13  ;;  %v3980_v13 = vshrl.u32 %v527_v11, 7  ;;  %3460 = vmatpush.msra.mxu3 %v3956_v33 }
  0x70   : > { %6890 = vst [vmem:[#allocation15_spill] sm:$0xff] %v3980_v13  ;;  %v4003_v19 = vadd.s32 184, %v3980_v13  ;;  %vm6657_vm4 = vcmp.lt.s32.totalorder %v3980_v13, 1  ;;  %v4071_v52 = vadd.s32 24, %v3980_v13  ;;  %v4101_v62 = vadd.s32 40, %v3980_v13 }
  0x71   : > { %vm6655_vm14 = vcmp.lt.s32.totalorder %v3980_v13, 7 }
  0x72   : > { %6895 = vst [vmem:[#allocation18_spill] sm:$0xff] %v4003_v19  ;;  %v575_v38 = vand.u32 15, %v4003_v19  ;;  %v555_v33 = vand.u32 15, %v4071_v52  ;;  %v557_v0 = vand.u32 15, %v4101_v62  ;;  %v1009_v19 = vld [vmem:[#allocation2 + $0xa0] sm:$0xff] }
  0x73   : > { %6908 = vst [vmem:[#allocation27_spill] sm:$0xff] %v4071_v52 }
  0x74   : > { %vm4026_vm3 = vcmp.ne.s32.totalorder %v575_v38, 15  ;;  %vm4084_vm6 = vcmp.ne.s32.totalorder %v555_v33, 15  ;;  %6916 = vst [vmem:[#allocation33_spill] sm:$0xff] %v4101_v62  ;;  %vm4114_vm7 = vcmp.ne.s32.totalorder %v557_v0, 15  ;;  %v1029_v33 = vld [vmem:[#allocation2 + $0x140] sm:$0xff]  ;;  %v6981_v62 = vmov 0 }
  0x75   : > { %v6898_v41 = vsel %vm4026_vm3, 4294967295, %v6897_v41  ;;  %v6912_v56 = vsel %vm4084_vm6, 4294967295, %v6911_v56  ;;  %v6920_v5 = vsel %vm4114_vm7, 4294967295, %v6919_v5 }
  0x76   : > { %3333 = vmatmul.msk.f32.gmra.mxu0 %vm337_vm1, %v321_v18  ;;  %6899 = vst [vmem:[#allocation20_spill] sm:$0xff] %v6898_v41  ;;  %v1011_v41 = vld [vmem:[#allocation2 + $0xb0] sm:$0xff] }
  0x77   : > { %6913 = vst [vmem:[#allocation30_spill] sm:$0xff] %v6912_v56 }
  0x78   : > { %6921 = vst [vmem:[#allocation36_spill] sm:$0xff] %v6920_v5 }
  0x7e   : > { %3334 = vmatmul.msk.f32.gmra.mxu0 %vm337_vm1, %v322_v23  ;;  %v3984_v23 = vadd.s32 168, %v3980_v13 }
  0x80   : > { %6891 = vst [vmem:[#allocation16_spill] sm:$0xff] %v3984_v23 }
  0x86   : > { %3335 = vmatmul.msk.f32.gmra.mxu0 %vm337_vm1, %v323_v28  ;;  %v330_v28 = vld [vmem:[%s3876_s30 + $0x90] sm:$0xff]  ;;  %s3425_s30 = sshll.u32 %s3199_s19, 3 }
  0x87   : > { %s3201_s10 = scalar_lea.hbm %s6628_s6, %s3425_s30 }
  0x88   : > { %s3204_s29 = sshll.u32 %s3201_s10, 4  ;;  %s3205_s29 = int_to_ptr.hbm [resolvable:$true] %s3204_s29 }
  0x89   : > { %s3636_s26 = sshra.s32 %s3205_s29, 4  ;;  %s3637_s26 = int_to_ptr.hbm [resolvable:$true] %s3636_s26 }
  0x8a   : > { %s3638_s27 = scalar_lea.hbm %s3637_s26, 128  ;;  %p3643_p7 = scmp.lt.s32.totalorder %s3637_s26, %s6628_s6 }
  0x8b   : > { %p3639_p4 = scmp.ne.s32.totalorder %s3637_s26, %s3638_s27  ;;  %p3644_p9 = scmp.lt.s32.totalorder %s3642_s15, %s3638_s27 }
  0x8d   : > { %p3640_p5 = pnand %p3639_p4, %p3819_p3  ;;  %p3645_p10 = por %p3644_p9, %p3643_p7 }
  0x8e   : > { %3336 = vmatmul.msk.f32.gmra.mxu0 %vm337_vm1, %v324_v32  ;;  %v573_v32 = vand.u32 15, %v3984_v23 }
  0x8f   : > { %p3641_p6 = pneg %p3640_p5 }
  0x90   : > { %vm3998_vm2 = vcmp.ne.s32.totalorder %v573_v32, 15  ;;  %v1035_v32 = vld [vmem:[#allocation2 + $0x170] sm:$0xff] }
  0x91   : > { %v6893_v34 = vsel %vm3998_vm2, 4294967295, %v6892_v34  ;;  %p3646_p11 = pnand %p3645_p10, %p3641_p6 }
  0x92   : > { %6894 = vst [vmem:[#allocation17_spill] sm:$0xff] %v6893_v34 }
  0x96   : > { %3337 = vmatmul.msk.f32.gmra.mxu0 %vm337_vm1, %v325_v39  ;;  %v4017_v39 = vadd.s32 8, %v3980_v13 }
  0x98   : > { %6896 = vst [vmem:[#allocation19_spill] sm:$0xff] %v4017_v39  ;;  %v553_v42 = vand.u32 15, %v4017_v39  ;;  %v1651_v39 = vld [vmem:[#allocation2 + $0x3f0] sm:$0xff] }
  0x9a   : > { %vm4047_vm5 = vcmp.ne.s32.totalorder %v553_v42, 15  ;;  %v1032_v42 = vld [vmem:[#allocation2 + $0x158] sm:$0xff] }
  0x9b   : > { %v6903_v47 = vsel %vm4047_vm5, 4294967295, %v6902_v47 }
  0x9c   : > { %6904 = vst [vmem:[#allocation23_spill] sm:$0xff] %v6903_v47 }
  0x9e   : > { %3338 = vmatmul.msk.f32.gmra.mxu0 %vm337_vm1, %v326_v48 }
  0xa6   : > { %3339 = vmatmul.msk.f32.gmra.mxu0 %vm337_vm1, %v327_v57 }
  0xab   : > { %v431_v2 = vpop.f32.mrf.mxu0 }
  0xac   : > { %v3967_v4 = vmax.f32 %v431_v2, 0.0 }
  0xae   : > { %3340 = vmatmul.msk.f32.gmra.mxu0 %vm337_vm1, %v328_v3  ;;  %1191 = vmatmul.f32.vlgmr.msra.gmra.mxu2 %v3967_v4  ;;  %v891_v27 = vrot.slane %v3967_v4, 7 }
  0xb2   : > { %v3971_v8 = vpop.f32.mrf.mxu3 }
  0xb3   : > { %v434_v9 = vpop.f32.mrf.mxu0 }
  0xb4   : > { %v3975_v12 = vmax.f32 %v434_v9, 0.0 }
  0xb6   : > { %3341 = vmatmul.msk.f32.gmra.mxu0 %vm337_vm1, %v329_v10  ;;  %1194 = vmatmul.f32.gmra.mxu2 %v3975_v12  ;;  %v796_v48 = vsel %vm4047_vm5, %v3975_v12, 0.0 }
  0xb7   : > { %v892_v50 = vrot.slane %v796_v48, 7 }
  0xb9   : > { %v4077_v31 = vsel %vm6657_vm4, %v891_v27, %v892_v50 }
  0xba   : > { %v494_v18 = vpop.f32.mrf.mxu3  ;;  %6909 = vst [vmem:[#allocation28_spill] sm:$0xff] %v4077_v31 }
  0xbb   : > { %v437_v14 = vpop.f32.mrf.mxu0  ;;  %v3996_v16 = vmax.f32 %v494_v18, 0.0  ;;  %v4131_v18 = vadd.s32 56, %v3980_v13 }
  0xbc   : > { %v3989_v15 = vmax.f32 %v437_v14, 0.0  ;;  %v1036_v14 = vld [vmem:[#allocation2 + $0x178] sm:$0xff] }
  0xbd   : > { %v816_v21 = vsel %vm3998_vm2, %v3996_v16, 0.0  ;;  %6924 = vst [vmem:[#allocation39_spill] sm:$0xff] %v4131_v18  ;;  %1531 = vmatpush.msrb.mxu2 %v1036_v14  ;;  %v6935_v14 = vmov 0  ;;  %vm7015_vm2 = vcmp.lt.s32.totalorder %v3980_v13, 7 }
  0xbe   : > { %3342 = vmatmul.msk.f32.gmra.mxu0 %vm337_vm1, %v330_v28  ;;  %1197 = vmatmul.f32.gmra.mxu2 %v3989_v15  ;;  %v4022_v22 = vrot.slane %v816_v21, 7  ;;  %v893_v54 = vrot.slane %v3989_v15, 7 }
  0xbf   : > { %1532 = vmatpush.msrb.mxu2 %v1035_v32  ;;  %v1024_v32 = vld [vmem:[#allocation2 + $0x118] sm:$0xff] }
  0xc0   : > { %v4092_v57 = vsel %vm6657_vm4, %v892_v50, %v893_v54 }
  0xc1   : > { %6914 = vst [vmem:[#allocation31_spill] sm:$0xff] %v4092_v57 }
  0xc2   : > { %v497_v17 = vpop.f32.mrf.mxu3 }
  0xc3   : > { %v4006_v35 = vmax.f32 %v497_v17, 0.0  ;;  %v440_v20 = vpop.f32.mrf.mxu0  ;;  %v559_v17 = vand.u32 15, %v4131_v18 }
  0xc4   : > { %v4010_v37 = vmax.f32 %v440_v20, 0.0  ;;  %v1034_v20 = vld [vmem:[#allocation2 + $0x168] sm:$0xff] }
  0xc5   : > { %v913_v24 = vrot.slane %v4006_v35, 7  ;;  %1533 = vmatpush.msrb.mxu2 %v1034_v20  ;;  %vm4144_vm8 = vcmp.ne.s32.totalorder %v559_v17, 15 }
  0xc6   : > { %3343 = vmatmul.msk.f32.gmra.mxu0 %vm337_vm1, %v331_v36  ;;  %1200 = vmatmul.f32.gmra.mxu2 %v4010_v37  ;;  %v798_v58 = vsel %vm4084_vm6, %v4010_v37, 0.0 }
  0xc7   : > { %v4038_v44 = vsel %vm6657_vm4, %v4022_v22, %v913_v24  ;;  %v894_v60 = vrot.slane %v798_v58, 7 }
  0xc8   : > { %6900 = vst [vmem:[#allocation21_spill] sm:$0xff] %v4038_v44 }
  0xc9   : > { %v4107_v63 = vsel %vm6657_vm4, %v893_v54, %v894_v60  ;;  %v1028_v54 = vld [vmem:[#allocation2 + $0x138] sm:$0xff] }
  0xca   : > { %v500_v40 = vpop.f32.mrf.mxu3  ;;  %6917 = vst [vmem:[#allocation34_spill] sm:$0xff] %v4107_v63 }
  0xcb   : > { %v4032_v25 = vmax.f32 %v500_v40, 0.0  ;;  %v443_v43 = vpop.f32.mrf.mxu0  ;;  %v6927_v40 = vmov 0 }
  0xcc   : > { %v4041_v26 = vmax.f32 %v443_v43, 0.0  ;;  %v6928_v40 = vsel %vm4144_vm8, 4294967295, %v6927_v40 }
  0xcd   : > { %v818_v45 = vsel %vm4026_vm3, %v4032_v25, 0.0  ;;  %6929 = vst [vmem:[#allocation42_spill] sm:$0xff] %v6928_v40  ;;  %vm6987_vm3 = vcmp.lt.s32.totalorder %v3980_v13, 1 }
  0xce   : > { %6901 = vst [vmem:[#allocation22_spill] sm:$0xff] %v4041_v26  ;;  %v914_v46 = vrot.slane %v818_v45, 7  ;;  %1203 = vmatmul.f32.gmra.mxu2 %v4041_v26  ;;  %1369 = vmatmul.f32.vlgmr.msrb.gmra.mxu0 %v4038_v44  ;;  %v895_v2 = vrot.slane %v4041_v26, 7 }
  0xd0   : > { %v4056_v29 = vsel %vm6657_vm4, %v914_v46, %v891_v27  ;;  %v4066_v30 = vsel %vm6657_vm4, %v913_v24, %v914_v46  ;;  %v4122_v6 = vsel %vm6657_vm4, %v894_v60, %v895_v2  ;;  %v1033_v24 = vld [vmem:[#allocation2 + $0x160] sm:$0xff]  ;;  %v1031_v27 = vld [vmem:[#allocation2 + $0x150] sm:$0xff]  ;;  %v1030_v46 = vld [vmem:[#allocation2 + $0x148] sm:$0xff] }
  0xd1   : > { %6905 = vst [vmem:[#allocation24_spill] sm:$0xff] %v4056_v29  ;;  %1102 = vmatmul.f32.vlgmr.msra.gmra.mxu1 %v4056_v29  ;;  %1534 = vmatpush.msrb.mxu2 %v1033_v24  ;;  %v1020_v60 = vld [vmem:[#allocation2 + $0xf8] sm:$0xff] }
  0xd2   : > { %6906 = vst [vmem:[#allocation25_spill] sm:$0xff] %v4066_v30  ;;  %1442 = vmatpush.msrb.mxu1 %v1020_v60 }
  0xd3   : > { %v446_v49 = vpop.f32.mrf.mxu0  ;;  %6922 = vst [vmem:[#allocation37_spill] sm:$0xff] %v4122_v6  ;;  %1535 = vmatpush.msrb.mxu2 %v1032_v42 }
  0xd4   : > { %v4068_v51 = vmax.f32 %v446_v49, 0.0 }
  0xd5   : > { %1536 = vmatpush.msrb.mxu2 %v1031_v27  ;;  %v1019_v27 = vld [vmem:[#allocation2 + $0xf0] sm:$0xff] }
  0xd6   : > { %6907 = vst [vmem:[#allocation26_spill] sm:$0xff] %v4068_v51  ;;  %1206 = vmatmul.f32.gmra.mxu2 %v4068_v51  ;;  %1372 = vmatmul.f32.gmra.mxu0 %v4066_v30  ;;  %v800_v7 = vsel %vm4114_vm7, %v4068_v51, 0.0 }
  0xd7   : > { %v896_v10 = vrot.slane %v800_v7, 7  ;;  %1537 = vmatpush.msrb.mxu2 %v1030_v46  ;;  %v1021_v46 = vld [vmem:[#allocation2 + $0x100] sm:$0xff]  ;;  %1443 = vmatpush.msrb.mxu1 %v1019_v27  ;;  %v1014_v27 = vld [vmem:[#allocation2 + $0xc8] sm:$0xff] }
  0xd9   : > { %1105 = vmatmul.f32.gmra.mxu1 %v4077_v31  ;;  %v4137_v28 = vsel %vm6657_vm4, %v895_v2, %v896_v10  ;;  %1538 = vmatpush.msrb.mxu2 %v1029_v33 }
  0xda   : > { %6925 = vst [vmem:[#allocation40_spill] sm:$0xff] %v4137_v28 }
  0xdb   : > { %v449_v53 = vpop.f32.mrf.mxu0  ;;  %1539 = vmatpush.msrb.mxu2 %v1028_v54 }
  0xdc   : > { %v4082_v55 = vmax.f32 %v449_v53, 0.0  ;;  %v4161_v53 = vadd.s32 72, %v3980_v13 }
  0xde   : > { %6910 = vst [vmem:[#allocation29_spill] sm:$0xff] %v4082_v55  ;;  %1209 = vmatmul.f32.gmra.mxu2 %v4082_v55  ;;  %1375 = vmatmul.f32.gmra.mxu0 %v4056_v29  ;;  %v897_v21 = vrot.slane %v4082_v55, 7  ;;  %v561_v0 = vand.u32 15, %v4161_v53  ;;  %v941_v29 = vrot.slane %v3975_v12, 1 }
  0xdf   : > { %6932 = vst [vmem:[#allocation45_spill] sm:$0xff] %v4161_v53  ;;  %v4311_v53 = vadd.s32 16, %v3980_v13 }
  0xe0   : > { %v4152_v43 = vsel %vm6657_vm4, %v896_v10, %v897_v21  ;;  %v1025_v10 = vld [vmem:[#allocation2 + $0x120] sm:$0xff]  ;;  %vm4174_vm9 = vcmp.ne.s32.totalorder %v561_v0, 15  ;;  %v1018_v0 = vld [vmem:[#allocation2 + $0xe8] sm:$0xff] }
  0xe1   : > { %1108 = vmatmul.f32.gmra.mxu1 %v4092_v57  ;;  %6930 = vst [vmem:[#allocation43_spill] sm:$0xff] %v4152_v43  ;;  %v6936_v14 = vsel %vm4174_vm9, 4294967295, %v6935_v14  ;;  %v554_v18 = vand.u32 15, %v4311_v53 }
  0xe2   : > { %6937 = vst [vmem:[#allocation48_spill] sm:$0xff] %v6936_v14  ;;  %1444 = vmatpush.msrb.mxu1 %v1018_v0 }
  0xe3   : > { %v452_v59 = vpop.f32.mrf.mxu0  ;;  %6971 = vst [vmem:[#allocation72_spill] sm:$0xff] %v4311_v53  ;;  %v943_v53 = vrot.slane %v4010_v37, 1 }
  0xe4   : > { %v4098_v61 = vmax.f32 %v452_v59, 0.0  ;;  %v1027_v59 = vld [vmem:[#allocation2 + $0x130] sm:$0xff] }
  0xe5   : > { %1540 = vmatpush.msrb.mxu2 %v1027_v59 }
  0xe6   : > { %6915 = vst [vmem:[#allocation32_spill] sm:$0xff] %v4098_v61  ;;  %1212 = vmatmul.f32.gmra.mxu2 %v4098_v61  ;;  %1378 = vmatmul.f32.gmra.mxu0 %v4077_v31  ;;  %v802_v45 = vsel %vm4144_vm8, %v4098_v61, 0.0 }
  0xe7   : > { %v898_v49 = vrot.slane %v802_v45, 7 }
  0xe9   : > { %1111 = vmatmul.f32.gmra.mxu1 %v4107_v63  ;;  %v4167_v58 = vsel %vm6657_vm4, %v897_v21, %v898_v49  ;;  %v1022_v21 = vld [vmem:[#allocation2 + $0x108] sm:$0xff] }
  0xea   : > { %6933 = vst [vmem:[#allocation46_spill] sm:$0xff] %v4167_v58 }
  0xeb   : > { %v455_v1 = vpop.f32.mrf.mxu0 }
  0xec   : > { %v4112_v3 = vmax.f32 %v455_v1, 0.0  ;;  %v1026_v1 = vld [vmem:[#allocation2 + $0x128] sm:$0xff] }
  0xed   : > { %1541 = vmatpush.msrb.mxu2 %v1026_v1  ;;  %v6943_v1 = vmov 0 }
  0xee   : > { %6918 = vst [vmem:[#allocation35_spill] sm:$0xff] %v4112_v3  ;;  %1215 = vmatmul.f32.gmra.mxu2 %v4112_v3  ;;  %1381 = vmatmul.f32.gmra.mxu0 %v4092_v57  ;;  %v899_v7 = vrot.slane %v4112_v3, 7 }
  0xef   : > { %1542 = vmatpush.msrb.mxu2 %v1025_v10 }
  0xf0   : > { %v4182_v17 = vsel %vm6657_vm4, %v898_v49, %v899_v7 }
  0xf1   : > { %1114 = vmatmul.f32.gmra.mxu1 %v4122_v6  ;;  %6938 = vst [vmem:[#allocation49_spill] sm:$0xff] %v4182_v17  ;;  %1543 = vmatpush.msrb.mxu2 %v1024_v32  ;;  %v1016_v32 = vld [vmem:[#allocation2 + $0xd8] sm:$0xff] }
  0xf3   : > { %v458_v9 = vpop.f32.mrf.mxu0 }
  0xf4   : > { %v4128_v11 = vmax.f32 %v458_v9, 0.0 }
  0xf6   : > { %6923 = vst [vmem:[#allocation38_spill] sm:$0xff] %v4128_v11  ;;  %1218 = vmatmul.f32.gmra.mxu2 %v4128_v11  ;;  %1384 = vmatmul.f32.gmra.mxu0 %v4107_v63  ;;  %v804_v20 = vsel %vm4174_vm9, %v4128_v11, 0.0 }
  0xf7   : > { %v900_v42 = vrot.slane %v804_v20, 7 }
  0xf9   : > { %1117 = vmatmul.f32.gmra.mxu1 %v4137_v28  ;;  %v4197_v49 = vsel %vm6657_vm4, %v899_v7, %v900_v42 }
  0xfa   : > { %6941 = vst [vmem:[#allocation52_spill] sm:$0xff] %v4197_v49 }
  0xfb   : > { %v461_v36 = vpop.f32.mrf.mxu0 }
  0xfc   : > { %v4142_v38 = vmax.f32 %v461_v36, 0.0  ;;  %v1023_v36 = vld [vmem:[#allocation2 + $0x110] sm:$0xff] }
  0xfd   : > { %1544 = vmatpush.msrb.mxu2 %v1023_v36 }
  0xfe   : > { %6926 = vst [vmem:[#allocation41_spill] sm:$0xff] %v4142_v38  ;;  %1221 = vmatmul.f32.gmra.mxu2 %v4142_v38  ;;  %1387 = vmatmul.f32.gmra.mxu0 %v4122_v6  ;;  %v901_v59 = vrot.slane %v4142_v38, 7  ;;  %v7027_v6 = vmov 0 }
  0xff   : > { %1545 = vmatpush.msrb.mxu2 %v1022_v21  ;;  %v1015_v21 = vld [vmem:[#allocation2 + $0xd0] sm:$0xff] }
 0x100   : > { %v4212_v7 = vsel %vm6657_vm4, %v900_v42, %v901_v59  ;;  %v4224_v42 = vadd.s32 104, %v3980_v13 }
 0x101   : > { %1120 = vmatmul.f32.gmra.mxu1 %v4152_v43  ;;  %1546 = vmatpush.msrb.mxu2 %v1021_v46  ;;  %6946 = vst [vmem:[#allocation55_spill] sm:$0xff] %v4212_v7  ;;  %v4221_v46 = vadd.s32 176, %v3980_v13 }
 0x102   : > { %6949 = vst [vmem:[#allocation58_spill] sm:$0xff] %v4224_v42 }
 0x103   : > { %v464_v48 = vpop.f32.mrf.mxu0  ;;  %6948 = vst [vmem:[#allocation57_spill] sm:$0xff] %v4221_v46  ;;  %v574_v0 = vand.u32 15, %v4221_v46  ;;  %v1008_v46 = vld [vmem:[#allocation2 + $0x98] sm:$0xff] }
 0x104   : > { %v4158_v50 = vmax.f32 %v464_v48, 0.0  ;;  %v4191_v48 = vadd.s32 88, %v3980_v13 }
 0x105   : > { %vm4241_vm11 = vcmp.ne.s32.totalorder %v574_v0, 0 }
 0x106   : > { %6931 = vst [vmem:[#allocation44_spill] sm:$0xff] %v4158_v50  ;;  %1224 = vmatmul.f32.gmra.mxu2 %v4158_v50  ;;  %1390 = vmatmul.f32.gmra.mxu0 %v4137_v28  ;;  %v563_v33 = vand.u32 15, %v4191_v48 }
 0x107   : > { %6940 = vst [vmem:[#allocation51_spill] sm:$0xff] %v4191_v48 }
 0x108   : > { %vm4204_vm10 = vcmp.ne.s32.totalorder %v563_v33, 15  ;;  %v1013_v33 = vld [vmem:[#allocation2 + $0xc0] sm:$0xff] }
 0x109   : > { %1123 = vmatmul.f32.gmra.mxu1 %v4167_v58  ;;  %v6944_v1 = vsel %vm4204_vm10, 4294967295, %v6943_v1  ;;  %v806_v10 = vsel %vm4204_vm10, %v4158_v50, 0.0 }
 0x10a   : > { %6945 = vst [vmem:[#allocation54_spill] sm:$0xff] %v6944_v1  ;;  %v902_v36 = vrot.slane %v806_v10, 7  ;;  %v1012_v10 = vld [vmem:[#allocation2 + $0xb8] sm:$0xff]  ;;  %v6960_v1 = vmov 0 }
 0x10b   : > { %v467_v2 = vpop.f32.mrf.mxu0 }
 0x10c   : > { %v4172_v9 = vmax.f32 %v467_v2, 0.0  ;;  %v1017_v2 = vld [vmem:[#allocation2 + $0xe0] sm:$0xff] }
 0x10d   : > { %1445 = vmatpush.msrb.mxu1 %v1017_v2  ;;  %v565_v2 = vand.u32 15, %v4224_v42 }
 0x10e   : > { %6934 = vst [vmem:[#allocation47_spill] sm:$0xff] %v4172_v9  ;;  %1227 = vmatmul.f32.gmra.mxu2 %v4172_v9  ;;  %1393 = vmatmul.f32.gmra.mxu0 %v4152_v43 }
 0x10f   : > { %1446 = vmatpush.msrb.mxu1 %v1016_v32  ;;  %vm4245_vm12 = vcmp.ne.s32.totalorder %v565_v2, 15  ;;  %v889_v2 = vsel %vm4241_vm11, %v4006_v35, 0.0 }
 0x111   : > { %1126 = vmatmul.f32.gmra.mxu1 %v4182_v17 }
 0x112   : > { %1447 = vmatpush.msrb.mxu1 %v1015_v21  ;;  %v4237_v21 = vadd.s32 136, %v3980_v13 }
 0x113   : > { %v470_v24 = vpop.f32.mrf.mxu0 }
 0x114   : > { %v4188_v45 = vmax.f32 %v470_v24, 0.0  ;;  %1448 = vmatpush.msrb.mxu1 %v1014_v27  ;;  %6951 = vst [vmem:[#allocation60_spill] sm:$0xff] %v4237_v21  ;;  %v6956_v27 = vmov 0  ;;  %v569_v0 = vand.u32 15, %v4237_v21  ;;  %v963_v21 = vrot.slane %v4032_v25, 1 }
 0x115   : > { %v6957_v27 = vsel %vm4245_vm12, 4294967295, %v6956_v27 }
 0x116   : > { %6939 = vst [vmem:[#allocation50_spill] sm:$0xff] %v4188_v45  ;;  %1230 = vmatmul.f32.gmra.mxu2 %v4188_v45  ;;  %1396 = vmatmul.f32.gmra.mxu0 %v4167_v58  ;;  %vm4267_vm13 = vcmp.ne.s32.totalorder %v569_v0, 15  ;;  %v4284_v0 = vadd.s32 120, %v3980_v13 }
 0x117   : > { %1449 = vmatpush.msrb.mxu1 %v1013_v33  ;;  %6958 = vst [vmem:[#allocation63_spill] sm:$0xff] %v6957_v27  ;;  %v1010_v33 = vld [vmem:[#allocation2 + $0xa8] sm:$0xff]  ;;  %v6961_v1 = vsel %vm4267_vm13, 4294967295, %v6960_v1 }
 0x118   : > { %6962 = vst [vmem:[#allocation65_spill] sm:$0xff] %v6961_v1  ;;  %v567_v1 = vand.u32 15, %v4284_v0 }
 0x119   : > { %1129 = vmatmul.f32.gmra.mxu1 %v4197_v49  ;;  %6967 = vst [vmem:[#allocation68_spill] sm:$0xff] %v4284_v0 }
 0x11a   : > { %1450 = vmatpush.msrb.mxu1 %v1012_v10  ;;  %vm4319_vm0 = vcmp.ne.s32.totalorder %v567_v1, 15 }
 0x11b   : > { %v473_v54 = vpop.f32.mrf.mxu0 }
 0x11c   : > { %v4202_v60 = vmax.f32 %v473_v54, 0.0  ;;  %v4230_v54 = vsel %vm6657_vm4, %v901_v59, %v902_v36  ;;  %v6953_v59 = vmov 0  ;;  %1451 = vmatpush.msrb.mxu1 %v1011_v41  ;;  %v808_v41 = vsel %vm4245_vm12, %v4188_v45, 0.0 }
 0x11d   : > { %6950 = vst [vmem:[#allocation59_spill] sm:$0xff] %v4230_v54  ;;  %v6954_v59 = vsel %vm4241_vm11, 4294967295, %v6953_v59  ;;  %vm7000_vm11 = vcmp.lt.s32.totalorder %v3980_v13, 7 }
 0x11e   : > { %6942 = vst [vmem:[#allocation53_spill] sm:$0xff] %v4202_v60  ;;  %1233 = vmatmul.f32.gmra.mxu2 %v4202_v60  ;;  %1399 = vmatmul.f32.gmra.mxu0 %v4182_v17 }
 0x11f   : > { %6955 = vst [vmem:[#allocation62_spill] sm:$0xff] %v6954_v59  ;;  %1452 = vmatpush.msrb.mxu1 %v1010_v33  ;;  %v904_v33 = vrot.slane %v808_v41, 7  ;;  %v1007_v59 = vld [vmem:[#allocation2 + $0x90] sm:$0xff]  ;;  %v1006_v41 = vld [vmem:[#allocation2 + $0x88] sm:$0xff] }
 0x121   : > { %1132 = vmatmul.f32.gmra.mxu1 %v4212_v7 }
 0x122   : > { %1453 = vmatpush.msrb.mxu1 %v1009_v19 }
 0x123   : > { %v476_v20 = vpop.f32.mrf.mxu0 }
 0x124   : > { %v4218_v24 = vmax.f32 %v476_v20, 0.0  ;;  %v903_v20 = vrot.slane %v4172_v9, 7  ;;  %1454 = vmatpush.msrb.mxu1 %v1008_v46  ;;  %v1005_v46 = vld [vmem:[#allocation2 + $0x80] sm:$0xff] }
 0x126   : > { %6947 = vst [vmem:[#allocation56_spill] sm:$0xff] %v4218_v24  ;;  %1236 = vmatmul.f32.gmra.mxu2 %v4218_v24  ;;  %1402 = vmatmul.f32.gmra.mxu0 %v4197_v49  ;;  %v4253_v10 = vsel %vm6657_vm4, %v902_v36, %v903_v20  ;;  %v4264_v36 = vrot.slane %v889_v2, 1  ;;  %v6964_v2 = vmov 0 }
 0x127   : > { %6959 = vst [vmem:[#allocation64_spill] sm:$0xff] %v4253_v10  ;;  %1455 = vmatpush.msrb.mxu1 %v1007_v59 }
 0x128   : > { %v4277_v19 = vsel %vm6655_vm14, %v4264_v36, %v963_v21 }
 0x129   : > { %1135 = vmatmul.f32.gmra.mxu1 %v4230_v54 }
 0x12a   : > { %1456 = vmatpush.msrb.mxu1 %v1006_v41  ;;  %v4308_v41 = vadd.s32 152, %v3980_v13 }
 0x12b   : > { %v479_v32 = vpop.f32.mrf.mxu0 }
 0x12c   : > { %v4239_v34 = vmax.f32 %v479_v32, 0.0  ;;  %v552_v32 = vand.u32 15, %v3980_v13  ;;  %1457 = vmatpush.msrb.mxu1 %v1005_v46  ;;  %6970 = vst [vmem:[#allocation71_spill] sm:$0xff] %v4308_v41  ;;  %v6973_v46 = vmov 0 }
 0x12d   : > { %v6974_v46 = vsel %vm4319_vm0, 4294967295, %v6973_v46 }
 0x12e   : > { %6952 = vst [vmem:[#allocation61_spill] sm:$0xff] %v4239_v34  ;;  %1239 = vmatmul.f32.gmra.mxu2 %v4239_v34  ;;  %1405 = vmatmul.f32.gmra.mxu0 %v4212_v7  ;;  %vm4279_vm15 = vcmp.ne.s32.totalorder %v552_v32, 0  ;;  %v4293_v32 = vsel %vm6657_vm4, %v903_v20, %v904_v33  ;;  %v907_v27 = vrot.slane %v4239_v34, 7 }
 0x12f   : > { %v6965_v2 = vsel %vm4279_vm15, 4294967295, %v6964_v2  ;;  %6968 = vst [vmem:[#allocation69_spill] sm:$0xff] %v4293_v32  ;;  %v867_v59 = vsel %vm4279_vm15, %v3967_v4, 0.0 }
 0x130   : > { %6966 = vst [vmem:[#allocation67_spill] sm:$0xff] %v6965_v2  ;;  %v940_v40 = vrot.slane %v867_v59, 1 }
 0x131   : > { %1138 = vmatmul.f32.gmra.mxu1 %v4253_v10  ;;  %6975 = vst [vmem:[#allocation74_spill] sm:$0xff] %v6974_v46 }
 0x132   : > { %v4317_v5 = vsel %vm6655_vm14, %v963_v21, %v940_v40  ;;  %v810_v21 = vsel %vm4319_vm0, %v4218_v24, 0.0  ;;  %vm4346_vm14 = vcmp.ne.s32.totalorder %v554_v18, 0 }
 0x133   : > { %v482_v23 = vpop.f32.mrf.mxu0  ;;  %v906_v56 = vrot.slane %v810_v21, 7  ;;  %v6982_v62 = vsel %vm4346_vm14, 4294967295, %v6981_v62  ;;  %v869_v18 = vsel %vm4346_vm14, %v3989_v15, 0.0 }
 0x134   : > { %v4271_v42 = vmax.f32 %v482_v23, 0.0  ;;  %6983 = vst [vmem:[#allocation78_spill] sm:$0xff] %v6982_v62  ;;  %v942_v47 = vrot.slane %v869_v18, 1  ;;  %v4378_v62 = vadd.s32 32, %v3980_v13 }
 0x136   : > { %6963 = vst [vmem:[#allocation66_spill] sm:$0xff] %v4271_v42  ;;  %1408 = vmatmul.f32.gmra.mxu0 %v4230_v54  ;;  %1547 = vmatmul.f32.vlgmr.msrb.gmra.mxu2 %v4277_v19  ;;  %v812_v23 = vsel %vm4267_vm13, %v4271_v42, 0.0  ;;  %v556_v2 = vand.u32 15, %v4378_v62 }
 0x137   : > { %v908_v14 = vrot.slane %v812_v23, 7  ;;  %v905_v23 = vrot.slane %v4202_v60, 7  ;;  %6991 = vst [vmem:[#allocation83_spill] sm:$0xff] %v4378_v62  ;;  %v1649_v62 = vld [vmem:[#allocation2 + $0x3e0] sm:$0xff] }
 0x139   : > { %1141 = vmatmul.f32.gmra.mxu1 %v4293_v32  ;;  %v4302_v48 = vsel %vm6657_vm4, %v907_v27, %v908_v14  ;;  %v4328_v0 = vsel %vm6657_vm4, %v904_v33, %v905_v23  ;;  %v4366_v21 = vsel %vm6987_vm3, %v905_v23, %v906_v56 }
 0x13a   : > { %6969 = vst [vmem:[#allocation70_spill] sm:$0xff] %v4302_v48  ;;  %1153 = vmatmul.f32.vlgmr.msrb.gmra.mxu3 %v4302_v48 }
 0x13b   : > { %v485_v20 = vpop.f32.mrf.mxu0  ;;  %6976 = vst [vmem:[#allocation75_spill] sm:$0xff] %v4328_v0 }
 0x13c   : > { %v4313_v31 = vmax.f32 %v485_v20, 0.0  ;;  %v571_v20 = vand.u32 15, %v4308_v41  ;;  %v6978_v41 = vmov 0  ;;  %6988 = vst [vmem:[#allocation81_spill] sm:$0xff] %v4366_v21 }
 0x13e   : > { %6972 = vst [vmem:[#allocation73_spill] sm:$0xff] %v4313_v31  ;;  %1411 = vmatmul.f32.gmra.mxu0 %v4253_v10  ;;  %1550 = vmatmul.f32.gmra.mxu2 %v4317_v5  ;;  %v909_v59 = vrot.slane %v4313_v31, 7  ;;  %vm4342_vm1 = vcmp.ne.s32.totalorder %v571_v20, 15  ;;  %v1647_v10 = vld [vmem:[#allocation2 + $0x3d0] sm:$0xff] }
 0x13f   : > { %v6979_v41 = vsel %vm4342_vm1, 4294967295, %v6978_v41 }
 0x140   : > { %v4335_v1 = vsel %vm6657_vm4, %v908_v14, %v909_v59  ;;  %6980 = vst [vmem:[#allocation77_spill] sm:$0xff] %v6979_v41  ;;  %vm6985_vm4 = vcmp.lt.s32.totalorder %v3980_v13, 7  ;;  %v4375_v41 = vmax.f32 %v3971_v8, 0.0 }
 0x141   : > { %1144 = vmatmul.f32.gmra.mxu1 %v4328_v0  ;;  %6977 = vst [vmem:[#allocation76_spill] sm:$0xff] %v4335_v1  ;;  %v4354_v46 = vsel %vm6985_vm4, %v940_v40, %v941_v29  ;;  %vm6989_vm4 = vmmov %vm6987_vm3  ;;  %vm6992_vm3 = vcmp.lt.s32.totalorder %v3980_v13, 7 }
 0x142   : > { %1156 = vmatmul.f32.gmra.mxu3 %v4335_v1  ;;  %6986 = vst [vmem:[#allocation80_spill] sm:$0xff] %v4354_v46  ;;  %v4384_v23 = vsel %vm6992_vm3, %v941_v29, %v942_v47  ;;  %v4392_v8 = vsel %vm6989_vm4, %v906_v56, %v907_v27  ;;  %v911_v18 = vrot.slane %v4375_v41, 7  ;;  %vm6995_vm3 = vmmov %vm6989_vm4  ;;  %v6997_v56 = vmov 0  ;;  %v1650_v27 = vld [vmem:[#allocation2 + $0x3e8] sm:$0xff] }
 0x143   : > { %v488_v33 = vpop.f32.mrf.mxu0  ;;  %6993 = vst [vmem:[#allocation84_spill] sm:$0xff] %v4384_v23 }
 0x144   : > { %v4350_v14 = vmax.f32 %v488_v33, 0.0  ;;  %6994 = vst [vmem:[#allocation85_spill] sm:$0xff] %v4392_v8 }
 0x146   : > { %6984 = vst [vmem:[#allocation79_spill] sm:$0xff] %v4350_v14  ;;  %1414 = vmatmul.f32.gmra.mxu0 %v4293_v32  ;;  %1553 = vmatmul.f32.gmra.mxu2 %v4354_v46  ;;  %v814_v20 = vsel %vm4342_vm1, %v4350_v14, 0.0  ;;  %v1648_v32 = vld [vmem:[#allocation2 + $0x3d8] sm:$0xff]  ;;  %vm7022_vm1 = vcmp.lt.s32.totalorder %v3980_v13, 7 }
 0x147   : > { %v910_v33 = vrot.slane %v814_v20, 7  ;;  %v4386_v20 = vpop.f32.mrf.mxu2 }
 0x149   : > { %1147 = vmatmul.f32.gmra.mxu1 %v4366_v21  ;;  %v4371_v40 = vsel %vm6989_vm4, %v909_v59, %v910_v33  ;;  %v1652_v59 = vld [vmem:[#allocation2 + $0x3f8] sm:$0xff]  ;;  %v4399_v29 = vsel %vm6995_vm3, %v910_v33, %v911_v18  ;;  %vm4403_vm4 = vcmp.ne.s32.totalorder %v556_v2, 0  ;;  %v4411_v33 = vsel %vm7000_vm11, %v942_v47, %v943_v53  ;;  %v1084_v2 = vld [vmem:[#allocation2 + $0x2f0] sm:$0xff]  ;;  %vm7001_vm11 = vmmov %vm6995_vm3 }
 0x14a   : > { %6990 = vst [vmem:[#allocation82_spill] sm:$0xff] %v4371_v40  ;;  %1159 = vmatmul.f32.gmra.mxu3 %v4371_v40  ;;  %1758 = vmatpush.msra.mxu0 %v1652_v59  ;;  %v6998_v56 = vsel %vm4403_vm4, 4294967295, %v6997_v56  ;;  %v4424_v47 = vsel %vm7001_vm11, %v911_v18, %v4022_v22  ;;  %vm7004_vm3 = vcmp.lt.s32.totalorder %v3980_v13, 7  ;;  %v1645_v22 = vld [vmem:[#allocation2 + $0x3c0] sm:$0xff]  ;;  %v1644_v18 = vld [vmem:[#allocation2 + $0x3b8] sm:$0xff] }
 0x14b   : > { %6996 = vst [vmem:[#allocation86_spill] sm:$0xff] %v4399_v29 }
 0x14c   : > { %1759 = vmatpush.msra.mxu0 %v1651_v39  ;;  %6999 = vst [vmem:[#allocation87_spill] sm:$0xff] %v6998_v56  ;;  %v871_v39 = vsel %vm4403_vm4, %v4041_v26, 0.0  ;;  %v4428_v56 = vadd.s32 48, %v3980_v13 }
 0x14d   : > { %7002 = vst [vmem:[#allocation88_spill] sm:$0xff] %v4424_v47 }
 0x14e   : > { %v4380_v52 = vpop.f32.mrf.mxu1  ;;  %1417 = vmatmul.f32.gmra.mxu0 %v4328_v0  ;;  %1556 = vmatmul.f32.gmra.mxu2 %v4384_v23  ;;  %v1085_v0 = vld [vmem:[#allocation2 + $0x2f8] sm:$0xff]  ;;  %7003 = vst [vmem:[#allocation89_spill] sm:$0xff] %v4428_v56  ;;  %v558_v7 = vand.u32 15, %v4428_v56 }
 0x14f   : > { %1264 = vmatpush.msrb.mxu3 %v1085_v0  ;;  %1760 = vmatpush.msra.mxu0 %v1650_v27  ;;  %v4418_v0 = vpop.f32.mrf.mxu2  ;;  %v944_v27 = vrot.slane %v871_v39, 1  ;;  %v1081_v39 = vld [vmem:[#allocation2 + $0x2d8] sm:$0xff] }
 0x150   : > { %vm4446_vm11 = vcmp.ne.s32.totalorder %v558_v7, 0 }
 0x151   : > { %1150 = vmatmul.f32.gmra.mxu1 %v4392_v8  ;;  %1761 = vmatpush.msra.mxu0 %v1649_v62  ;;  %v1646_v62 = vld [vmem:[#allocation2 + $0x3c8] sm:$0xff]  ;;  %v4434_v54 = vsel %vm7004_vm3, %v943_v53, %v944_v27  ;;  %v945_v53 = vrot.slane %v4068_v51, 1  ;;  %v873_v7 = vsel %vm4446_vm11, %v4082_v55, 0.0 }
 0x152   : > { %1162 = vmatmul.f32.gmra.mxu3 %v4399_v29 }
 0x153   : > { %1265 = vmatpush.msrb.mxu3 %v1084_v2  ;;  %1762 = vmatpush.msra.mxu0 %v1648_v32  ;;  %v1082_v32 = vld [vmem:[#allocation2 + $0x2e0] sm:$0xff] }
 0x155   : > { %1763 = vmatpush.msra.mxu0 %v1647_v10  ;;  %v4439_v10 = vpop.f32.mrf.mxu0 }
 0x156   : > { %v4407_v59 = vpop.f32.mrf.mxu1  ;;  %1420 = vmatmul.f32.gmra.mxu0 %v4366_v21  ;;  %1559 = vmatmul.f32.gmra.mxu2 %v4411_v33  ;;  %v1083_v21 = vld [vmem:[#allocation2 + $0x2e8] sm:$0xff]  ;;  %7005 = vst [vmem:[#allocation90_spill] sm:$0xff] %v4439_v10  ;;  %v4454_v10 = vsel %vm7004_vm3, %v944_v27, %v945_v53  ;;  %v1639_v27 = vld [vmem:[#allocation2 + $0x390] sm:$0xff] }
 0x157   : > { %1266 = vmatpush.msrb.mxu3 %v1083_v21  ;;  %1764 = vmatpush.msra.mxu0 %v1646_v62  ;;  %v1643_v21 = vld [vmem:[#allocation2 + $0x3b0] sm:$0xff]  ;;  %v4443_v62 = vpop.f32.mrf.mxu2 }
 0x159   : > { %1458 = vmatmul.f32.vlgmr.msrb.gmra.mxu1 %v4006_v35  ;;  %1267 = vmatpush.msrb.mxu3 %v1082_v32  ;;  %v1642_v32 = vld [vmem:[#allocation2 + $0x3a8] sm:$0xff] }
 0x15a   : > { %1165 = vmatmul.f32.gmra.mxu3 %v4424_v47  ;;  %1765 = vmatpush.msra.mxu0 %v1645_v22  ;;  %v1080_v22 = vld [vmem:[#allocation2 + $0x2d0] sm:$0xff] }
 0x15b   : > { %1268 = vmatpush.msrb.mxu3 %v1081_v39  ;;  %v1079_v39 = vld [vmem:[#allocation2 + $0x2c8] sm:$0xff] }
 0x15c   : > { %1766 = vmatpush.msra.mxu0 %v1644_v18  ;;  %v1641_v18 = vld [vmem:[#allocation2 + $0x3a0] sm:$0xff] }
 0x15d   : > { %1269 = vmatpush.msrb.mxu3 %v1080_v22  ;;  %v946_v22 = vrot.slane %v873_v7, 1 }
 0x15e   : > { %v4430_v2 = vpop.f32.mrf.mxu1  ;;  %1423 = vmatmul.f32.gmra.mxu0 %v4392_v8  ;;  %1562 = vmatmul.f32.gmra.mxu2 %v4434_v54  ;;  %v7006_v8 = vmov 0 }
 0x15f   : > { %v7007_v8 = vsel %vm4446_vm11, 4294967295, %v7006_v8  ;;  %1767 = vmatpush.msra.mxu0 %v1643_v21  ;;  %v1640_v21 = vld [vmem:[#allocation2 + $0x398] sm:$0xff]  ;;  %1270 = vmatpush.msrb.mxu3 %v1079_v39  ;;  %v4468_v49 = vpop.f32.mrf.mxu2  ;;  %v4474_v7 = vsel %vm7004_vm3, %v945_v53, %v946_v22  ;;  %v1637_v39 = vld [vmem:[#allocation2 + $0x380] sm:$0xff]  ;;  %v7011_v53 = vmov 0 }
 0x160   : > { %7008 = vst [vmem:[#allocation91_spill] sm:$0xff] %v7007_v8  ;;  %v1638_v8 = vld [vmem:[#allocation2 + $0x388] sm:$0xff] }
 0x161   : > { %1461 = vmatmul.f32.gmra.mxu1 %v4032_v25  ;;  %1768 = vmatpush.msra.mxu0 %v1642_v32  ;;  %v1078_v32 = vld [vmem:[#allocation2 + $0x2c0] sm:$0xff] }
 0x162   : > { %1168 = vmatmul.f32.gmra.mxu3 %v4038_v44  ;;  %v4462_v44 = vpop.f32.mrf.mxu0 }
 0x163   : > { %1769 = vmatpush.msra.mxu0 %v1641_v18  ;;  %7009 = vst [vmem:[#allocation92_spill] sm:$0xff] %v4462_v44  ;;  %1271 = vmatpush.msrb.mxu3 %v1078_v32  ;;  %v1076_v32 = vld [vmem:[#allocation2 + $0x2b0] sm:$0xff] }
 0x165   : > { %1770 = vmatpush.msra.mxu0 %v1640_v21  ;;  %v1077_v21 = vld [vmem:[#allocation2 + $0x2b8] sm:$0xff] }
 0x166   : > { %v4450_v56 = vpop.f32.mrf.mxu1  ;;  %1426 = vmatmul.f32.gmra.mxu0 %v4302_v48  ;;  %1565 = vmatmul.f32.gmra.mxu2 %v4454_v10  ;;  %v4466_v48 = vadd.s32 64, %v3980_v13 }
 0x167   : > { %1771 = vmatpush.msra.mxu0 %v1639_v27  ;;  %1272 = vmatpush.msrb.mxu3 %v1077_v21  ;;  %v947_v27 = vrot.slane %v4098_v61, 1  ;;  %v4494_v21 = vpop.f32.mrf.mxu2 }
 0x168   : > { %7010 = vst [vmem:[#allocation93_spill] sm:$0xff] %v4466_v48 }
 0x169   : > { %1464 = vmatmul.f32.gmra.mxu1 %v3967_v4  ;;  %1772 = vmatpush.msra.mxu0 %v1638_v8 }
 0x16a   : > { %1171 = vmatmul.f32.gmra.mxu3 %v4066_v30  ;;  %v560_v30 = vand.u32 15, %v4466_v48  ;;  %v4486_v8 = vpop.f32.mrf.mxu0  ;;  %v1075_v48 = vld [vmem:[#allocation2 + $0x2a8] sm:$0xff] }
 0x16b   : > { %1773 = vmatpush.msra.mxu0 %v1637_v39  ;;  %1273 = vmatpush.msrb.mxu3 %v1076_v32  ;;  %7014 = vst [vmem:[#allocation95_spill] sm:$0xff] %v4486_v8  ;;  %v4492_v39 = vsel %vm7015_vm2, %v946_v22, %v947_v27  ;;  %v1074_v8 = vld [vmem:[#allocation2 + $0x2a0] sm:$0xff]  ;;  %v4504_v22 = vadd.s32 80, %v3980_v13 }
 0x16c   : > { %vm4482_vm3 = vcmp.ne.s32.totalorder %v560_v30, 0 }
 0x16d   : > { %v7012_v53 = vsel %vm4482_vm3, 4294967295, %v7011_v53  ;;  %v875_v30 = vsel %vm4482_vm3, %v4112_v3, 0.0  ;;  %1274 = vmatpush.msrb.mxu3 %v1075_v48  ;;  %7016 = vst [vmem:[#allocation96_spill] sm:$0xff] %v4504_v22  ;;  %v1072_v48 = vld [vmem:[#allocation2 + $0x290] sm:$0xff] }
 0x16e   : > { %v4470_v18 = vpop.f32.mrf.mxu1  ;;  %1429 = vmatmul.f32.gmra.mxu0 %v4335_v1  ;;  %1568 = vmatmul.f32.gmra.mxu2 %v4474_v7  ;;  %7013 = vst [vmem:[#allocation94_spill] sm:$0xff] %v7012_v53  ;;  %v948_v32 = vrot.slane %v875_v30, 1  ;;  %v1073_v1 = vld [vmem:[#allocation2 + $0x298] sm:$0xff]  ;;  %v562_v30 = vand.u32 15, %v4504_v22 }
 0x16f   : > { %1275 = vmatpush.msrb.mxu3 %v1074_v8  ;;  %v4517_v58 = vpop.f32.mrf.mxu2  ;;  %v949_v8 = vrot.slane %v4128_v11, 1 }
 0x170   : > { %v4510_v17 = vsel %vm7015_vm2, %v947_v27, %v948_v32  ;;  %v1071_v27 = vld [vmem:[#allocation2 + $0x288] sm:$0xff]  ;;  %vm4522_vm2 = vcmp.ne.s32.totalorder %v562_v30, 0 }
 0x171   : > { %1467 = vmatmul.f32.gmra.mxu1 %v3975_v12  ;;  %1276 = vmatpush.msrb.mxu3 %v1073_v1  ;;  %v7018_v1 = vmov 0  ;;  %v4530_v22 = vsel %vm7022_vm1, %v948_v32, %v949_v8  ;;  %v1636_v32 = vld [vmem:[#allocation2 + $0x378] sm:$0xff] }
 0x172   : > { %1242 = vmatmul.f32.vlgmr.msra.gmra.mxu3 %v4271_v42  ;;  %v4512_v53 = vpop.f32.mrf.mxu0  ;;  %v7019_v1 = vsel %vm4522_vm2, 4294967295, %v7018_v1 }
 0x173   : > { %7017 = vst [vmem:[#allocation97_spill] sm:$0xff] %v4512_v53  ;;  %1277 = vmatpush.msrb.mxu3 %v1072_v48  ;;  %v877_v48 = vsel %vm4522_vm2, %v4142_v38, 0.0 }
 0x174   : > { %7020 = vst [vmem:[#allocation98_spill] sm:$0xff] %v7019_v1 }
 0x175   : > { %1278 = vmatpush.msrb.mxu3 %v1071_v27  ;;  %v950_v27 = vrot.slane %v877_v48, 1  ;;  %v951_v48 = vrot.slane %v4158_v50, 1 }
 0x176   : > { %v4488_v44 = vpop.f32.mrf.mxu1  ;;  %1432 = vmatmul.f32.gmra.mxu0 %v4371_v40  ;;  %1571 = vmatmul.f32.gmra.mxu2 %v4492_v39 }
 0x177   : > { %v4540_v43 = vpop.f32.mrf.mxu2  ;;  %v4550_v1 = vsel %vm7022_vm1, %v949_v8, %v950_v27 }
 0x179   : > { %1470 = vmatmul.f32.gmra.mxu1 %v3989_v15 }
 0x17a   : > { %1245 = vmatmul.f32.gmra.mxu3 %v4313_v31  ;;  %v4537_v30 = vpop.f32.mrf.mxu0 }
 0x17b   : > { %7023 = vst [vmem:[#allocation100_spill] sm:$0xff] %v4537_v30 }
 0x17e   : > { %v4506_v40 = vpop.f32.mrf.mxu1  ;;  %1435 = vmatmul.f32.gmra.mxu0 %v4399_v29  ;;  %1574 = vmatmul.f32.gmra.mxu2 %v4510_v17  ;;  %v1070_v29 = vld [vmem:[#allocation2 + $0x280] sm:$0xff] }
 0x17f   : > { %1279 = vmatpush.msrb.mxu3 %v1070_v29  ;;  %v4564_v8 = vpop.f32.mrf.mxu2 }
 0x180   : > { %7030 = vst [vmem:[#allocation105_spill] sm:$0xff] %v4564_v8 }
 0x181   : > { %1473 = vmatmul.f32.gmra.mxu1 %v4010_v37  ;;  %1669 = vmatpush.msra.mxu3 %v1636_v32  ;;  %v1668_v32 = vld [vmem:[#allocation2 + $0x478] sm:$0xff] }
 0x182   : > { %1248 = vmatmul.f32.gmra.mxu3 %v4350_v14  ;;  %v4557_v30 = vpop.f32.mrf.mxu0  ;;  %1847 = vmatpush.msra.mxu1 %v1668_v32 }
 0x183   : > { %7026 = vst [vmem:[#allocation103_spill] sm:$0xff] %v4557_v30  ;;  %v4580_v30 = vadd.s32 112, %v3980_v13 }
 0x185   : > { %7032 = vst [vmem:[#allocation107_spill] sm:$0xff] %v4580_v30 }
 0x186   : > { %v4526_v53 = vpop.f32.mrf.mxu1  ;;  %1438 = vmatmul.f32.gmra.mxu0 %v4424_v47  ;;  %1577 = vmatmul.f32.gmra.mxu2 %v4530_v22  ;;  %v4544_v47 = vadd.s32 96, %v3980_v13 }
 0x187   : > { %7021 = vst [vmem:[#allocation99_spill] sm:$0xff] %v4526_v53 }
 0x188   : > { %7024 = vst [vmem:[#allocation101_spill] sm:$0xff] %v4544_v47  ;;  %v564_v29 = vand.u32 15, %v4544_v47  ;;  %v1635_v47 = vld [vmem:[#allocation2 + $0x370] sm:$0xff] }
 0x189   : > { %1476 = vmatmul.f32.gmra.mxu1 %v4041_v26  ;;  %1670 = vmatpush.msra.mxu3 %v1635_v47  ;;  %v1667_v47 = vld [vmem:[#allocation2 + $0x470] sm:$0xff] }
 0x18a   : > { %1251 = vmatmul.f32.gmra.mxu3 %v4375_v41  ;;  %vm4560_vm13 = vcmp.ne.s32.totalorder %v564_v29, 0  ;;  %1848 = vmatpush.msra.mxu1 %v1667_v47 }
 0x18b   : > { %v7028_v6 = vsel %vm4560_vm13, 4294967295, %v7027_v6  ;;  %v879_v29 = vsel %vm4560_vm13, %v4172_v9, 0.0 }
 0x18c   : > { %7029 = vst [vmem:[#allocation104_spill] sm:$0xff] %v7028_v6  ;;  %v952_v32 = vrot.slane %v879_v29, 1  ;;  %v4590_v6 = vpop.f32.mrf.mxu2  ;;  %v566_v29 = vand.u32 15, %v4580_v30 }
 0x18d   : > { %7035 = vst [vmem:[#allocation110_spill] sm:$0xff] %v4590_v6 }
 0x18e   : > { %v4546_v28 = vpop.f32.mrf.mxu1  ;;  %1580 = vmatmul.f32.gmra.mxu2 %v4550_v1  ;;  %1774 = vmatmul.f32.vlgmr.msra.gmra.mxu0 %v3989_v15  ;;  %v4570_v15 = vsel %vm7022_vm1, %v950_v27, %v951_v48  ;;  %v4582_v27 = vpop.f32.mrf.mxu0  ;;  %vm4598_vm0 = vcmp.ne.s32.totalorder %v566_v29, 0 }
 0x18f   : > { %7025 = vst [vmem:[#allocation102_spill] sm:$0xff] %v4546_v28  ;;  %v881_v47 = vsel %vm4598_vm0, %v4202_v60, 0.0  ;;  %v1630_v28 = vld [vmem:[#allocation2 + $0x348] sm:$0xff] }
 0x190   : > { %7033 = vst [vmem:[#allocation108_spill] sm:$0xff] %v4582_v27  ;;  %v953_v27 = vrot.slane %v4188_v45, 1 }
 0x191   : > { %1479 = vmatmul.f32.gmra.mxu1 %v4068_v51 }
 0x192   : > { %1254 = vmatmul.f32.gmra.mxu3 %v3996_v16 }
 0x194   : > { %v4615_v29 = vpop.f32.mrf.mxu2 }
 0x195   : > { %7041 = vst [vmem:[#allocation114_spill] sm:$0xff] %v4615_v29 }
 0x196   : > { %v4566_v63 = vpop.f32.mrf.mxu1  ;;  %1583 = vmatmul.f32.gmra.mxu2 %v4570_v15  ;;  %1777 = vmatmul.f32.gmra.mxu0 %v4010_v37  ;;  %v4588_v37 = vsel %vm7022_vm1, %v951_v48, %v952_v32  ;;  %v7036_v48 = vmov 0  ;;  %v4608_v30 = vpop.f32.mrf.mxu0 }
 0x197   : > { %7031 = vst [vmem:[#allocation106_spill] sm:$0xff] %v4566_v63  ;;  %v7037_v48 = vsel %vm4598_vm0, 4294967295, %v7036_v48  ;;  %vm7050_vm0 = vcmp.lt.s32.totalorder %v3980_v13, 7 }
 0x198   : > { %7038 = vst [vmem:[#allocation111_spill] sm:$0xff] %v7037_v48  ;;  %v1633_v48 = vld [vmem:[#allocation2 + $0x360] sm:$0xff] }
 0x199   : > { %1482 = vmatmul.f32.gmra.mxu1 %v4082_v55  ;;  %7040 = vst [vmem:[#allocation113_spill] sm:$0xff] %v4608_v30 }
 0x19a   : > { %1257 = vmatmul.f32.gmra.mxu3 %v4006_v35 }
 0x19c   : > { %v4635_v29 = vpop.f32.mrf.mxu2 }
 0x19d   : > { %7045 = vst [vmem:[#allocation118_spill] sm:$0xff] %v4635_v29 }
 0x19e   : > { %v4584_v63 = vpop.f32.mrf.mxu1  ;;  %1586 = vmatmul.f32.gmra.mxu2 %v4588_v37  ;;  %1780 = vmatmul.f32.gmra.mxu0 %v4041_v26  ;;  %v4606_v26 = vsel %vm7022_vm1, %v952_v32, %v953_v27  ;;  %v4620_v32 = vadd.s32 128, %v3980_v13 }
 0x19f   : > { %7034 = vst [vmem:[#allocation109_spill] sm:$0xff] %v4584_v63  ;;  %v1634_v63 = vld [vmem:[#allocation2 + $0x368] sm:$0xff] }
 0x1a0   : > { %1671 = vmatpush.msra.mxu3 %v1634_v63  ;;  %v954_v63 = vrot.slane %v881_v47, 1  ;;  %7042 = vst [vmem:[#allocation115_spill] sm:$0xff] %v4620_v32  ;;  %v568_v47 = vand.u32 15, %v4620_v32  ;;  %v1665_v32 = vld [vmem:[#allocation2 + $0x460] sm:$0xff] }
 0x1a1   : > { %1485 = vmatmul.f32.gmra.mxu1 %v4098_v61 }
 0x1a2   : > { %1260 = vmatmul.f32.gmra.mxu3 %v4032_v25 }
 0x1a3   : > { %1672 = vmatpush.msra.mxu3 %v1633_v48 }
 0x1a6   : > { %v4602_v6 = vpop.f32.mrf.mxu1  ;;  %1589 = vmatmul.f32.gmra.mxu2 %v4606_v26  ;;  %1783 = vmatmul.f32.gmra.mxu0 %v4068_v51  ;;  %v4626_v51 = vsel %vm7022_vm1, %v953_v27, %v954_v63  ;;  %vm4638_vm1 = vcmp.ne.s32.totalorder %v568_v47, 0  ;;  %v7046_v27 = vmov 0 }
 0x1a7   : > { %7039 = vst [vmem:[#allocation112_spill] sm:$0xff] %v4602_v6  ;;  %v1666_v6 = vld [vmem:[#allocation2 + $0x468] sm:$0xff]  ;;  %v7047_v27 = vsel %vm4638_vm1, 4294967295, %v7046_v27  ;;  %v883_v48 = vsel %vm4638_vm1, %v4239_v34, 0.0 }
 0x1a8   : > { %1849 = vmatpush.msra.mxu1 %v1666_v6  ;;  %v955_v6 = vrot.slane %v4218_v24, 1  ;;  %7048 = vst [vmem:[#allocation119_spill] sm:$0xff] %v7047_v27  ;;  %v956_v47 = vrot.slane %v883_v48, 1 }
 0x1a9   : > { %1488 = vmatmul.f32.gmra.mxu1 %v4112_v3 }
 0x1aa   : > { %1280 = vmatmul.f32.vlgmr.msrb.gmra.mxu3 %v4354_v46  ;;  %v4631_v46 = vpop.f32.mrf.mxu0  ;;  %1850 = vmatpush.msra.mxu1 %v1665_v32  ;;  %v4668_v32 = vsel %vm7050_vm0, %v955_v6, %v956_v47 }
 0x1ab   : > { %7044 = vst [vmem:[#allocation117_spill] sm:$0xff] %v4631_v46 }
 0x1ae   : > { %v4622_v30 = vpop.f32.mrf.mxu1  ;;  %1592 = vmatmul.f32.gmra.mxu2 %v4626_v51  ;;  %1786 = vmatmul.f32.gmra.mxu0 %v4082_v55  ;;  %v4646_v55 = vsel %vm7050_vm0, %v954_v63, %v955_v6  ;;  %v4658_v63 = vadd.s32 144, %v3980_v13 }
 0x1af   : > { %7043 = vst [vmem:[#allocation116_spill] sm:$0xff] %v4622_v30 }
 0x1b0   : > { %7052 = vst [vmem:[#allocation122_spill] sm:$0xff] %v4658_v63  ;;  %v570_v48 = vand.u32 15, %v4658_v63 }
 0x1b1   : > { %1491 = vmatmul.f32.gmra.mxu1 %v4128_v11 }
 0x1b2   : > { %1283 = vmatmul.f32.gmra.mxu3 %v4384_v23  ;;  %v4654_v46 = vpop.f32.mrf.mxu0  ;;  %v1632_v23 = vld [vmem:[#allocation2 + $0x358] sm:$0xff]  ;;  %vm4676_vm1 = vcmp.ne.s32.totalorder %v570_v48, 0  ;;  %v1631_v48 = vld [vmem:[#allocation2 + $0x350] sm:$0xff] }
 0x1b3   : > { %7051 = vst [vmem:[#allocation121_spill] sm:$0xff] %v4654_v46  ;;  %1673 = vmatpush.msra.mxu3 %v1632_v23  ;;  %v957_v23 = vrot.slane %v4271_v42, 1  ;;  %v1664_v46 = vld [vmem:[#allocation2 + $0x458] sm:$0xff] }
 0x1b4   : > { %1851 = vmatpush.msra.mxu1 %v1664_v46  ;;  %v885_v46 = vsel %vm4676_vm1, %v4313_v31, 0.0 }
 0x1b5   : > { %1674 = vmatpush.msra.mxu3 %v1631_v48 }
 0x1b6   : > { %v4642_v30 = vpop.f32.mrf.mxu1  ;;  %1595 = vmatmul.f32.gmra.mxu2 %v4646_v55  ;;  %1789 = vmatmul.f32.gmra.mxu0 %v4098_v61 }
 0x1b7   : > { %7049 = vst [vmem:[#allocation120_spill] sm:$0xff] %v4642_v30  ;;  %v4660_v30 = vpop.f32.mrf.mxu2  ;;  %1675 = vmatpush.msra.mxu3 %v1630_v28 }
 0x1b8   : > { %7053 = vst [vmem:[#allocation123_spill] sm:$0xff] %v4660_v30 }
 0x1b9   : > { %1494 = vmatmul.f32.gmra.mxu1 %v4142_v38 }
 0x1ba   : > { %1286 = vmatmul.f32.gmra.mxu3 %v4411_v33  ;;  %v4680_v6 = vpop.f32.mrf.mxu0 }
 0x1bb   : > { %7058 = vst [vmem:[#allocation126_spill] sm:$0xff] %v4680_v6  ;;  %v958_v6 = vrot.slane %v885_v46, 1  ;;  %v1663_v46 = vld [vmem:[#allocation2 + $0x450] sm:$0xff] }
 0x1bc   : > { %1852 = vmatpush.msra.mxu1 %v1663_v46  ;;  %v7066_v46 = vmov 0 }
 0x1bd   : > { %v4664_v27 = vpop.f32.mrf.mxu3 }
 0x1be   : > { %v4662_v61 = vpop.f32.mrf.mxu1  ;;  %1598 = vmatmul.f32.gmra.mxu2 %v4668_v32  ;;  %1792 = vmatmul.f32.gmra.mxu0 %v4112_v3  ;;  %v4688_v3 = vsel %vm7050_vm0, %v956_v47, %v957_v23 }
 0x1bf   : > { %7054 = vst [vmem:[#allocation124_spill] sm:$0xff] %v4662_v61  ;;  %v7055_v61 = vmov 0  ;;  %v4690_v63 = vpop.f32.mrf.mxu2 }
 0x1c0   : > { %v7056_v61 = vsel %vm4676_vm1, 4294967295, %v7055_v61  ;;  %7060 = vst [vmem:[#allocation128_spill] sm:$0xff] %v4690_v63  ;;  %v4705_v63 = vsel %vm7050_vm0, %v957_v23, %v958_v6 }
 0x1c1   : > { %1497 = vmatmul.f32.gmra.mxu1 %v4158_v50  ;;  %7057 = vst [vmem:[#allocation125_spill] sm:$0xff] %v7056_v61 }
 0x1c2   : > { %1289 = vmatmul.f32.gmra.mxu3 %v4434_v54  ;;  %v4710_v61 = vpop.f32.mrf.mxu0 }
 0x1c3   : > { %7063 = vst [vmem:[#allocation131_spill] sm:$0xff] %v4710_v61 }
 0x1c5   : > { %v4684_v29 = vpop.f32.mrf.mxu3 }
 0x1c6   : > { %v4682_v30 = vpop.f32.mrf.mxu1  ;;  %1601 = vmatmul.f32.gmra.mxu2 %v4688_v3  ;;  %1795 = vmatmul.f32.gmra.mxu0 %v4128_v11  ;;  %v4708_v11 = vadd.s32 160, %v3980_v13 }
 0x1c7   : > { %7059 = vst [vmem:[#allocation127_spill] sm:$0xff] %v4682_v30  ;;  %v4714_v48 = vpop.f32.mrf.mxu2 }
 0x1c8   : > { %7062 = vst [vmem:[#allocation130_spill] sm:$0xff] %v4708_v11  ;;  %v572_v23 = vand.u32 15, %v4708_v11 }
 0x1c9   : > { %1500 = vmatmul.f32.gmra.mxu1 %v4172_v9  ;;  %7064 = vst [vmem:[#allocation132_spill] sm:$0xff] %v4714_v48 }
 0x1ca   : > { %1292 = vmatmul.f32.gmra.mxu3 %v4454_v10  ;;  %vm4728_vm1 = vcmp.ne.s32.totalorder %v572_v23, 0  ;;  %v4734_v11 = vpop.f32.mrf.mxu0 }
 0x1cb   : > { %v7067_v46 = vsel %vm4728_vm1, 4294967295, %v7066_v46  ;;  %7069 = vst [vmem:[#allocation135_spill] sm:$0xff] %v4734_v11  ;;  %v887_v28 = vsel %vm4728_vm1, %v4375_v41, 0.0  ;;  %v961_v11 = vrot.slane %v3996_v16, 1 }
 0x1cc   : > { %7068 = vst [vmem:[#allocation134_spill] sm:$0xff] %v7067_v46  ;;  %v960_v23 = vrot.slane %v887_v28, 1  ;;  %v1629_v46 = vld [vmem:[#allocation2 + $0x340] sm:$0xff] }
 0x1cd   : > { %v4701_v47 = vpop.f32.mrf.mxu3  ;;  %1676 = vmatpush.msra.mxu3 %v1629_v46  ;;  %v1661_v46 = vld [vmem:[#allocation2 + $0x440] sm:$0xff] }
 0x1ce   : > { %v4699_v30 = vpop.f32.mrf.mxu1  ;;  %1604 = vmatmul.f32.gmra.mxu2 %v4705_v63  ;;  %1798 = vmatmul.f32.gmra.mxu0 %v4142_v38 }
 0x1cf   : > { %7061 = vst [vmem:[#allocation129_spill] sm:$0xff] %v4699_v30  ;;  %v959_v30 = vrot.slane %v4350_v14, 1 }
 0x1d1   : > { %1503 = vmatmul.f32.gmra.mxu1 %v4188_v45  ;;  %v4726_v38 = vsel %vm7050_vm0, %v958_v6, %v959_v30  ;;  %v1662_v6 = vld [vmem:[#allocation2 + $0x448] sm:$0xff] }
 0x1d2   : > { %1295 = vmatmul.f32.gmra.mxu3 %v4474_v7  ;;  %1853 = vmatpush.msra.mxu1 %v1662_v6  ;;  %v4755_v28 = vpop.f32.mrf.mxu0 }
 0x1d3   : > { %7072 = vst [vmem:[#allocation138_spill] sm:$0xff] %v4755_v28  ;;  %v1628_v28 = vld [vmem:[#allocation2 + $0x338] sm:$0xff] }
 0x1d4   : > { %1854 = vmatpush.msra.mxu1 %v1661_v46  ;;  %1677 = vmatpush.msra.mxu3 %v1628_v28  ;;  %v1658_v46 = vld [vmem:[#allocation2 + $0x428] sm:$0xff] }
 0x1d5   : > { %v4720_v57 = vpop.f32.mrf.mxu3 }
 0x1d6   : > { %v4722_v61 = vpop.f32.mrf.mxu1  ;;  %1607 = vmatmul.f32.gmra.mxu2 %v4726_v38  ;;  %1801 = vmatmul.f32.gmra.mxu0 %v4158_v50  ;;  %v4749_v50 = vsel %vm7050_vm0, %v959_v30, %v960_v23 }
 0x1d7   : > { %7065 = vst [vmem:[#allocation133_spill] sm:$0xff] %v4722_v61  ;;  %v4740_v61 = vpop.f32.mrf.mxu2 }
 0x1d8   : > { %7070 = vst [vmem:[#allocation136_spill] sm:$0xff] %v4740_v61  ;;  %v4766_v61 = vsel %vm7050_vm0, %v960_v23, %v961_v11 }
 0x1d9   : > { %1506 = vmatmul.f32.gmra.mxu1 %v4202_v60 }
 0x1da   : > { %1298 = vmatmul.f32.gmra.mxu3 %v4492_v39 }
 0x1dd   : > { %v4743_v48 = vpop.f32.mrf.mxu3 }
 0x1de   : > { %v4745_v8 = vpop.f32.mrf.mxu1  ;;  %1610 = vmatmul.f32.gmra.mxu2 %v4749_v50  ;;  %1804 = vmatmul.f32.gmra.mxu0 %v4172_v9  ;;  %v1660_v9 = vld [vmem:[#allocation2 + $0x438] sm:$0xff] }
 0x1df   : > { %7071 = vst [vmem:[#allocation137_spill] sm:$0xff] %v4745_v8  ;;  %v4758_v6 = vpop.f32.mrf.mxu2  ;;  %1855 = vmatpush.msra.mxu1 %v1660_v9  ;;  %v1657_v9 = vld [vmem:[#allocation2 + $0x420] sm:$0xff] }
 0x1e0   : > { %7073 = vst [vmem:[#allocation139_spill] sm:$0xff] %v4758_v6  ;;  %v1659_v6 = vld [vmem:[#allocation2 + $0x430] sm:$0xff] }
 0x1e1   : > { %1509 = vmatmul.f32.gmra.mxu1 %v4218_v24 }
 0x1e2   : > { %1301 = vmatmul.f32.gmra.mxu3 %v4510_v17  ;;  %1856 = vmatpush.msra.mxu1 %v1659_v6  ;;  %v1656_v6 = vld [vmem:[#allocation2 + $0x418] sm:$0xff] }
 0x1e4   : > { %1857 = vmatpush.msra.mxu1 %v1658_v46  ;;  %v1653_v46 = vld [vmem:[#allocation2 + $0x400] sm:$0xff] }
 0x1e5   : > { %v4760_v8 = vpop.f32.mrf.mxu3 }
 0x1e6   : > { %v4762_v30 = vpop.f32.mrf.mxu1  ;;  %1613 = vmatmul.f32.gmra.mxu2 %v4766_v61  ;;  %1807 = vmatmul.f32.gmra.mxu0 %v4188_v45  ;;  %v4779_v45 = vsel %vm7050_vm0, %v961_v11, %v4264_v36  ;;  %v1655_v11 = vld [vmem:[#allocation2 + $0x410] sm:$0xff] }
 0x1e7   : > { %7074 = vst [vmem:[#allocation140_spill] sm:$0xff] %v4762_v30  ;;  %v4772_v30 = vpop.f32.mrf.mxu0  ;;  %v4781_v53 = vpop.f32.mrf.mxu2  ;;  %1858 = vmatpush.msra.mxu1 %v1657_v9 }
 0x1e8   : > { %7075 = vst [vmem:[#allocation141_spill] sm:$0xff] %v4772_v30  ;;  %v1654_v30 = vld [vmem:[#allocation2 + $0x408] sm:$0xff] }
 0x1e9   : > { %1512 = vmatmul.f32.gmra.mxu1 %v4239_v34  ;;  %7076 = vst [vmem:[#allocation142_spill] sm:$0xff] %v4781_v53 }
 0x1ea   : > { %1304 = vmatmul.f32.gmra.mxu3 %v4530_v22  ;;  %1859 = vmatpush.msra.mxu1 %v1656_v6 }
 0x1ec   : > { %1860 = vmatpush.msra.mxu1 %v1655_v11 }
 0x1ed   : > { %v4774_v23 = vpop.f32.mrf.mxu3 }
 0x1ee   : > { %1616 = vmatmul.f32.gmra.mxu2 %v4779_v45  ;;  %1810 = vmatmul.f32.gmra.mxu0 %v4202_v60  ;;  %v4785_v28 = vpop.f32.mrf.mxu1  ;;  %v1627_v60 = vld [vmem:[#allocation2 + $0x330] sm:$0xff] }
 0x1ef   : > { %v4789_v13 = vpop.f32.mrf.mxu0  ;;  %1861 = vmatpush.msra.mxu1 %v1654_v30  ;;  %1678 = vmatpush.msra.mxu3 %v1627_v60  ;;  %v1626_v60 = vld [vmem:[#allocation2 + $0x328] sm:$0xff] }
 0x1f0   : > { %7077 = vst [vmem:[#allocation143_spill] sm:$0xff] %v4789_v13  ;;  %v7152_v13 = vld [vmem:[#allocation82_spill] sm:$0xff] }
 0x1f1   : > { %1515 = vmatmul.f32.gmra.mxu1 %v4271_v42  ;;  %1679 = vmatpush.msra.mxu3 %v1626_v60 }
 0x1f2   : > { %1307 = vmatmul.f32.gmra.mxu3 %v4550_v1  ;;  %1862 = vmatpush.msra.mxu1 %v1653_v46 }
 0x1f5   : > { %v1243_v36 = vpop.f32.mrf.mxu3 }
 0x1f6   : > { %v4792_v53 = vadd.f32 %v1243_v36, %v4664_v27  ;;  %1813 = vmatmul.f32.gmra.mxu0 %v4218_v24  ;;  %v4796_v9 = vpop.f32.mrf.mxu1 }
 0x1f7   : > { %v4803_v27 = vpop.f32.mrf.mxu0 }
 0x1f8   : > { %7078 = vst [vmem:[#allocation144_spill] sm:$0xff] %v4803_v27 }
 0x1f9   : > { %1518 = vmatmul.f32.gmra.mxu1 %v4313_v31 }
 0x1fa   : > { %1310 = vmatmul.f32.gmra.mxu3 %v4570_v15 }
 0x1fd   : > { %v1246_v6 = vpop.f32.mrf.mxu3 }
 0x1fe   : > { %v4800_v11 = vadd.f32 %v1246_v6, %v4684_v29  ;;  %1816 = vmatmul.f32.gmra.mxu0 %v4239_v34  ;;  %v4807_v30 = vpop.f32.mrf.mxu1 }
 0x1ff   : > { %v4814_v29 = vpop.f32.mrf.mxu0 }
 0x200   : > { %7079 = vst [vmem:[#allocation145_spill] sm:$0xff] %v4814_v29 }
 0x201   : > { %1521 = vmatmul.f32.gmra.mxu1 %v4350_v14 }
 0x202   : > { %1313 = vmatmul.f32.gmra.mxu3 %v4588_v37 }
 0x205   : > { %v1249_v36 = vpop.f32.mrf.mxu3 }
 0x206   : > { %v4810_v46 = vadd.f32 %v1249_v36, %v4701_v47  ;;  %1819 = vmatmul.f32.gmra.mxu0 %v4271_v42  ;;  %v4817_v6 = vpop.f32.mrf.mxu1  ;;  %v1625_v47 = vld [vmem:[#allocation2 + $0x320] sm:$0xff] }
 0x207   : > { %1680 = vmatpush.msra.mxu3 %v1625_v47  ;;  %v4825_v60 = vpop.f32.mrf.mxu0 }
 0x208   : > { %7080 = vst [vmem:[#allocation146_spill] sm:$0xff] %v4825_v60 }
 0x209   : > { %1524 = vmatmul.f32.gmra.mxu1 %v4375_v41 }
 0x20a   : > { %1316 = vmatmul.f32.gmra.mxu3 %v4606_v26 }
 0x20d   : > { %v1252_v34 = vpop.f32.mrf.mxu3 }
 0x20e   : > { %v4820_v24 = vadd.f32 %v1252_v34, %v4720_v57  ;;  %1822 = vmatmul.f32.gmra.mxu0 %v4313_v31  ;;  %v4831_v29 = vpop.f32.mrf.mxu1  ;;  %v1624_v34 = vld [vmem:[#allocation2 + $0x318] sm:$0xff] }
 0x20f   : > { %1681 = vmatpush.msra.mxu3 %v1624_v34  ;;  %v4835_v31 = vpop.f32.mrf.mxu0 }
 0x210   : > { %7081 = vst [vmem:[#allocation147_spill] sm:$0xff] %v4835_v31  ;;  %v7140_v31 = vld [vmem:[#allocation81_spill] sm:$0xff] }
 0x211   : > { %1527 = vmatmul.f32.gmra.mxu1 %v3996_v16 }
 0x212   : > { %1319 = vmatmul.f32.gmra.mxu3 %v4626_v51 }
 0x215   : > { %v1255_v36 = vpop.f32.mrf.mxu3 }
 0x216   : > { %v4828_v42 = vadd.f32 %v1255_v36, %v4743_v48  ;;  %1825 = vmatmul.f32.gmra.mxu0 %v4350_v14  ;;  %v4842_v48 = vpop.f32.mrf.mxu1 }
 0x217   : > { %v4849_v34 = vpop.f32.mrf.mxu0 }
 0x218   : > { %7082 = vst [vmem:[#allocation148_spill] sm:$0xff] %v4849_v34 }
 0x219   : > { %1863 = vmatmul.f32.vlgmr.msra.gmra.mxu1 %v4411_v33 }
 0x21a   : > { %1322 = vmatmul.f32.gmra.mxu3 %v4646_v55 }
 0x21d   : > { %v1258_v57 = vpop.f32.mrf.mxu3 }
 0x21e   : > { %v4838_v47 = vadd.f32 %v1258_v57, %v4760_v8  ;;  %1828 = vmatmul.f32.gmra.mxu0 %v4375_v41  ;;  %v1623_v8 = vld [vmem:[#allocation2 + $0x310] sm:$0xff]  ;;  %v4853_v41 = vpop.f32.mrf.mxu1 }
 0x21f   : > { %1682 = vmatpush.msra.mxu3 %v1623_v8 }
 0x221   : > { %1866 = vmatmul.f32.gmra.mxu1 %v4434_v54  ;;  %v1193_v54 = vadd.f32 %v4386_v20, %v4380_v52 }
 0x222   : > { %1325 = vmatmul.f32.gmra.mxu3 %v4668_v32 }
 0x225   : > { %v1261_v36 = vpop.f32.mrf.mxu3 }
 0x226   : > { %v4846_v33 = vadd.f32 %v1261_v36, %v4774_v23  ;;  %1831 = vmatmul.f32.gmra.mxu0 %v3996_v16  ;;  %v4861_v16 = vpop.f32.mrf.mxu0  ;;  %v1196_v23 = vadd.f32 %v4418_v0, %v4407_v59  ;;  %v4866_v36 = vpop.f32.mrf.mxu1  ;;  %v1202_v0 = vadd.f32 %v4468_v49, %v4450_v56 }
 0x227   : > { %7083 = vst [vmem:[#allocation149_spill] sm:$0xff] %v4861_v16 }
 0x229   : > { %1869 = vmatmul.f32.gmra.mxu1 %v4454_v10  ;;  %v1622_v10 = vld [vmem:[#allocation2 + $0x308] sm:$0xff] }
 0x22a   : > { %1328 = vmatmul.f32.gmra.mxu3 %v4688_v3 }
 0x22b   : > { %1683 = vmatpush.msra.mxu3 %v1622_v10 }
 0x22d   : > { %v1281_v57 = vpop.f32.mrf.mxu3 }
 0x22e   : > { %v4857_v14 = vadd.f32 %v1281_v57, %v1193_v54  ;;  %1834 = vmatmul.f32.gmra.mxu0 %v4006_v35  ;;  %v1199_v35 = vadd.f32 %v4443_v62, %v4430_v2  ;;  %v4875_v20 = vpop.f32.mrf.mxu0  ;;  %v4880_v59 = vpop.f32.mrf.mxu1 }
 0x22f   : > { %7084 = vst [vmem:[#allocation150_spill] sm:$0xff] %v4875_v20 }
 0x231   : > { %1872 = vmatmul.f32.gmra.mxu1 %v4474_v7 }
 0x232   : > { %1331 = vmatmul.f32.gmra.mxu3 %v4705_v63 }
 0x235   : > { %v1284_v8 = vpop.f32.mrf.mxu3 }
 0x236   : > { %v4868_v52 = vadd.f32 %v1284_v8, %v1196_v23  ;;  %1837 = vmatmul.f32.gmra.mxu0 %v4032_v25  ;;  %v1621_v25 = vld [vmem:[#allocation2 + $0x300] sm:$0xff]  ;;  %v4886_v2 = vpop.f32.mrf.mxu0 }
 0x237   : > { %1684 = vmatpush.msra.mxu3 %v1621_v25  ;;  %7085 = vst [vmem:[#allocation151_spill] sm:$0xff] %v4886_v2  ;;  %v7093_v25 = vld [vmem:[#allocation110_spill] sm:$0xff] }
 0x239   : > { %1875 = vmatmul.f32.gmra.mxu1 %v4492_v39 }
 0x23a   : > { %1334 = vmatmul.f32.gmra.mxu3 %v4726_v38 }
 0x23d   : > { %v1287_v7 = vpop.f32.mrf.mxu3 }
 0x23e   : > { %v4877_v54 = vadd.f32 %v1287_v7, %v1199_v35  ;;  %1840 = vmatmul.f32.gmra.mxu0 %v3967_v4  ;;  %v4892_v4 = vpop.f32.mrf.mxu1 }
 0x241   : > { %1878 = vmatmul.f32.gmra.mxu1 %v4510_v17  ;;  %v1205_v17 = vadd.f32 %v4494_v21, %v4470_v18  ;;  %v1211_v18 = vadd.f32 %v4540_v43, %v4506_v40  ;;  %v7091_v43 = vld [vmem:[#allocation31_spill] sm:$0xff]  ;;  %v7092_v40 = vld [vmem:[#allocation102_spill] sm:$0xff] }
 0x242   : > { %1337 = vmatmul.f32.gmra.mxu3 %v4749_v50 }
 0x245   : > { %v1290_v39 = vpop.f32.mrf.mxu3 }
 0x246   : > { %v4888_v62 = vadd.f32 %v1290_v39, %v1202_v0  ;;  %1843 = vmatmul.f32.gmra.mxu0 %v3975_v12  ;;  %v4901_v49 = vpop.f32.mrf.mxu1  ;;  %v1208_v12 = vadd.f32 %v4517_v58, %v4488_v44  ;;  %v7088_v44 = vld [vmem:[#allocation99_spill] sm:$0xff]  ;;  %v7089_v58 = vld [vmem:[#allocation105_spill] sm:$0xff]  ;;  %v1217_v0 = vadd.f32 %v7093_v25, %v7092_v40  ;;  %v7102_v25 = vld [vmem:[#allocation40_spill] sm:$0xff] }
 0x247   : > { %7086 = vst [vmem:[#allocation152_spill] sm:$0xff] %v4901_v49  ;;  %v1214_v8 = vadd.f32 %v7089_v58, %v7088_v44 }
 0x249   : > { %1881 = vmatmul.f32.gmra.mxu1 %v4530_v22 }
 0x24a   : > { %1340 = vmatmul.f32.gmra.mxu3 %v4766_v61 }
 0x24d   : > { %v1293_v57 = vpop.f32.mrf.mxu3 }
 0x24e   : > { %v4897_v10 = vadd.f32 %v1293_v57, %v1205_v17  ;;  %v4911_v21 = vpop.f32.mrf.mxu1  ;;  %v7095_v57 = vld [vmem:[#allocation34_spill] sm:$0xff] }
 0x24f   : > { %7087 = vst [vmem:[#allocation153_spill] sm:$0xff] %v4911_v21  ;;  %v7169_v21 = vld [vmem:[#allocation97_spill] sm:$0xff] }
 0x251   : > { %1884 = vmatmul.f32.gmra.mxu1 %v4550_v1 }
 0x252   : > { %1343 = vmatmul.f32.gmra.mxu3 %v4779_v45 }
 0x255   : > { %v1296_v56 = vpop.f32.mrf.mxu3 }
 0x256   : > { %v4905_v22 = vadd.f32 %v1296_v56, %v1208_v12  ;;  %v7096_v12 = vld [vmem:[#allocation106_spill] sm:$0xff] }
 0x257   : > { %v7097_v56 = vld [vmem:[#allocation114_spill] sm:$0xff] }
 0x259   : > { %1887 = vmatmul.f32.gmra.mxu1 %v4570_v15  ;;  %v4921_v15 = vpop.f32.mrf.mxu1 }
 0x25a   : > { %1346 = vmatmul.f32.gmra.mxu3 %v4277_v19  ;;  %7090 = vst [vmem:[#allocation99_spill] sm:$0xff] %v4921_v15  ;;  %v7151_v15 = vld [vmem:[#allocation19_spill] sm:$0xff] }
 0x25d   : > { %v1299_v1 = vpop.f32.mrf.mxu3 }
 0x25e   : > { %v4913_v23 = vadd.f32 %v1299_v1, %v1211_v18  ;;  %v1220_v18 = vadd.f32 %v7097_v56, %v7096_v12 }
 0x261   : > { %1890 = vmatmul.f32.gmra.mxu1 %v4588_v37  ;;  %v4930_v37 = vpop.f32.mrf.mxu1 }
 0x262   : > { %1349 = vmatmul.f32.gmra.mxu3 %v4317_v5  ;;  %7094 = vst [vmem:[#allocation105_spill] sm:$0xff] %v4930_v37 }
 0x265   : > { %v1302_v35 = vpop.f32.mrf.mxu3 }
 0x266   : > { %v4919_v7 = vadd.f32 %v1302_v35, %v1214_v8  ;;  %v7100_v8 = vld [vmem:[#allocation109_spill] sm:$0xff]  ;;  %v7101_v35 = vld [vmem:[#allocation118_spill] sm:$0xff] }
 0x269   : > { %1893 = vmatmul.f32.gmra.mxu1 %v4606_v26  ;;  %v7098_v26 = vld [vmem:[#allocation37_spill] sm:$0xff]  ;;  %v4939_v58 = vpop.f32.mrf.mxu1 }
 0x26a   : > { %1685 = vmatmul.f32.vlgmr.msra.gmra.mxu3 %v7091_v43  ;;  %7099 = vst [vmem:[#allocation31_spill] sm:$0xff] %v4939_v58  ;;  %v1223_v43 = vadd.f32 %v7101_v35, %v7100_v8 }
 0x26d   : > { %v1305_v39 = vpop.f32.mrf.mxu3 }
 0x26e   : > { %v4927_v17 = vadd.f32 %v1305_v39, %v1217_v0  ;;  %v7103_v0 = vld [vmem:[#allocation112_spill] sm:$0xff]  ;;  %v7104_v39 = vld [vmem:[#allocation123_spill] sm:$0xff] }
 0x271   : > { %1896 = vmatmul.f32.gmra.mxu1 %v4626_v51  ;;  %v4949_v12 = vpop.f32.mrf.mxu1 }
 0x272   : > { %1688 = vmatmul.f32.gmra.mxu3 %v7095_v57  ;;  %v1226_v57 = vadd.f32 %v7104_v39, %v7103_v0  ;;  %7105 = vst [vmem:[#allocation102_spill] sm:$0xff] %v4949_v12  ;;  %v7111_v0 = vld [vmem:[#allocation120_spill] sm:$0xff] }
 0x273   : > { %v7112_v39 = vld [vmem:[#allocation132_spill] sm:$0xff] }
 0x275   : > { %v1308_v1 = vpop.f32.mrf.mxu3 }
 0x276   : > { %v4935_v44 = vadd.f32 %v1308_v1, %v1220_v18  ;;  %v7106_v18 = vld [vmem:[#allocation43_spill] sm:$0xff]  ;;  %v7107_v1 = vld [vmem:[#allocation116_spill] sm:$0xff] }
 0x279   : > { %1899 = vmatmul.f32.gmra.mxu1 %v4646_v55 }
 0x27a   : > { %1691 = vmatmul.f32.gmra.mxu3 %v7098_v26  ;;  %v7108_v26 = vld [vmem:[#allocation128_spill] sm:$0xff] }
 0x27b   : > { %v1229_v8 = vadd.f32 %v7108_v26, %v7107_v1  ;;  %v7115_v1 = vld [vmem:[#allocation49_spill] sm:$0xff]  ;;  %v7116_v26 = vld [vmem:[#allocation124_spill] sm:$0xff] }
 0x27d   : > { %v1311_v51 = vpop.f32.mrf.mxu3 }
 0x27e   : > { %v4943_v40 = vadd.f32 %v1311_v51, %v1223_v43  ;;  %v7110_v51 = vld [vmem:[#allocation46_spill] sm:$0xff] }
 0x281   : > { %1902 = vmatmul.f32.gmra.mxu1 %v4668_v32  ;;  %v4959_v32 = vpop.f32.mrf.mxu1 }
 0x282   : > { %1694 = vmatmul.f32.gmra.mxu3 %v7102_v25  ;;  %7109 = vst [vmem:[#allocation110_spill] sm:$0xff] %v4959_v32  ;;  %v4963_v25 = vpop.f32.mrf.mxu0  ;;  %v2320_v32 = vld [vmem:[#allocation5 + $0x2d8] sm:$0xff] }
 0x285   : > { %v1314_v55 = vpop.f32.mrf.mxu3 }
 0x286   : > { %v4951_v56 = vadd.f32 %v1314_v55, %v1226_v57  ;;  %v1232_v57 = vadd.f32 %v7112_v39, %v7111_v0  ;;  %v7119_v0 = vld [vmem:[#allocation52_spill] sm:$0xff] }
 0x289   : > { %1905 = vmatmul.f32.gmra.mxu1 %v4688_v3 }
 0x28a   : > { %1697 = vmatmul.f32.gmra.mxu3 %v7106_v18  ;;  %v4970_v18 = vpop.f32.mrf.mxu1 }
 0x28b   : > { %7114 = vst [vmem:[#allocation106_spill] sm:$0xff] %v4970_v18 }
 0x28d   : > { %v1317_v35 = vpop.f32.mrf.mxu3 }
 0x28e   : > { %v4957_v43 = vadd.f32 %v1317_v35, %v1229_v8  ;;  %v7117_v8 = vld [vmem:[#allocation136_spill] sm:$0xff] }
 0x28f   : > { %v1235_v35 = vadd.f32 %v7117_v8, %v7116_v26  ;;  %v7124_v26 = vld [vmem:[#allocation55_spill] sm:$0xff]  ;;  %v7125_v8 = vld [vmem:[#allocation129_spill] sm:$0xff] }
 0x291   : > { %1908 = vmatmul.f32.gmra.mxu1 %v4705_v63  ;;  %v4975_v63 = vpop.f32.mrf.mxu0 }
 0x292   : > { %1700 = vmatmul.f32.gmra.mxu3 %v7110_v51  ;;  %v4981_v39 = vpop.f32.mrf.mxu1 }
 0x293   : > { %7120 = vst [vmem:[#allocation37_spill] sm:$0xff] %v4981_v39  ;;  %v2321_v39 = vld [vmem:[#allocation5 + $0x2e0] sm:$0xff] }
 0x295   : > { %v1320_v3 = vpop.f32.mrf.mxu3 }
 0x296   : > { %v4967_v55 = vadd.f32 %v1320_v3, %v1232_v57  ;;  %v7121_v57 = vld [vmem:[#allocation127_spill] sm:$0xff] }
 0x298   : > { %7113 = vst [vmem:[#allocation34_spill] sm:$0xff] %v4967_v55  ;;  %v7184_v55 = vld [vmem:[#allocation21_spill] sm:$0xff] }
 0x299   : > { %1911 = vmatmul.f32.gmra.mxu1 %v4726_v38  ;;  %v7122_v38 = vld [vmem:[#allocation139_spill] sm:$0xff] }
 0x29a   : > { %1703 = vmatmul.f32.gmra.mxu3 %v7115_v1  ;;  %v1238_v3 = vadd.f32 %v7122_v38, %v7121_v57  ;;  %v4987_v1 = vpop.f32.mrf.mxu0 }
 0x29d   : > { %v1323_v51 = vpop.f32.mrf.mxu3 }
 0x29e   : > { %v4977_v2 = vadd.f32 %v1323_v51, %v1235_v35  ;;  %v7126_v35 = vld [vmem:[#allocation142_spill] sm:$0xff] }
 0x29f   : > { %v1241_v51 = vadd.f32 %v7126_v35, %v7125_v8 }
 0x2a0   : > { %7118 = vst [vmem:[#allocation114_spill] sm:$0xff] %v4977_v2  ;;  %v1380_v2 = vadd.f32 %v7169_v21, %v4888_v62  ;;  %v7172_v21 = vld [vmem:[#allocation88_spill] sm:$0xff] }
 0x2a1   : > { %1914 = vmatmul.f32.gmra.mxu1 %v4749_v50  ;;  %v4993_v50 = vpop.f32.mrf.mxu1 }
 0x2a2   : > { %1706 = vmatmul.f32.gmra.mxu3 %v7119_v0  ;;  %7127 = vst [vmem:[#allocation118_spill] sm:$0xff] %v4993_v50  ;;  %v4998_v57 = vpop.f32.mrf.mxu0  ;;  %v7136_v50 = vld [vmem:[#allocation80_spill] sm:$0xff] }
 0x2a5   : > { %v1326_v20 = vpop.f32.mrf.mxu3 }
 0x2a6   : > { %v4985_v16 = vadd.f32 %v1326_v20, %v1238_v3  ;;  %v7129_v20 = vld [vmem:[#allocation59_spill] sm:$0xff] }
 0x2a8   : > { %7123 = vst [vmem:[#allocation109_spill] sm:$0xff] %v4985_v16  ;;  %v2298_v16 = vld [vmem:[#allocation5 + $0x228] sm:$0xff] }
 0x2a9   : > { %1917 = vmatmul.f32.gmra.mxu1 %v4766_v61  ;;  %v5004_v61 = vpop.f32.mrf.mxu1 }
 0x2aa   : > { %1709 = vmatmul.f32.gmra.mxu3 %v7124_v26  ;;  %7131 = vst [vmem:[#allocation123_spill] sm:$0xff] %v5004_v61  ;;  %v7132_v26 = vld [vmem:[#allocation64_spill] sm:$0xff]  ;;  %v5008_v8 = vpop.f32.mrf.mxu0  ;;  %v2323_v61 = vld [vmem:[#allocation5 + $0x2f0] sm:$0xff] }
 0x2ad   : > { %v1329_v0 = vpop.f32.mrf.mxu3 }
 0x2ae   : > { %v4995_v18 = vadd.f32 %v1329_v0, %v1241_v51 }
 0x2b0   : > { %7128 = vst [vmem:[#allocation40_spill] sm:$0xff] %v4995_v18  ;;  %v2305_v18 = vld [vmem:[#allocation5 + $0x260] sm:$0xff] }
 0x2b1   : > { %1920 = vmatmul.f32.gmra.mxu1 %v4779_v45  ;;  %v5013_v45 = vpop.f32.mrf.mxu2  ;;  %v5016_v0 = vpop.f32.mrf.mxu1 }
 0x2b2   : > { %1712 = vmatmul.f32.gmra.mxu3 %v7129_v20  ;;  %v5019_v20 = vpop.f32.mrf.mxu0 }
 0x2b5   : > { %v1332_v38 = vpop.f32.mrf.mxu3 }
 0x2b6   : > { %v5002_v3 = vadd.f32 %v1332_v38, %v4792_v53  ;;  %v7134_v53 = vld [vmem:[#allocation69_spill] sm:$0xff] }
 0x2b8   : > { %7130 = vst [vmem:[#allocation112_spill] sm:$0xff] %v5002_v3  ;;  %v5072_v3 = vstv %s3349_s13  ;;  %s3202_s13 = sshll.u32 %s6470_s17, 4  ;;  %s3203_s13 = int_to_ptr.vmem [resolvable:$true] %s3202_s13 }
 0x2b9   : > { %1923 = vmatmul.f32.gmra.mxu1 %v4277_v19  ;;  %v2324_v19 = vld [vmem:[#allocation5 + $0x2f8] sm:$0xff] }
 0x2ba   : > { %1715 = vmatmul.f32.gmra.mxu3 %v7132_v26  ;;  %2487 = vmatpush.msrb.mxu0 %v2324_v19  ;;  %v2318_v19 = vld [vmem:[#allocation5 + $0x2c8] sm:$0xff] }
 0x2bc   : > { %2488 = vmatpush.msrb.mxu0 %v2323_v61  ;;  %v7139_v61 = vld [vmem:[#allocation84_spill] sm:$0xff] }
 0x2bd   : > { %v1335_v35 = vpop.f32.mrf.mxu3 }
 0x2be   : > { %v5011_v51 = vadd.f32 %v1335_v35, %v4800_v11  ;;  %v2322_v11 = vld [vmem:[#allocation5 + $0x2e8] sm:$0xff]  ;;  %v5025_v35 = vpop.f32.mrf.mxu2 }
 0x2bf   : > { %2489 = vmatpush.msrb.mxu0 %v2322_v11  ;;  %v2317_v11 = vld [vmem:[#allocation5 + $0x2c0] sm:$0xff] }
 0x2c0   : > { %7133 = vst [vmem:[#allocation43_spill] sm:$0xff] %v5011_v51  ;;  %v7148_v51 = vld [vmem:[#allocation133_spill] sm:$0xff] }
 0x2c1   : > { %1926 = vmatmul.f32.gmra.mxu1 %v4317_v5  ;;  %v7137_v5 = vld [vmem:[#allocation75_spill] sm:$0xff]  ;;  %2490 = vmatpush.msrb.mxu0 %v2321_v39 }
 0x2c2   : > { %1718 = vmatmul.f32.gmra.mxu3 %v7134_v53  ;;  %v5028_v53 = vpop.f32.mrf.mxu1 }
 0x2c3   : > { %2491 = vmatpush.msrb.mxu0 %v2320_v32  ;;  %v2315_v32 = vld [vmem:[#allocation5 + $0x2b0] sm:$0xff] }
 0x2c5   : > { %v1338_v38 = vpop.f32.mrf.mxu3 }
 0x2c6   : > { %v5022_v26 = vadd.f32 %v1338_v38, %v4810_v46  ;;  %v5033_v38 = vpop.f32.mrf.mxu0 }
 0x2c8   : > { %7135 = vst [vmem:[#allocation116_spill] sm:$0xff] %v5022_v26 }
 0x2c9   : > { %1929 = vmatmul.f32.gmra.mxu1 %v7136_v50  ;;  %v2319_v50 = vld [vmem:[#allocation5 + $0x2d0] sm:$0xff] }
 0x2ca   : > { %1721 = vmatmul.f32.gmra.mxu3 %v7137_v5  ;;  %2492 = vmatpush.msrb.mxu0 %v2319_v50  ;;  %v5037_v5 = vpop.f32.mrf.mxu2  ;;  %v5039_v39 = vpop.f32.mrf.mxu1  ;;  %v2314_v50 = vld [vmem:[#allocation5 + $0x2a8] sm:$0xff] }
 0x2cc   : > { %2493 = vmatpush.msrb.mxu0 %v2318_v19 }
 0x2cd   : > { %v1341_v34 = vpop.f32.mrf.mxu3 }
 0x2ce   : > { %v5031_v46 = vadd.f32 %v1341_v34, %v4820_v24  ;;  %2494 = vmatpush.msrb.mxu0 %v2317_v11  ;;  %v2316_v24 = vld [vmem:[#allocation5 + $0x2b8] sm:$0xff] }
 0x2cf   : > { %v2312_v11 = vld [vmem:[#allocation5 + $0x298] sm:$0xff] }
 0x2d0   : > { %7138 = vst [vmem:[#allocation128_spill] sm:$0xff] %v5031_v46  ;;  %2495 = vmatpush.msrb.mxu0 %v2316_v24  ;;  %v7142_v46 = vld [vmem:[#allocation85_spill] sm:$0xff] }
 0x2d1   : > { %1932 = vmatmul.f32.gmra.mxu1 %v7139_v61  ;;  %v5044_v61 = vpop.f32.mrf.mxu0  ;;  %v2311_v24 = vld [vmem:[#allocation5 + $0x290] sm:$0xff] }
 0x2d2   : > { %1724 = vmatmul.f32.gmra.mxu3 %v7140_v31  ;;  %2496 = vmatpush.msrb.mxu0 %v2315_v32  ;;  %v2313_v31 = vld [vmem:[#allocation5 + $0x2a0] sm:$0xff]  ;;  %v5047_v12 = vpop.f32.mrf.mxu2  ;;  %v2310_v32 = vld [vmem:[#allocation5 + $0x288] sm:$0xff] }
 0x2d4   : > { %2497 = vmatpush.msrb.mxu0 %v2314_v50 }
 0x2d5   : > { %v1344_v26 = vpop.f32.mrf.mxu3 }
 0x2d6   : > { %v5042_v34 = vadd.f32 %v1344_v26, %v4828_v42  ;;  %2498 = vmatpush.msrb.mxu0 %v2313_v31  ;;  %v2292_v42 = vld [vmem:[#allocation5 + $0x1f8] sm:$0xff]  ;;  %v5052_v26 = vpop.f32.mrf.mxu1  ;;  %v2309_v31 = vld [vmem:[#allocation5 + $0x280] sm:$0xff] }
 0x2d7   : > { %2325 = vmatpush.msra.mxu2 %v2292_v42  ;;  %v7146_v42 = vld [vmem:[#allocation90_spill] sm:$0xff] }
 0x2d8   : > { %7141 = vst [vmem:[#allocation46_spill] sm:$0xff] %v5042_v34  ;;  %2499 = vmatpush.msrb.mxu0 %v2312_v11 }
 0x2d9   : > { %v5055_v50 = vpop.f32.mrf.mxu0 }
 0x2da   : > { %1727 = vmatmul.f32.gmra.mxu3 %v7142_v46  ;;  %2500 = vmatpush.msrb.mxu0 %v2311_v24  ;;  %v7144_v46 = vld [vmem:[#allocation70_spill] sm:$0xff]  ;;  %v5061_v11 = vpop.f32.mrf.mxu2  ;;  %v1371_v24 = vadd.f32 %v7146_v42, %v4857_v14  ;;  %v2306_v14 = vld [vmem:[#allocation5 + $0x268] sm:$0xff] }
 0x2db   : > { %v7150_v42 = vld [vmem:[#allocation92_spill] sm:$0xff] }
 0x2dc   : > { %2501 = vmatpush.msrb.mxu0 %v2310_v32  ;;  %v2308_v32 = vld [vmem:[#allocation5 + $0x278] sm:$0xff] }
 0x2dd   : > { %v1347_v19 = vpop.f32.mrf.mxu3  ;;  %2406 = vmatpush.msrb.mxu3 %v2308_v32 }
 0x2de   : > { %v5050_v60 = vadd.f32 %v1347_v19, %v4838_v47  ;;  %2502 = vmatpush.msrb.mxu0 %v2309_v31  ;;  %v2291_v19 = vld [vmem:[#allocation5 + $0x1f0] sm:$0xff]  ;;  %v1460_v31 = vadd.f32 %v7148_v51, %v1371_v24  ;;  %v5082_v24 = vld [vmem:[%s6625_s3] ss:$0 sm:$0xff] }
 0x2df   : > { %2326 = vmatpush.msra.mxu2 %v2291_v19 }
 0x2e0   : > { %7143 = vst [vmem:[#allocation120_spill] sm:$0xff] %v5050_v60  ;;  %v5065_v60 = vpop.f32.mrf.mxu1  ;;  %v1549_v27 = vadd.f32 %v5013_v45, %v1460_v31  ;;  %v7153_v45 = vld [vmem:[#allocation137_spill] sm:$0xff] }
 0x2e1   : > { %v5069_v58 = vpop.f32.mrf.mxu0 }
 0x2e2   : > { %1730 = vmatmul.f32.gmra.mxu3 %v7144_v46  ;;  %v7147_v46 = vld [vmem:[#allocation76_spill] sm:$0xff] }
 0x2e5   : > { %v1350_v34 = vpop.f32.mrf.mxu3 }
 0x2e6   : > { %v5058_v47 = vadd.f32 %v1350_v34, %v4846_v33  ;;  %v7149_v34 = vld [vmem:[#allocation15_spill] sm:$0xff] }
 0x2e7   : > { %v576_v19 = vshra.s32 %v7149_v34, 4 }
 0x2e8   : > { %7145 = vst [vmem:[#allocation132_spill] sm:$0xff] %v5058_v47  ;;  %v2307_v47 = vld [vmem:[#allocation5 + $0x270] sm:$0xff] }
 0x2e9   : > { %2407 = vmatpush.msrb.mxu3 %v2307_v47  ;;  %v651_v32 = vadd.s32 %v5072_v3, %v576_v19  ;;  %v5086_v47 = vpop.f32.mrf.mxu2  ;;  %v2303_v19 = vld [vmem:[#allocation5 + $0x250] sm:$0xff] }
 0x2ea   : > { %1733 = vmatmul.f32.gmra.mxu3 %v7147_v46  ;;  %v1374_v46 = vadd.f32 %v7150_v42, %v4868_v52  ;;  %v5089_v52 = vpop.f32.mrf.mxu1 }
 0x2eb   : > { %2408 = vmatpush.msrb.mxu3 %v2306_v14  ;;  %vm675_vm0 = vcmp.ge.s32.totalorder %v651_v32, 0  ;;  %vm699_vm1 = vcmp.lt.s32.totalorder %v651_v32, 16  ;;  %v7162_v32 = vld [vmem:[#allocation140_spill] sm:$0xff] }
 0x2ec   : > { %vm5104_vm12 = vmand %vm675_vm0, %vm699_vm1 }
 0x2ed   : > { %v1686_v33 = vpop.f32.mrf.mxu3  ;;  %2409 = vmatpush.msrb.mxu3 %v2305_v18  ;;  %v2302_v18 = vld [vmem:[#allocation5 + $0x248] sm:$0xff] }
 0x2ee   : > { %v1776_v37 = vadd.f32 %v4963_v25, %v1686_v33  ;;  %v577_v25 = vshra.s32 %v7151_v15, 4 }
 0x2f0   : > { %v1865_v51 = vadd.f32 %v5016_v0, %v1776_v37  ;;  %v2304_v37 = vld [vmem:[#allocation5 + $0x258] sm:$0xff]  ;;  %v1463_v0 = vadd.f32 %v7153_v45, %v1374_v46  ;;  %v652_v15 = vadd.s32 %v5072_v3, %v577_v25  ;;  %v7155_v46 = vld [vmem:[#allocation95_spill] sm:$0xff]  ;;  %v7156_v25 = vmov 0 }
 0x2f1   : > { %2410 = vmatpush.msrb.mxu3 %v2304_v37  ;;  %v7157_v25 = vsel %vm5104_vm12, 4294967295, %v7156_v25 }
 0x2f2   : > { %v1936_v33 = vadd.f32 %v1865_v51, %v1549_v27  ;;  %1736 = vmatmul.f32.gmra.mxu3 %v7152_v13  ;;  %v2290_v27 = vld [vmem:[#allocation5 + $0x1e8] sm:$0xff]  ;;  %v5095_v51 = vpop.f32.mrf.mxu0  ;;  %v1552_v45 = vadd.f32 %v5025_v35, %v1463_v0  ;;  %7158 = vst [vmem:[#allocation124_spill] sm:$0xff] %v7157_v25  ;;  %vm676_vm13 = vcmp.ge.s32.totalorder %v652_v15, 0  ;;  %vm700_vm10 = vcmp.lt.s32.totalorder %v652_v15, 16  ;;  %v2300_v35 = vld [vmem:[#allocation5 + $0x238] sm:$0xff] }
 0x2f3   : > { %2327 = vmatpush.msra.mxu2 %v2290_v27  ;;  %2411 = vmatpush.msrb.mxu3 %v2303_v19  ;;  %v7160_v27 = vld [vmem:[#allocation86_spill] sm:$0xff]  ;;  %vm5122_vm1 = vmand %vm676_vm13, %vm700_vm10 }
 0x2f4   : > { %v1964_v31 = vadd.f32 %v5082_v24, %v1936_v33  ;;  %v1377_v33 = vadd.f32 %v7155_v46, %v4877_v54  ;;  %v5120_v46 = vpop.f32.mrf.mxu1 }
 0x2f5   : > { %v1689_v42 = vpop.f32.mrf.mxu3  ;;  %2412 = vmatpush.msrb.mxu3 %v2302_v18 }
 0x2f6   : > { %v1779_v14 = vadd.f32 %v4975_v63, %v1689_v42  ;;  %v5097_v13 = vmax.f32 %v1964_v31, 0.0  ;;  %v7159_v63 = vld [vmem:[#allocation72_spill] sm:$0xff]  ;;  %v2301_v31 = vld [vmem:[#allocation5 + $0x240] sm:$0xff]  ;;  %v1466_v0 = vadd.f32 %v7162_v32, %v1377_v33 }
 0x2f7   : > { %v578_v42 = vshra.s32 %v7159_v63, 4  ;;  %2413 = vmatpush.msrb.mxu3 %v2301_v31  ;;  %v7168_v32 = vld [vmem:[#allocation27_spill] sm:$0xff] }
 0x2f8   : > { %7154 = vst [vmem:[#allocation49_spill] sm:$0xff] %v5097_v13  ;;  %v1868_v37 = vadd.f32 %v5028_v53, %v1779_v14  ;;  %v5113_v54 = vsel %vm5104_vm12, %v5097_v13, 0.0  ;;  %v5115_v53 = vpop.f32.mrf.mxu2 }
 0x2f9   : > { %7161 = vst [vmem:[#allocation136_spill] sm:$0xff] %v5113_v54  ;;  %v653_v18 = vadd.s32 %v5072_v3, %v578_v42  ;;  %2414 = vmatpush.msrb.mxu3 %v2300_v35  ;;  %v2108_v33 = vsel %vm4279_vm15, %v5113_v54, 0.0  ;;  %v579_v42 = vshra.s32 %v7168_v32, 4  ;;  %v1555_v35 = vadd.f32 %v5037_v5, %v1466_v0 }
 0x2fa   : > { %v1937_v19 = vadd.f32 %v1868_v37, %v1552_v45  ;;  %1739 = vmatmul.f32.gmra.mxu3 %v7160_v27  ;;  %v7163_v45 = vmov 0  ;;  %v2299_v37 = vld [vmem:[#allocation5 + $0x230] sm:$0xff]  ;;  %v5142_v27 = vrot.slane %v2108_v33, 1  ;;  %v6739_v5 = vrot.slane %v5113_v54, 7 }
 0x2fb   : > { %v7164_v45 = vsel %vm5122_vm1, 4294967295, %v7163_v45  ;;  %2415 = vmatpush.msrb.mxu3 %v2299_v37  ;;  %vm677_vm10 = vcmp.ge.s32.totalorder %v653_v18, 0  ;;  %v2297_v37 = vld [vmem:[#allocation5 + $0x220] sm:$0xff]  ;;  %vm701_vm13 = vcmp.lt.s32.totalorder %v653_v18, 16  ;;  %vm7173_vm15 = vcmp.lt.s32.totalorder %v7149_v34, 7  ;;  %v7181_v18 = vld [vmem:[#allocation100_spill] sm:$0xff] }
 0x2fc   : > { %v1965_v14 = vadd.f32 %v5082_v24, %v1937_v19  ;;  %7165 = vst [vmem:[#allocation52_spill] sm:$0xff] %v7164_v45  ;;  %v2289_v19 = vld [vmem:[#allocation5 + $0x1e0] sm:$0xff]  ;;  %vm5163_vm0 = vmand %vm677_vm10, %vm701_vm13 }
 0x2fd   : > { %v1692_v15 = vpop.f32.mrf.mxu3  ;;  %2328 = vmatpush.msra.mxu2 %v2289_v19  ;;  %7170 = vst [vmem:[#allocation139_spill] sm:$0xff] %v5142_v27  ;;  %2416 = vmatpush.msrb.mxu3 %v2298_v16  ;;  %v1469_v16 = vadd.f32 %v4785_v28, %v1380_v2  ;;  %v654_v28 = vadd.s32 %v5072_v3, %v579_v42 }
 0x2fe   : > { %v5126_v63 = vmax.f32 %v1965_v14, 0.0  ;;  %v1782_v31 = vadd.f32 %v4987_v1, %v1692_v15  ;;  %v5140_v15 = vpop.f32.mrf.mxu0 }
 0x2ff   : > { %2417 = vmatpush.msrb.mxu3 %v2297_v37  ;;  %v2295_v37 = vld [vmem:[#allocation5 + $0x210] sm:$0xff]  ;;  %vm678_vm10 = vcmp.ge.s32.totalorder %v654_v28, 0  ;;  %vm702_vm13 = vcmp.lt.s32.totalorder %v654_v28, 16 }
 0x300   : > { %7166 = vst [vmem:[#allocation127_spill] sm:$0xff] %v5126_v63  ;;  %v1871_v14 = vadd.f32 %v5039_v39, %v1782_v31  ;;  %v2061_v1 = vsel %vm5122_vm1, %v5126_v63, 0.0  ;;  %v2296_v31 = vld [vmem:[#allocation5 + $0x218] sm:$0xff]  ;;  %v5168_v2 = vpop.f32.mrf.mxu2 }
 0x301   : > { %v2181_v49 = vrot.slane %v2061_v1, 1  ;;  %v2085_v32 = vsel %vm4047_vm5, %v2061_v1, 0.0  ;;  %vm7175_vm5 = vcmp.lt.s32.totalorder %v7149_v34, 1  ;;  %v7177_v1 = vmov 0  ;;  %2418 = vmatpush.msrb.mxu3 %v2296_v31 }
 0x302   : > { %v1938_v62 = vadd.f32 %v1871_v14, %v1555_v35  ;;  %1742 = vmatmul.f32.gmra.mxu3 %v7172_v21  ;;  %v2133_v39 = vrot.slane %v2085_v32, 7  ;;  %v7178_v1 = vsel %vm5163_vm0, 4294967295, %v7177_v1  ;;  %v2294_v21 = vld [vmem:[#allocation5 + $0x208] sm:$0xff] }
 0x303   : > { %v5151_v0 = vsel %vm7173_vm15, %v5142_v27, %v2181_v49  ;;  %7179 = vst [vmem:[#allocation142_spill] sm:$0xff] %v7178_v1  ;;  %2419 = vmatpush.msrb.mxu3 %v2295_v37  ;;  %vm7185_vm15 = vmmov %vm7175_vm5 }
 0x304   : > { %7174 = vst [vmem:[#allocation55_spill] sm:$0xff] %v5151_v0  ;;  %v1966_v33 = vadd.f32 %v5082_v24, %v1938_v62  ;;  %2503 = vmatmul.f32.vlgmr.msrb.gmra.mxu0 %v5151_v0  ;;  %v5160_v35 = vsel %vm7175_vm5, %v6739_v5, %v2133_v39  ;;  %v5173_v62 = vpop.f32.mrf.mxu1  ;;  %v1383_v5 = vadd.f32 %v7181_v18, %v4897_v10  ;;  %vm5199_vm5 = vmand %vm678_vm10, %vm702_vm13 }
 0x305   : > { %7176 = vst [vmem:[#allocation129_spill] sm:$0xff] %v5160_v35  ;;  %v1695_v14 = vpop.f32.mrf.mxu3  ;;  %v1558_v0 = vadd.f32 %v5047_v12, %v1469_v16  ;;  %v7182_v35 = vld [vmem:[#allocation83_spill] sm:$0xff]  ;;  %2420 = vmatpush.msrb.mxu3 %v2294_v21 }
 0x306   : > { %v5170_v19 = vmax.f32 %v1966_v33, 0.0  ;;  %v1785_v32 = vadd.f32 %v4998_v57, %v1695_v14  ;;  %v580_v33 = vshra.s32 %v7182_v35, 4  ;;  %v2293_v14 = vld [vmem:[#allocation5 + $0x200] sm:$0xff]  ;;  %v5186_v12 = vpop.f32.mrf.mxu0  ;;  %v1472_v16 = vadd.f32 %v4796_v9, %v1383_v5  ;;  %v2288_v9 = vld [vmem:[#allocation5 + $0x1d8] sm:$0xff] }
 0x307   : > { %2421 = vmatpush.msrb.mxu3 %v2293_v14  ;;  %2329 = vmatpush.msra.mxu2 %v2288_v9  ;;  %v7195_v9 = vld [vmem:[#allocation25_spill] sm:$0xff] }
 0x308   : > { %7180 = vst [vmem:[#allocation59_spill] sm:$0xff] %v5170_v19  ;;  %v1874_v31 = vadd.f32 %v5052_v26, %v1785_v32  ;;  %v2062_v42 = vsel %vm5163_vm0, %v5170_v19, 0.0  ;;  %v655_v28 = vadd.s32 %v5072_v3, %v580_v33  ;;  %v1561_v21 = vadd.f32 %v5061_v11, %v1472_v16 }
 0x309   : > { %v2110_v57 = vsel %vm4346_vm14, %v2062_v42, 0.0  ;;  %v2134_v37 = vrot.slane %v2062_v42, 7  ;;  %vm7186_vm14 = vcmp.lt.s32.totalorder %v7149_v34, 7  ;;  %v7193_v42 = vld [vmem:[#allocation33_spill] sm:$0xff] }
 0x30a   : > { %v1939_v54 = vadd.f32 %v1874_v31, %v1558_v0  ;;  %1745 = vmatmul.f32.gmra.mxu3 %v7184_v55  ;;  %v2182_v10 = vrot.slane %v2110_v57, 1  ;;  %v7188_v55 = vmov 0  ;;  %v581_v33 = vshra.s32 %v7193_v42, 4 }
 0x30b   : > { %v5190_v26 = vsel %vm7185_vm15, %v2133_v39, %v2134_v37  ;;  %v7189_v55 = vsel %vm5199_vm5, 4294967295, %v7188_v55  ;;  %vm679_vm10 = vcmp.ge.s32.totalorder %v655_v28, 0  ;;  %vm703_vm13 = vcmp.lt.s32.totalorder %v655_v28, 16  ;;  %vm7196_vm15 = vmmov %vm7186_vm14 }
 0x30c   : > { %v1967_v27 = vadd.f32 %v5082_v24, %v1939_v54  ;;  %v5196_v35 = vsel %vm7186_vm14, %v2181_v49, %v2182_v10  ;;  %7190 = vst [vmem:[#allocation69_spill] sm:$0xff] %v7189_v55  ;;  %v5207_v54 = vpop.f32.mrf.mxu2  ;;  %v7192_v49 = vld [vmem:[#allocation103_spill] sm:$0xff]  ;;  %v5217_v57 = vpop.f32.mrf.mxu1  ;;  %vm7198_vm14 = vcmp.lt.s32.totalorder %v7149_v34, 1  ;;  %v7199_v28 = vmov 0 }
 0x30d   : > { %7187 = vst [vmem:[#allocation64_spill] sm:$0xff] %v5196_v35  ;;  %v1698_v0 = vpop.f32.mrf.mxu3  ;;  %2505 = vmatmul.f32.gmra.mxu0 %v5196_v35  ;;  %v1386_v5 = vadd.f32 %v7192_v49, %v4905_v22 }
 0x30e   : > { %v5204_v32 = vmax.f32 %v1967_v27, 0.0  ;;  %v1788_v39 = vadd.f32 %v5008_v8, %v1698_v0  ;;  %v5232_v49 = vpop.f32.mrf.mxu0 }
 0x30f   : > { %v1475_v11 = vadd.f32 %v4807_v30, %v1386_v5  ;;  %v2287_v5 = vld [vmem:[#allocation5 + $0x1d0] sm:$0xff] }
 0x310   : > { %7191 = vst [vmem:[#allocation80_spill] sm:$0xff] %v5204_v32  ;;  %v1877_v18 = vadd.f32 %v5065_v60, %v1788_v39  ;;  %v2063_v31 = vsel %vm5199_vm5, %v5204_v32, 0.0  ;;  %2330 = vmatpush.msra.mxu2 %v2287_v5  ;;  %v7206_v5 = vld [vmem:[#allocation24_spill] sm:$0xff] }
 0x311   : > { %v2183_v8 = vrot.slane %v2063_v31, 1  ;;  %v2087_v27 = vsel %vm4084_vm6, %v2063_v31, 0.0  ;;  %vm5235_vm6 = vmand %vm679_vm10, %vm703_vm13  ;;  %v1564_v42 = vadd.f32 %v5086_v47, %v1475_v11 }
 0x312   : > { %v1940_v0 = vadd.f32 %v1877_v18, %v1561_v21  ;;  %1748 = vmatmul.f32.gmra.mxu3 %v7195_v9  ;;  %v2135_v22 = vrot.slane %v2087_v27, 7  ;;  %v7200_v28 = vsel %vm5235_vm6, 4294967295, %v7199_v28 }
 0x313   : > { %v5224_v60 = vsel %vm7196_vm15, %v2182_v10, %v2183_v8  ;;  %7201 = vst [vmem:[#allocation84_spill] sm:$0xff] %v7200_v28  ;;  %v656_v10 = vadd.s32 %v5072_v3, %v581_v33  ;;  %vm7207_vm15 = vmmov %vm7198_vm14 }
 0x314   : > { %7197 = vst [vmem:[#allocation75_spill] sm:$0xff] %v5224_v60  ;;  %v1968_v16 = vadd.f32 %v5082_v24, %v1940_v0  ;;  %v5230_v39 = vsel %vm7198_vm14, %v2134_v37, %v2135_v22  ;;  %v7203_v37 = vld [vmem:[#allocation108_spill] sm:$0xff]  ;;  %v7204_v0 = vld [vmem:[#allocation89_spill] sm:$0xff]  ;;  %v5256_v47 = vpop.f32.mrf.mxu1 }
 0x315   : > { %v1701_v21 = vpop.f32.mrf.mxu3  ;;  %2507 = vmatmul.f32.gmra.mxu0 %v5224_v60  ;;  %v1389_v31 = vadd.f32 %v7203_v37, %v4913_v23  ;;  %v582_v9 = vshra.s32 %v7204_v0, 4  ;;  %vm680_vm10 = vcmp.ge.s32.totalorder %v656_v10, 0  ;;  %vm704_vm13 = vcmp.lt.s32.totalorder %v656_v10, 16 }
 0x316   : > { %v5240_v18 = vmax.f32 %v1968_v16, 0.0  ;;  %v1791_v30 = vadd.f32 %v5019_v20, %v1701_v21  ;;  %v5253_v20 = vpop.f32.mrf.mxu2  ;;  %vm5269_vm14 = vmand %vm680_vm10, %vm704_vm13 }
 0x317   : > { %v1478_v11 = vadd.f32 %v4817_v6, %v1389_v31  ;;  %v657_v10 = vadd.s32 %v5072_v3, %v582_v9  ;;  %v5277_v6 = vpop.f32.mrf.mxu0  ;;  %v7214_v31 = vld [vmem:[#allocation113_spill] sm:$0xff] }
 0x318   : > { %7202 = vst [vmem:[#allocation81_spill] sm:$0xff] %v5240_v18  ;;  %v1880_v14 = vadd.f32 %v5089_v52, %v1791_v30  ;;  %v2064_v27 = vsel %vm5235_vm6, %v5240_v18, 0.0  ;;  %v1392_v0 = vadd.f32 %v7214_v31, %v4919_v7 }
 0x319   : > { %v2112_v16 = vsel %vm4403_vm4, %v2064_v27, 0.0  ;;  %v2136_v60 = vrot.slane %v2064_v27, 7  ;;  %vm7208_vm4 = vcmp.lt.s32.totalorder %v7149_v34, 7  ;;  %vm681_vm10 = vcmp.ge.s32.totalorder %v657_v10, 0 }
 0x31a   : > { %v1941_v21 = vadd.f32 %v1880_v14, %v1564_v42  ;;  %1751 = vmatmul.f32.gmra.mxu3 %v7206_v5  ;;  %v2184_v23 = vrot.slane %v2112_v16, 1  ;;  %v7210_v14 = vmov 0  ;;  %vm705_vm13 = vcmp.lt.s32.totalorder %v657_v10, 16 }
 0x31b   : > { %v5260_v52 = vsel %vm7207_vm15, %v2135_v22, %v2136_v60  ;;  %v7211_v14 = vsel %vm5269_vm14, 4294967295, %v7210_v14  ;;  %vm7218_vm15 = vmmov %vm7208_vm4 }
 0x31c   : > { %v1969_v30 = vadd.f32 %v5082_v24, %v1941_v21  ;;  %v5266_v37 = vsel %vm7208_vm4, %v2183_v8, %v2184_v23  ;;  %7212 = vst [vmem:[#allocation70_spill] sm:$0xff] %v7211_v14  ;;  %v1567_v8 = vadd.f32 %v5115_v53, %v1478_v11  ;;  %v7215_v21 = vld [vmem:[#allocation39_spill] sm:$0xff]  ;;  %v1481_v11 = vadd.f32 %v4831_v29, %v1392_v0  ;;  %v2286_v0 = vld [vmem:[#allocation5 + $0x1c8] sm:$0xff] }
 0x31d   : > { %7209 = vst [vmem:[#allocation85_spill] sm:$0xff] %v5266_v37  ;;  %v1704_v42 = vpop.f32.mrf.mxu3  ;;  %2509 = vmatmul.f32.gmra.mxu0 %v5266_v37  ;;  %v583_v5 = vshra.s32 %v7215_v21, 4  ;;  %vm7220_vm4 = vcmp.lt.s32.totalorder %v7149_v34, 1  ;;  %2331 = vmatpush.msra.mxu2 %v2286_v0 }
 0x31e   : > { %v5274_v27 = vmax.f32 %v1969_v30, 0.0  ;;  %v1794_v22 = vadd.f32 %v5033_v38, %v1704_v42  ;;  %v7217_v42 = vld [vmem:[#allocation28_spill] sm:$0xff]  ;;  %v1570_v21 = vadd.f32 %v5168_v2, %v1481_v11 }
 0x320   : > { %7213 = vst [vmem:[#allocation90_spill] sm:$0xff] %v5274_v27  ;;  %v1883_v33 = vadd.f32 %v5120_v46, %v1794_v22  ;;  %v2065_v16 = vsel %vm5269_vm14, %v5274_v27, 0.0  ;;  %v5294_v46 = vpop.f32.mrf.mxu2 }
 0x321   : > { %v2185_v9 = vrot.slane %v2065_v16, 1  ;;  %v2089_v37 = vsel %vm4114_vm7, %v2065_v16, 0.0  ;;  %vm5305_vm7 = vmand %vm681_vm10, %vm705_vm13 }
 0x322   : > { %v1942_v38 = vadd.f32 %v1883_v33, %v1567_v8  ;;  %1754 = vmatmul.f32.gmra.mxu3 %v7217_v42  ;;  %v2137_v7 = vrot.slane %v2089_v37, 7  ;;  %v5302_v8 = vpop.f32.mrf.mxu1  ;;  %v7221_v37 = vmov 0  ;;  %v7226_v42 = vld [vmem:[#allocation93_spill] sm:$0xff] }
 0x323   : > { %v5292_v53 = vsel %vm7218_vm15, %v2184_v23, %v2185_v9  ;;  %v7222_v37 = vsel %vm5305_vm7, 4294967295, %v7221_v37  ;;  %v658_v23 = vadd.s32 %v5072_v3, %v583_v5  ;;  %v5321_v5 = vpop.f32.mrf.mxu0  ;;  %vm7228_vm15 = vmmov %vm7220_vm4 }
 0x324   : > { %7219 = vst [vmem:[#allocation76_spill] sm:$0xff] %v5292_v53  ;;  %v1970_v22 = vadd.f32 %v5082_v24, %v1942_v38  ;;  %v5300_v31 = vsel %vm7220_vm4, %v2136_v60, %v2137_v7  ;;  %v7225_v60 = vld [vmem:[#allocation117_spill] sm:$0xff]  ;;  %vm7229_vm4 = vcmp.lt.s32.totalorder %v7149_v34, 7 }
 0x325   : > { %v1707_v33 = vpop.f32.mrf.mxu3  ;;  %2511 = vmatmul.f32.gmra.mxu0 %v5292_v53  ;;  %7223 = vst [vmem:[#allocation133_spill] sm:$0xff] %v7222_v37  ;;  %v1395_v16 = vadd.f32 %v7225_v60, %v4927_v17  ;;  %v584_v53 = vshra.s32 %v7226_v42, 4  ;;  %vm682_vm10 = vcmp.ge.s32.totalorder %v658_v23, 0  ;;  %vm706_vm13 = vcmp.lt.s32.totalorder %v658_v23, 16 }
 0x326   : > { %v5310_v10 = vmax.f32 %v1970_v22, 0.0  ;;  %v1797_v29 = vadd.f32 %v5044_v61, %v1707_v33 }
 0x327   : > { %v659_v23 = vadd.s32 %v5072_v3, %v584_v53 }
 0x328   : > { %7224 = vst [vmem:[#allocation15_spill] sm:$0xff] %v5310_v10  ;;  %v1886_v30 = vadd.f32 %v5173_v62, %v1797_v29  ;;  %v2066_v38 = vsel %vm5305_vm7, %v5310_v10, 0.0  ;;  %v1484_v62 = vadd.f32 %v4842_v48, %v1395_v16  ;;  %v2285_v16 = vld [vmem:[#allocation5 + $0x1c0] sm:$0xff] }
 0x329   : > { %v2114_v61 = vsel %vm4446_vm11, %v2066_v38, 0.0  ;;  %v2138_v33 = vrot.slane %v2066_v38, 7  ;;  %vm5339_vm11 = vmand %vm682_vm10, %vm706_vm13  ;;  %2332 = vmatpush.msra.mxu2 %v2285_v16  ;;  %vm683_vm10 = vcmp.ge.s32.totalorder %v659_v23, 0  ;;  %vm707_vm13 = vcmp.lt.s32.totalorder %v659_v23, 16 }
 0x32a   : > { %v1943_v0 = vadd.f32 %v1886_v30, %v1570_v21  ;;  %3350 = vmatmul.msk.f32.vlgmr.msrb.gmra.mxu3 %vm5104_vm12, %v5097_v13  ;;  %v2186_v17 = vrot.slane %v2114_v61, 1  ;;  %v7231_v21 = vmov 0  ;;  %v5344_v30 = vpop.f32.mrf.mxu2  ;;  %v5349_v38 = vpop.f32.mrf.mxu1  ;;  %v1573_v22 = vadd.f32 %v5207_v54, %v1484_v62 }
 0x32b   : > { %v5330_v2 = vsel %vm7228_vm15, %v2137_v7, %v2138_v33  ;;  %v7232_v21 = vsel %vm5339_vm11, 4294967295, %v7231_v21  ;;  %v5364_v54 = vpop.f32.mrf.mxu0  ;;  %vm7238_vm15 = vmmov %vm7229_vm4  ;;  %v7241_v23 = vmov 0 }
 0x32c   : > { %v1971_v11 = vadd.f32 %v5082_v24, %v1943_v0  ;;  %v5336_v29 = vsel %vm7229_vm4, %v2185_v9, %v2186_v17  ;;  %7233 = vst [vmem:[#allocation19_spill] sm:$0xff] %v7232_v21  ;;  %v7235_v9 = vld [vmem:[#allocation121_spill] sm:$0xff]  ;;  %vm5377_vm4 = vmand %vm683_vm10, %vm707_vm13 }
 0x32d   : > { %7230 = vst [vmem:[#allocation92_spill] sm:$0xff] %v5336_v29  ;;  %v1710_v60 = vpop.f32.mrf.mxu3  ;;  %2514 = vmatmul.f32.gmra.mxu0 %v5336_v29  ;;  %v1398_v42 = vadd.f32 %v7235_v9, %v4935_v44  ;;  %v7236_v0 = vld [vmem:[#allocation45_spill] sm:$0xff]  ;;  %v7242_v23 = vsel %vm5377_vm4, 4294967295, %v7241_v23 }
 0x32e   : > { %v5346_v7 = vmax.f32 %v1971_v11, 0.0  ;;  %v1800_v48 = vadd.f32 %v5055_v50, %v1710_v60  ;;  %v585_v11 = vshra.s32 %v7236_v0, 4  ;;  %7243 = vst [vmem:[#allocation95_spill] sm:$0xff] %v7242_v23 }
 0x32f   : > { %v1487_v62 = vadd.f32 %v4853_v41, %v1398_v42  ;;  %v7245_v42 = vld [vmem:[#allocation126_spill] sm:$0xff] }
 0x330   : > { %7234 = vst [vmem:[#allocation82_spill] sm:$0xff] %v5346_v7  ;;  %v1889_v61 = vadd.f32 %v5217_v57, %v1800_v48  ;;  %v2067_v53 = vsel %vm5339_vm11, %v5346_v7, 0.0  ;;  %v660_v9 = vadd.s32 %v5072_v3, %v585_v11 }
 0x331   : > { %v2187_v25 = vrot.slane %v2067_v53, 1  ;;  %v2091_v50 = vsel %vm4144_vm8, %v2067_v53, 0.0  ;;  %vm7240_vm8 = vcmp.lt.s32.totalorder %v7149_v34, 1 }
 0x332   : > { %v1944_v60 = vadd.f32 %v1889_v61, %v1573_v22  ;;  %3351 = vmatmul.msk.f32.gmra.mxu3 %vm5122_vm1, %v5126_v63  ;;  %v2139_v44 = vrot.slane %v2091_v50, 7  ;;  %v5385_v41 = vpop.f32.mrf.mxu2  ;;  %v1401_v61 = vadd.f32 %v7245_v42, %v4943_v40  ;;  %v7246_v50 = vld [vmem:[#allocation96_spill] sm:$0xff]  ;;  %v5395_v11 = vpop.f32.mrf.mxu1  ;;  %vm684_vm10 = vcmp.ge.s32.totalorder %v660_v9, 0 }
 0x333   : > { %v5368_v57 = vsel %vm7238_vm15, %v2186_v17, %v2187_v25  ;;  %vm708_vm13 = vcmp.lt.s32.totalorder %v660_v9, 16  ;;  %vm7248_vm15 = vmmov %vm7240_vm8  ;;  %v5412_v42 = vpop.f32.mrf.mxu0  ;;  %vm7282_vm1 = vcmp.lt.s32.totalorder %v7149_v34, 1 }
 0x334   : > { %7239 = vst [vmem:[#allocation137_spill] sm:$0xff] %v5368_v57  ;;  %v1972_v48 = vadd.f32 %v5082_v24, %v1944_v60  ;;  %v5374_v13 = vsel %vm7240_vm8, %v2138_v33, %v2139_v44  ;;  %v1576_v33 = vadd.f32 %v5253_v20, %v1487_v62  ;;  %v586_v60 = vshra.s32 %v7246_v50, 4 }
 0x335   : > { %v1713_v16 = vpop.f32.mrf.mxu3  ;;  %2517 = vmatmul.f32.gmra.mxu0 %v5368_v57  ;;  %vm7249_vm8 = vcmp.lt.s32.totalorder %v7149_v34, 7 }
 0x336   : > { %v5382_v22 = vmax.f32 %v1972_v48, 0.0  ;;  %v1803_v17 = vadd.f32 %v5069_v58, %v1713_v16 }
 0x338   : > { %7244 = vst [vmem:[#allocation72_spill] sm:$0xff] %v5382_v22  ;;  %v1892_v53 = vadd.f32 %v5256_v47, %v1803_v17  ;;  %v2068_v0 = vsel %vm5377_vm4, %v5382_v22, 0.0  ;;  %v1490_v47 = vadd.f32 %v4866_v36, %v1401_v61 }
 0x339   : > { %v2116_v58 = vsel %vm4482_vm3, %v2068_v0, 0.0  ;;  %v2140_v16 = vrot.slane %v2068_v0, 7  ;;  %vm5415_vm3 = vmand %vm684_vm10, %vm708_vm13 }
 0x33a   : > { %v1945_v45 = vadd.f32 %v1892_v53, %v1576_v33  ;;  %3352 = vmatmul.msk.f32.gmra.mxu3 %vm5163_vm0, %v5170_v19  ;;  %v2188_v40 = vrot.slane %v2116_v58, 1  ;;  %v7251_v53 = vmov 0  ;;  %v1579_v0 = vadd.f32 %v5294_v46, %v1490_v47  ;;  %v7256_v58 = vld [vmem:[#allocation51_spill] sm:$0xff]  ;;  %v5438_v46 = vpop.f32.mrf.mxu1 }
 0x33b   : > { %v5404_v20 = vsel %vm7248_vm15, %v2139_v44, %v2140_v16  ;;  %v7252_v53 = vsel %vm5415_vm3, 4294967295, %v7251_v53  ;;  %v661_v44 = vadd.s32 %v5072_v3, %v586_v60  ;;  %v587_v63 = vshra.s32 %v7256_v58, 4  ;;  %vm7258_vm15 = vmmov %vm7249_vm8 }
 0x33c   : > { %v1973_v62 = vadd.f32 %v5082_v24, %v1945_v45  ;;  %v5410_v17 = vsel %vm7249_vm8, %v2187_v25, %v2188_v40  ;;  %7253 = vst [vmem:[#allocation140_spill] sm:$0xff] %v7252_v53  ;;  %v2284_v45 = vld [vmem:[#allocation5 + $0x1b8] sm:$0xff]  ;;  %v7255_v25 = vld [vmem:[#allocation131_spill] sm:$0xff] }
 0x33d   : > { %7250 = vst [vmem:[#allocation86_spill] sm:$0xff] %v5410_v17  ;;  %v1716_v33 = vpop.f32.mrf.mxu3  ;;  %2520 = vmatmul.f32.gmra.mxu0 %v5410_v17  ;;  %2333 = vmatpush.msra.mxu2 %v2284_v45  ;;  %v1404_v61 = vadd.f32 %v7255_v25, %v4951_v56  ;;  %vm685_vm10 = vcmp.ge.s32.totalorder %v661_v44, 0  ;;  %vm709_vm13 = vcmp.lt.s32.totalorder %v661_v44, 16  ;;  %v7261_v44 = vmov 0 }
 0x33e   : > { %v5420_v9 = vmax.f32 %v1973_v62, 0.0  ;;  %v1806_v36 = vadd.f32 %v5095_v51, %v1716_v33  ;;  %v5433_v51 = vpop.f32.mrf.mxu2  ;;  %vm5451_vm8 = vmand %vm685_vm10, %vm709_vm13 }
 0x33f   : > { %v1493_v47 = vadd.f32 %v4880_v59, %v1404_v61  ;;  %v7262_v44 = vsel %vm5451_vm8, 4294967295, %v7261_v44  ;;  %v2283_v59 = vld [vmem:[#allocation5 + $0x1b0] sm:$0xff]  ;;  %v5459_v61 = vpop.f32.mrf.mxu0 }
 0x340   : > { %7254 = vst [vmem:[#allocation67_spill] sm:$0xff] %v5420_v9  ;;  %v1895_v50 = vadd.f32 %v5302_v8, %v1806_v36  ;;  %v2069_v48 = vsel %vm5415_vm3, %v5420_v9, 0.0  ;;  %2334 = vmatpush.msra.mxu2 %v2283_v59 }
 0x341   : > { %v2189_v60 = vrot.slane %v2069_v48, 1  ;;  %v2093_v1 = vsel %vm4174_vm9, %v2069_v48, 0.0  ;;  %vm7260_vm9 = vcmp.lt.s32.totalorder %v7149_v34, 1  ;;  %7263 = vst [vmem:[#allocation97_spill] sm:$0xff] %v7262_v44  ;;  %v1582_v48 = vadd.f32 %v5344_v30, %v1493_v47  ;;  %v7347_v44 = vld [vmem:[#allocation71_spill] sm:$0xff] }
 0x342   : > { %v1946_v33 = vadd.f32 %v1895_v50, %v1579_v0  ;;  %3353 = vmatmul.msk.f32.gmra.mxu3 %vm5199_vm5, %v5204_v32  ;;  %v2141_v56 = vrot.slane %v2093_v1, 7  ;;  %v662_v1 = vadd.s32 %v5072_v3, %v587_v63  ;;  %v7266_v63 = vld [vmem:[#allocation101_spill] sm:$0xff] }
 0x343   : > { %v5442_v8 = vsel %vm7258_vm15, %v2188_v40, %v2189_v60  ;;  %vm7268_vm15 = vmmov %vm7260_vm9 }
 0x344   : > { %7259 = vst [vmem:[#allocation27_spill] sm:$0xff] %v5442_v8  ;;  %v1974_v36 = vadd.f32 %v5082_v24, %v1946_v33  ;;  %v5448_v45 = vsel %vm7260_vm9, %v2140_v16, %v2141_v56  ;;  %v7265_v16 = vld [vmem:[#allocation135_spill] sm:$0xff]  ;;  %v588_v33 = vshra.s32 %v7266_v63, 4  ;;  %vm686_vm10 = vcmp.ge.s32.totalorder %v662_v1, 0 }
 0x345   : > { %v1719_v25 = vpop.f32.mrf.mxu3  ;;  %2523 = vmatmul.f32.gmra.mxu0 %v5442_v8  ;;  %v1407_v50 = vadd.f32 %v7265_v16, %v4957_v43  ;;  %vm710_vm13 = vcmp.lt.s32.totalorder %v662_v1, 16  ;;  %v1906_v16 = vpop.f32.mrf.mxu1  ;;  %v7271_v1 = vmov 0 }
 0x346   : > { %v5456_v0 = vmax.f32 %v1974_v36, 0.0  ;;  %v1809_v40 = vadd.f32 %v5140_v15, %v1719_v25  ;;  %vm5487_vm9 = vmand %vm686_vm10, %vm710_vm13 }
 0x347   : > { %v1496_v47 = vadd.f32 %v4892_v4, %v1407_v50  ;;  %v7272_v1 = vsel %vm5487_vm9, 4294967295, %v7271_v1  ;;  %v7275_v50 = vld [vmem:[#allocation34_spill] sm:$0xff] }
 0x348   : > { %7264 = vst [vmem:[#allocation23_spill] sm:$0xff] %v5456_v0  ;;  %v1898_v58 = vadd.f32 %v5349_v38, %v1809_v40  ;;  %v2070_v62 = vsel %vm5451_vm8, %v5456_v0, 0.0  ;;  %v5478_v38 = vpop.f32.mrf.mxu2 }
 0x349   : > { %v2118_v15 = vsel %vm4522_vm2, %v2070_v62, 0.0  ;;  %v2142_v25 = vrot.slane %v2070_v62, 7  ;;  %vm7269_vm2 = vcmp.lt.s32.totalorder %v7149_v34, 7  ;;  %7273 = vst [vmem:[#allocation100_spill] sm:$0xff] %v7272_v1  ;;  %v7359_v1 = vld [vmem:[#allocation130_spill] sm:$0xff] }
 0x34a   : > { %v1947_v55 = vadd.f32 %v1898_v58, %v1582_v48  ;;  %3354 = vmatmul.msk.f32.gmra.mxu3 %vm5235_vm6, %v5240_v18  ;;  %v2190_v43 = vrot.slane %v2118_v15, 1  ;;  %v7277_v15 = vld [vmem:[#allocation58_spill] sm:$0xff]  ;;  %v5503_v18 = vpop.f32.mrf.mxu0 }
 0x34b   : > { %v5476_v30 = vsel %vm7268_vm15, %v2141_v56, %v2142_v25  ;;  %v663_v56 = vadd.s32 %v5072_v3, %v588_v33  ;;  %v589_v28 = vshra.s32 %v7277_v15, 4  ;;  %v7287_v15 = vld [vmem:[#allocation114_spill] sm:$0xff] }
 0x34c   : > { %v1975_v40 = vadd.f32 %v5082_v24, %v1947_v55  ;;  %v5484_v59 = vsel %vm7269_vm2, %v2189_v60, %v2190_v43  ;;  %v7276_v55 = vld [vmem:[#allocation138_spill] sm:$0xff]  ;;  %v1585_v60 = vadd.f32 %v5385_v41, %v1496_v47  ;;  %v7281_v47 = vld [vmem:[#allocation152_spill] sm:$0xff] }
 0x34d   : > { %7270 = vst [vmem:[#allocation88_spill] sm:$0xff] %v5484_v59  ;;  %v1722_v48 = vpop.f32.mrf.mxu3  ;;  %2526 = vmatmul.f32.gmra.mxu0 %v5484_v59  ;;  %v1410_v62 = vadd.f32 %v7276_v55, %v7275_v50  ;;  %vm687_vm13 = vcmp.ge.s32.totalorder %v663_v56, 0  ;;  %vm711_vm15 = vcmp.lt.s32.totalorder %v663_v56, 16 }
 0x34e   : > { %v5492_v58 = vmax.f32 %v1975_v40, 0.0  ;;  %v1812_v4 = vadd.f32 %v5186_v12, %v1722_v48  ;;  %v7278_v40 = vld [vmem:[#allocation54_spill] sm:$0xff] }
 0x34f   : > { %vm7279_vm10 = vnez %v7278_v40  ;;  %v1499_v48 = vadd.f32 %v7281_v47, %v1410_v62 }
 0x350   : > { %7274 = vst [vmem:[#allocation83_spill] sm:$0xff] %v5492_v58  ;;  %v1901_v63 = vadd.f32 %v5395_v11, %v1812_v4  ;;  %v2071_v36 = vsel %vm5487_vm9, %v5492_v58, 0.0  ;;  %v1593_v56 = vpop.f32.mrf.mxu2 }
 0x351   : > { %v2191_v33 = vrot.slane %v2071_v36, 1  ;;  %v2095_v32 = vsel %vm7279_vm10, %v2071_v36, 0.0  ;;  %vm5521_vm10 = vmand %vm687_vm13, %vm711_vm15  ;;  %v1909_v36 = vpop.f32.mrf.mxu1 }
 0x352   : > { %v1948_v12 = vadd.f32 %v1901_v63, %v1585_v60  ;;  %3355 = vmatmul.msk.f32.gmra.mxu3 %vm5269_vm14, %v5274_v27  ;;  %v2143_v41 = vrot.slane %v2095_v32, 7  ;;  %v7283_v60 = vmov 0  ;;  %v664_v32 = vadd.s32 %v5072_v3, %v589_v28  ;;  %v2282_v63 = vld [vmem:[#allocation5 + $0x1a8] sm:$0xff]  ;;  %v7289_v28 = vld [vmem:[#allocation107_spill] sm:$0xff] }
 0x353   : > { %v5512_v11 = vsel %vm7269_vm2, %v2190_v43, %v2191_v33  ;;  %v7284_v60 = vsel %vm5521_vm10, 4294967295, %v7283_v60  ;;  %2335 = vmatpush.msra.mxu2 %v2282_v63  ;;  %v590_v27 = vshra.s32 %v7289_v28, 4  ;;  %vm7292_vm2 = vcmp.lt.s32.totalorder %v7149_v34, 1  ;;  %v7300_v28 = vld [vmem:[#allocation109_spill] sm:$0xff] }
 0x354   : > { %7280 = vst [vmem:[#allocation78_spill] sm:$0xff] %v5512_v11  ;;  %v1976_v4 = vadd.f32 %v5082_v24, %v1948_v12  ;;  %v5518_v50 = vsel %vm7282_vm1, %v2142_v25, %v2143_v41  ;;  %v7288_v25 = vld [vmem:[#allocation141_spill] sm:$0xff]  ;;  %v1588_v12 = vadd.f32 %v5433_v51, %v1499_v48  ;;  %vm688_vm13 = vcmp.ge.s32.totalorder %v664_v32, 0  ;;  %v5542_v51 = vpop.f32.mrf.mxu0 }
 0x355   : > { %v1725_v55 = vpop.f32.mrf.mxu3  ;;  %2529 = vmatmul.f32.gmra.mxu0 %v5512_v11  ;;  %7285 = vst [vmem:[#allocation21_spill] sm:$0xff] %v7284_v60  ;;  %v1413_v40 = vadd.f32 %v7288_v25, %v7287_v15  ;;  %vm712_vm15 = vcmp.lt.s32.totalorder %v664_v32, 16  ;;  %v7293_v48 = vld [vmem:[#allocation153_spill] sm:$0xff]  ;;  %v665_v32 = vadd.s32 %v5072_v3, %v590_v27  ;;  %v7303_v11 = vld [vmem:[#allocation63_spill] sm:$0xff]  ;;  %vm7307_vm14 = vcmp.lt.s32.totalorder %v7149_v34, 1 }
 0x356   : > { %v5526_v43 = vmax.f32 %v1976_v4, 0.0  ;;  %v1815_v62 = vadd.f32 %v5232_v49, %v1725_v55  ;;  %v7290_v4 = vld [vmem:[#allocation104_spill] sm:$0xff] }
 0x357   : > { %vm7291_vm1 = vnez %v7290_v4  ;;  %v7301_v4 = vld [vmem:[#allocation143_spill] sm:$0xff] }
 0x358   : > { %7286 = vst [vmem:[#allocation103_spill] sm:$0xff] %v5526_v43  ;;  %v1904_v47 = vadd.f32 %v5438_v46, %v1815_v62  ;;  %v2072_v14 = vsel %vm5521_vm10, %v5526_v43, 0.0  ;;  %v1502_v62 = vadd.f32 %v7293_v48, %v1413_v40  ;;  %v2281_v40 = vld [vmem:[#allocation5 + $0x1a0] sm:$0xff] }
 0x359   : > { %v2120_v19 = vsel %vm7291_vm1, %v2072_v14, 0.0  ;;  %v2144_v49 = vrot.slane %v2072_v14, 7  ;;  %vm7294_vm1 = vcmp.lt.s32.totalorder %v7149_v34, 7  ;;  %2336 = vmatpush.msra.mxu2 %v2281_v40  ;;  %v1912_v27 = vpop.f32.mrf.mxu1 }
 0x35a   : > { %v1949_v55 = vadd.f32 %v1904_v47, %v1588_v12  ;;  %3356 = vmatmul.msk.f32.gmra.mxu3 %vm5305_vm7, %v5310_v10  ;;  %v2192_v63 = vrot.slane %v2120_v19, 1  ;;  %vm5555_vm7 = vmand %vm688_vm13, %vm712_vm15  ;;  %v7296_v19 = vmov 0  ;;  %v1596_v47 = vpop.f32.mrf.mxu2  ;;  %v7302_v10 = vld [vmem:[#allocation68_spill] sm:$0xff]  ;;  %vm7304_vm13 = vnez %v7303_v11 }
 0x35b   : > { %v5546_v46 = vsel %vm7292_vm2, %v2143_v41, %v2144_v49  ;;  %v7297_v19 = vsel %vm5555_vm7, 4294967295, %v7296_v19  ;;  %vm689_vm15 = vcmp.ge.s32.totalorder %v665_v32, 0  ;;  %vm713_vm2 = vcmp.lt.s32.totalorder %v665_v32, 16 }
 0x35c   : > { %v1977_v15 = vadd.f32 %v5082_v24, %v1949_v55  ;;  %v5552_v14 = vsel %vm7294_vm1, %v2191_v33, %v2192_v63  ;;  %7298 = vst [vmem:[#allocation30_spill] sm:$0xff] %v7297_v19  ;;  %v1416_v33 = vadd.f32 %v7301_v4, %v7300_v28  ;;  %v1591_v55 = vadd.f32 %v5478_v38, %v1502_v62  ;;  %v7306_v62 = vld [vmem:[#allocation99_spill] sm:$0xff] }
 0x35d   : > { %7295 = vst [vmem:[#allocation33_spill] sm:$0xff] %v5552_v14  ;;  %v1728_v25 = vpop.f32.mrf.mxu3  ;;  %2532 = vmatmul.f32.gmra.mxu0 %v5552_v14  ;;  %v591_v14 = vshra.s32 %v7302_v10, 4  ;;  %v7308_v32 = vmov 0 }
 0x35e   : > { %v5560_v12 = vmax.f32 %v1977_v15, 0.0  ;;  %v1818_v41 = vadd.f32 %v5277_v6, %v1728_v25 }
 0x360   : > { %7299 = vst [vmem:[#allocation25_spill] sm:$0xff] %v5560_v12  ;;  %v1907_v48 = vadd.f32 %v1906_v16, %v1818_v41  ;;  %v2073_v37 = vsel %vm5555_vm7, %v5560_v12, 0.0  ;;  %v1505_v41 = vadd.f32 %v7306_v62, %v1416_v33  ;;  %v7312_v33 = vld [vmem:[#allocation40_spill] sm:$0xff]  ;;  %v7314_v62 = vld [vmem:[#allocation115_spill] sm:$0xff] }
 0x361   : > { %v2193_v15 = vrot.slane %v2073_v37, 1  ;;  %v2097_v6 = vsel %vm7304_vm13, %v2073_v37, 0.0  ;;  %v5585_v37 = vpop.f32.mrf.mxu0  ;;  %vm5588_vm13 = vmand %vm689_vm15, %vm713_vm2  ;;  %v592_v21 = vshra.s32 %v7314_v62, 4  ;;  %v7324_v62 = vld [vmem:[#allocation145_spill] sm:$0xff] }
 0x362   : > { %v1950_v25 = vadd.f32 %v1907_v48, %v1591_v55  ;;  %3357 = vmatmul.msk.f32.gmra.mxu3 %vm5339_vm11, %v5346_v7  ;;  %v2145_v38 = vrot.slane %v2097_v6, 7  ;;  %v7309_v32 = vsel %vm5588_vm13, 4294967295, %v7308_v32  ;;  %v7313_v55 = vld [vmem:[#allocation144_spill] sm:$0xff]  ;;  %v7315_v7 = vld [vmem:[#allocation111_spill] sm:$0xff] }
 0x363   : > { %v5577_v16 = vsel %vm7294_vm1, %v2192_v63, %v2193_v15  ;;  %7310 = vst [vmem:[#allocation89_spill] sm:$0xff] %v7309_v32  ;;  %v666_v63 = vadd.s32 %v5072_v3, %v591_v14  ;;  %v1419_v48 = vadd.f32 %v7313_v55, %v7312_v33  ;;  %v1599_v14 = vpop.f32.mrf.mxu2  ;;  %vm7317_vm1 = vcmp.lt.s32.totalorder %v7149_v34, 1 }
 0x364   : > { %7305 = vst [vmem:[#allocation108_spill] sm:$0xff] %v5577_v16  ;;  %v1978_v10 = vadd.f32 %v5082_v24, %v1950_v25  ;;  %v5583_v11 = vsel %vm7307_vm14, %v2144_v49, %v2145_v38  ;;  %v1594_v49 = vadd.f32 %v1593_v56, %v1505_v41  ;;  %vm7316_vm14 = vnez %v7315_v7  ;;  %v1915_v56 = vpop.f32.mrf.mxu1  ;;  %v7318_v41 = vld [vmem:[#allocation105_spill] sm:$0xff] }
 0x365   : > { %v1731_v40 = vpop.f32.mrf.mxu3  ;;  %2535 = vmatmul.f32.gmra.mxu0 %v5577_v16  ;;  %vm690_vm15 = vcmp.ge.s32.totalorder %v666_v63, 0  ;;  %vm714_vm2 = vcmp.lt.s32.totalorder %v666_v63, 16  ;;  %v2243_v63 = vld [vmem:[#allocation5 + $0x78] sm:$0xff]  ;;  %v667_v55 = vadd.s32 %v5072_v3, %v592_v21  ;;  %v7325_v21 = vld [vmem:[#allocation60_spill] sm:$0xff] }
 0x366   : > { %v5593_v28 = vmax.f32 %v1978_v10, 0.0  ;;  %v1821_v4 = vadd.f32 %v5321_v5, %v1731_v40  ;;  %v1508_v40 = vadd.f32 %v7318_v41, %v1419_v48  ;;  %2568 = vmatpush.msrb.mxu1 %v2243_v63 }
 0x368   : > { %7311 = vst [vmem:[#allocation87_spill] sm:$0xff] %v5593_v28  ;;  %v1910_v6 = vadd.f32 %v1909_v36, %v1821_v4  ;;  %v2074_v25 = vsel %vm5588_vm13, %v5593_v28, 0.0  ;;  %v1597_v41 = vadd.f32 %v1596_v47, %v1508_v40  ;;  %v2240_v40 = vld [vmem:[#allocation5 + $0x60] sm:$0xff] }
 0x369   : > { %v2122_v16 = vsel %vm7316_vm14, %v2074_v25, 0.0  ;;  %v2146_v59 = vrot.slane %v2074_v25, 7  ;;  %vm7319_vm14 = vcmp.lt.s32.totalorder %v7149_v34, 7  ;;  %v7323_v25 = vld [vmem:[#allocation112_spill] sm:$0xff] }
 0x36a   : > { %v1951_v10 = vadd.f32 %v1910_v6, %v1594_v49  ;;  %3358 = vmatmul.msk.f32.gmra.mxu3 %vm5377_vm4, %v5382_v22  ;;  %v2194_v5 = vrot.slane %v2122_v16, 1  ;;  %vm5618_vm4 = vmand %vm690_vm15, %vm714_vm2  ;;  %v7321_v16 = vmov 0  ;;  %v2280_v49 = vld [vmem:[#allocation5 + $0x198] sm:$0xff]  ;;  %v5626_v6 = vpop.f32.mrf.mxu0  ;;  %vm691_vm2 = vcmp.ge.s32.totalorder %v667_v55, 0 }
 0x36b   : > { %v5609_v36 = vsel %vm7317_vm1, %v2145_v38, %v2146_v59  ;;  %v7322_v16 = vsel %vm5618_vm4, 4294967295, %v7321_v16  ;;  %2337 = vmatpush.msra.mxu2 %v2280_v49  ;;  %vm715_vm1 = vcmp.lt.s32.totalorder %v667_v55, 16  ;;  %v7329_v49 = vld [vmem:[#allocation31_spill] sm:$0xff]  ;;  %v7331_v55 = vmov 0 }
 0x36c   : > { %v1979_v7 = vadd.f32 %v5082_v24, %v1951_v10  ;;  %v5615_v4 = vsel %vm7319_vm14, %v2193_v15, %v2194_v5  ;;  %v2242_v15 = vld [vmem:[#allocation5 + $0x70] sm:$0xff]  ;;  %v1422_v10 = vadd.f32 %v7324_v62, %v7323_v25 }
 0x36d   : > { %7320 = vst [vmem:[#allocation24_spill] sm:$0xff] %v5615_v4  ;;  %v1734_v33 = vpop.f32.mrf.mxu3  ;;  %2538 = vmatmul.f32.gmra.mxu0 %v5615_v4  ;;  %2569 = vmatpush.msrb.mxu1 %v2242_v15 }
 0x36e   : > { %v5623_v38 = vmax.f32 %v1979_v7, 0.0  ;;  %v1824_v48 = vadd.f32 %v5364_v54, %v1734_v33  ;;  %v593_v7 = vshra.s32 %v7325_v21, 4  ;;  %v2241_v54 = vld [vmem:[#allocation5 + $0x68] sm:$0xff]  ;;  %v7326_v33 = vld [vmem:[#allocation74_spill] sm:$0xff]  ;;  %v1511_v15 = vadd.f32 %v7329_v49, %v1422_v10  ;;  %v2279_v10 = vld [vmem:[#allocation5 + $0x190] sm:$0xff] }
 0x36f   : > { %vm7327_vm15 = vnez %v7326_v33  ;;  %2570 = vmatpush.msrb.mxu1 %v2241_v54  ;;  %2338 = vmatpush.msra.mxu2 %v2279_v10  ;;  %v7333_v54 = vld [vmem:[#allocation43_spill] sm:$0xff]  ;;  %v7334_v33 = vld [vmem:[#allocation146_spill] sm:$0xff] }
 0x370   : > { %v1913_v23 = vadd.f32 %v1912_v27, %v1824_v48  ;;  %v2075_v22 = vsel %vm5618_vm4, %v5623_v38, 0.0  ;;  %v1602_v48 = vpop.f32.mrf.mxu2 }
 0x371   : > { %v2195_v4 = vrot.slane %v2075_v22, 1  ;;  %v2099_v63 = vsel %vm7327_vm15, %v2075_v22, 0.0  ;;  %2571 = vmatpush.msrb.mxu1 %v2240_v40  ;;  %vm7330_vm15 = vcmp.lt.s32.totalorder %v7149_v34, 1  ;;  %v1918_v22 = vpop.f32.mrf.mxu1  ;;  %v1600_v40 = vadd.f32 %v1599_v14, %v1511_v15  ;;  %v7339_v15 = vld [vmem:[#allocation102_spill] sm:$0xff] }
 0x372   : > { %v1952_v8 = vadd.f32 %v1913_v23, %v1597_v41  ;;  %3359 = vmatmul.msk.f32.gmra.mxu3 %vm5415_vm3, %v5420_v9  ;;  %v2147_v47 = vrot.slane %v2099_v63, 7  ;;  %vm5650_vm3 = vmand %vm691_vm2, %vm715_vm1  ;;  %v668_v41 = vadd.s32 %v5072_v3, %v593_v7  ;;  %v1425_v63 = vadd.f32 %v7334_v33, %v7333_v54  ;;  %v7335_v9 = vld [vmem:[#allocation122_spill] sm:$0xff] }
 0x373   : > { %v5641_v27 = vsel %vm7319_vm14, %v2194_v5, %v2195_v4  ;;  %v7332_v55 = vsel %vm5650_vm3, 4294967295, %v7331_v55  ;;  %v2239_v5 = vld [vmem:[#allocation5 + $0x58] sm:$0xff]  ;;  %v594_v7 = vshra.s32 %v7335_v9, 4 }
 0x374   : > { %7328 = vst [vmem:[#allocation113_spill] sm:$0xff] %v5641_v27  ;;  %v1980_v25 = vadd.f32 %v5082_v24, %v1952_v8  ;;  %v5647_v23 = vsel %vm7330_vm15, %v2146_v59, %v2147_v47  ;;  %2572 = vmatpush.msrb.mxu1 %v2239_v5  ;;  %v2238_v59 = vld [vmem:[#allocation5 + $0x50] sm:$0xff]  ;;  %vm692_vm1 = vcmp.ge.s32.totalorder %v668_v41, 0  ;;  %vm716_vm14 = vcmp.lt.s32.totalorder %v668_v41, 16  ;;  %v2235_v54 = vld [vmem:[#allocation5 + $0x38] sm:$0xff] }
 0x375   : > { %v1737_v62 = vpop.f32.mrf.mxu3  ;;  %2541 = vmatmul.f32.gmra.mxu0 %v5641_v27  ;;  %v7336_v27 = vld [vmem:[#allocation119_spill] sm:$0xff]  ;;  %v7342_v41 = vmov 0 }
 0x376   : > { %v5655_v21 = vmax.f32 %v1980_v25, 0.0  ;;  %v1827_v8 = vadd.f32 %v5412_v42, %v1737_v62  ;;  %2573 = vmatpush.msrb.mxu1 %v2238_v59  ;;  %v5664_v25 = vpop.f32.mrf.mxu0  ;;  %vm7337_vm2 = vnez %v7336_v27  ;;  %v2237_v62 = vld [vmem:[#allocation5 + $0x48] sm:$0xff] }
 0x378   : > { %v1916_v49 = vadd.f32 %v1915_v56, %v1827_v8  ;;  %v2076_v53 = vsel %vm5650_vm3, %v5655_v21, 0.0  ;;  %2574 = vmatpush.msrb.mxu1 %v2237_v62  ;;  %v2236_v56 = vld [vmem:[#allocation5 + $0x40] sm:$0xff]  ;;  %v1514_v8 = vadd.f32 %v7339_v15, %v1425_v63  ;;  %v1605_v33 = vpop.f32.mrf.mxu2 }
 0x379   : > { %v2124_v42 = vsel %vm7337_vm2, %v2076_v53, 0.0  ;;  %v2148_v5 = vrot.slane %v2076_v53, 7  ;;  %vm7340_vm2 = vcmp.lt.s32.totalorder %v7149_v34, 7  ;;  %v1921_v63 = vpop.f32.mrf.mxu1 }
 0x37a   : > { %v1953_v10 = vadd.f32 %v1916_v49, %v1600_v40  ;;  %3360 = vmatmul.msk.f32.gmra.mxu3 %vm5451_vm8, %v5456_v0  ;;  %v2196_v14 = vrot.slane %v2124_v42, 1  ;;  %2575 = vmatpush.msrb.mxu1 %v2236_v56  ;;  %vm5682_vm8 = vmand %vm692_vm1, %vm716_vm14  ;;  %v7345_v49 = vld [vmem:[#allocation116_spill] sm:$0xff]  ;;  %v7346_v42 = vld [vmem:[#allocation147_spill] sm:$0xff] }
 0x37b   : > { %v5673_v9 = vsel %vm7330_vm15, %v2147_v47, %v2148_v5  ;;  %v7343_v41 = vsel %vm5682_vm8, 4294967295, %v7342_v41  ;;  %v669_v47 = vadd.s32 %v5072_v3, %v594_v7  ;;  %v1428_v62 = vadd.f32 %v7346_v42, %v7345_v49 }
 0x37c   : > { %7338 = vst [vmem:[#allocation39_spill] sm:$0xff] %v5673_v9  ;;  %v1981_v27 = vadd.f32 %v5082_v24, %v1953_v10  ;;  %v5679_v53 = vsel %vm7340_vm2, %v2195_v4, %v2196_v14  ;;  %2576 = vmatpush.msrb.mxu1 %v2235_v54  ;;  %v2234_v4 = vld [vmem:[#allocation5 + $0x30] sm:$0xff]  ;;  %v1603_v10 = vadd.f32 %v1602_v48, %v1514_v8  ;;  %v595_v7 = vshra.s32 %v7347_v44, 4  ;;  %v2232_v44 = vld [vmem:[#allocation5 + $0x20] sm:$0xff] }
 0x37d   : > { %7341 = vst [vmem:[#allocation36_spill] sm:$0xff] %v5679_v53  ;;  %v1740_v59 = vpop.f32.mrf.mxu3  ;;  %2544 = vmatmul.f32.gmra.mxu0 %v5679_v53  ;;  %v2233_v53 = vld [vmem:[#allocation5 + $0x28] sm:$0xff]  ;;  %v7348_v9 = vld [vmem:[#allocation65_spill] sm:$0xff]  ;;  %vm693_vm14 = vcmp.ge.s32.totalorder %v669_v47, 0  ;;  %vm717_vm15 = vcmp.lt.s32.totalorder %v669_v47, 16 }
 0x37e   : > { %7344 = vst [vmem:[#allocation28_spill] sm:$0xff] %v7343_v41  ;;  %v5687_v40 = vmax.f32 %v1981_v27, 0.0  ;;  %v1830_v24 = vadd.f32 %v5459_v61, %v1740_v59  ;;  %2577 = vmatpush.msrb.mxu1 %v2234_v4  ;;  %vm7349_vm1 = vnez %v7348_v9  ;;  %v5709_v9 = vld [vmem:[%s6625_s3] ss:$0 sm:$0xff]  ;;  %v670_v4 = vadd.s32 %v5072_v3, %v595_v7  ;;  %v2245_v41 = vld [vmem:[#allocation5 + $0x88] sm:$0xff] }
 0x380   : > { %v1919_v56 = vadd.f32 %v1918_v22, %v1830_v24  ;;  %v2077_v15 = vsel %vm5682_vm8, %v5687_v40, 0.0  ;;  %2578 = vmatpush.msrb.mxu1 %v2233_v53  ;;  %v2231_v24 = vld [vmem:[#allocation5 + $0x18] sm:$0xff] }
 0x381   : > { %v2504_v0 = vpop.f32.mrf.mxu0  ;;  %v2197_v27 = vrot.slane %v2077_v15, 1  ;;  %v2101_v61 = vsel %vm7349_vm1, %v2077_v15, 0.0  ;;  %vm7352_vm1 = vcmp.lt.s32.totalorder %v7149_v34, 1  ;;  %v7357_v15 = vld [vmem:[#allocation128_spill] sm:$0xff] }
 0x382   : > { %v1954_v59 = vadd.f32 %v1919_v56, %v1603_v10  ;;  %3361 = vmatmul.msk.f32.gmra.mxu3 %vm5487_vm9, %v5492_v58  ;;  %v2149_v48 = vrot.slane %v2101_v61, 7  ;;  %v7351_v0 = vld [vmem:[#allocation110_spill] sm:$0xff]  ;;  %2579 = vmatpush.msrb.mxu1 %v2232_v44  ;;  %v1608_v56 = vpop.f32.mrf.mxu2  ;;  %v7358_v61 = vld [vmem:[#allocation148_spill] sm:$0xff]  ;;  %vm7362_vm9 = vcmp.lt.s32.totalorder %v7149_v34, 1 }
 0x383   : > { %v5703_v22 = vsel %vm7340_vm2, %v2196_v14, %v2197_v27  ;;  %v1517_v8 = vadd.f32 %v7351_v0, %v1428_v62  ;;  %vm5717_vm2 = vmand %vm693_vm14, %vm717_vm15  ;;  %v7353_v14 = vmov 0  ;;  %v2278_v62 = vld [vmem:[#allocation5 + $0x188] sm:$0xff]  ;;  %v2827_v10 = vld [vmem:[#allocation5 + $0x378] sm:$0xff]  ;;  %vm694_vm15 = vcmp.ge.s32.totalorder %v670_v4, 0 }
 0x384   : > { %7350 = vst [vmem:[#allocation117_spill] sm:$0xff] %v5703_v22  ;;  %v1982_v54 = vadd.f32 %v5709_v9, %v1954_v59  ;;  %v5714_v47 = vsel %vm7352_vm1, %v2148_v5, %v2149_v48  ;;  %v7354_v14 = vsel %vm5717_vm2, 4294967295, %v7353_v14  ;;  %2580 = vmatpush.msrb.mxu1 %v2231_v24  ;;  %2339 = vmatpush.msra.mxu2 %v2278_v62  ;;  %v2230_v5 = vld [vmem:[#allocation5 + $0x10] sm:$0xff]  ;;  %vm718_vm1 = vcmp.lt.s32.totalorder %v670_v4, 16 }
 0x385   : > { %v1743_v53 = vpop.f32.mrf.mxu3  ;;  %2547 = vmatmul.f32.gmra.mxu0 %v5703_v22  ;;  %7355 = vst [vmem:[#allocation93_spill] sm:$0xff] %v7354_v14  ;;  %v1431_v59 = vadd.f32 %v7358_v61, %v7357_v15  ;;  %v1606_v44 = vadd.f32 %v1605_v33, %v1517_v8  ;;  %v7360_v24 = vld [vmem:[#allocation125_spill] sm:$0xff]  ;;  %v2825_v8 = vld [vmem:[#allocation5 + $0x368] sm:$0xff]  ;;  %v7366_v4 = vmov 0 }
 0x386   : > { %v5722_v49 = vmax.f32 %v1982_v54, 0.0  ;;  %v1833_v42 = vadd.f32 %v5503_v18, %v1743_v53  ;;  %2860 = vmatpush.msra.mxu0 %v2827_v10  ;;  %2581 = vmatpush.msrb.mxu1 %v2230_v5  ;;  %v2826_v54 = vld [vmem:[#allocation5 + $0x370] sm:$0xff]  ;;  %v596_v18 = vshra.s32 %v7359_v1, 4  ;;  %v1924_v53 = vpop.f32.mrf.mxu1  ;;  %vm7361_vm14 = vnez %v7360_v24  ;;  %v2229_v10 = vld [vmem:[#allocation5 + $0x8] sm:$0xff]  ;;  %v2228_v1 = vld [vmem:[#allocation5] sm:$0xff] }
 0x387   : > { %v7363_v5 = vld [vmem:[#allocation106_spill] sm:$0xff]  ;;  %v2246_v14 = vld [vmem:[#allocation5 + $0x90] sm:$0xff] }
 0x388   : > { %7356 = vst [vmem:[#allocation91_spill] sm:$0xff] %v5722_v49  ;;  %v1922_v0 = vadd.f32 %v1921_v63, %v1833_v42  ;;  %v2078_v7 = vsel %vm5717_vm2, %v5722_v49, 0.0  ;;  %2861 = vmatpush.msra.mxu0 %v2826_v54  ;;  %2582 = vmatpush.msrb.mxu1 %v2229_v10  ;;  %v1520_v15 = vadd.f32 %v7363_v5, %v1431_v59  ;;  %v2823_v24 = vld [vmem:[#allocation5 + $0x358] sm:$0xff]  ;;  %v7371_v10 = vld [vmem:[#allocation149_spill] sm:$0xff] }
 0x389   : > { %v2126_v62 = vsel %vm7361_vm14, %v2078_v7, 0.0  ;;  %v2150_v58 = vrot.slane %v2078_v7, 7  ;;  %vm7364_vm14 = vcmp.lt.s32.totalorder %v7149_v34, 7 }
 0x38a   : > { %v1955_v22 = vadd.f32 %v1922_v0, %v1606_v44  ;;  %3362 = vmatmul.msk.f32.gmra.mxu3 %vm5521_vm10, %v5526_v43  ;;  %v2506_v33 = vpop.f32.mrf.mxu0  ;;  %v2198_v63 = vrot.slane %v2126_v62, 1  ;;  %2862 = vmatpush.msra.mxu0 %v2825_v8  ;;  %v2824_v0 = vld [vmem:[#allocation5 + $0x360] sm:$0xff]  ;;  %vm5747_vm10 = vmand %vm694_vm15, %vm718_vm1  ;;  %v7370_v62 = vld [vmem:[#allocation46_spill] sm:$0xff]  ;;  %v1609_v8 = vadd.f32 %v1608_v56, %v1520_v15 }
 0x38b   : > { %v5738_v42 = vsel %vm7362_vm9, %v2149_v48, %v2150_v58  ;;  %2583 = vmatpush.msrb.mxu1 %v2228_v1  ;;  %v7367_v4 = vsel %vm5747_vm10, 4294967295, %v7366_v4  ;;  %v671_v48 = vadd.s32 %v5072_v3, %v596_v18  ;;  %v1434_v33 = vadd.f32 %v7371_v10, %v7370_v62  ;;  %v7372_v18 = vld [vmem:[#allocation16_spill] sm:$0xff]  ;;  %v7373_v43 = vld [vmem:[#allocation77_spill] sm:$0xff] }
 0x38c   : > { %v1983_v61 = vadd.f32 %v5709_v9, %v1955_v22  ;;  %v5744_v44 = vsel %vm7364_vm14, %v2197_v27, %v2198_v63  ;;  %7368 = vst [vmem:[#allocation45_spill] sm:$0xff] %v7367_v4  ;;  %v2277_v22 = vld [vmem:[#allocation5 + $0x180] sm:$0xff]  ;;  %2863 = vmatpush.msra.mxu0 %v2824_v0  ;;  %v2822_v27 = vld [vmem:[#allocation5 + $0x350] sm:$0xff]  ;;  %vm7374_vm9 = vnez %v7373_v43  ;;  %v1611_v0 = vpop.f32.mrf.mxu2  ;;  %v2821_v56 = vld [vmem:[#allocation5 + $0x348] sm:$0xff] }
 0x38d   : > { %7365 = vst [vmem:[#allocation121_spill] sm:$0xff] %v5744_v44  ;;  %v1746_v7 = vpop.f32.mrf.mxu3  ;;  %2550 = vmatmul.f32.gmra.mxu0 %v5744_v44  ;;  %2340 = vmatpush.msra.mxu2 %v2277_v22  ;;  %vm695_vm15 = vcmp.ge.s32.totalorder %v671_v48, 0  ;;  %vm719_vm1 = vcmp.lt.s32.totalorder %v671_v48, 16  ;;  %v7376_v43 = vld [vmem:[#allocation37_spill] sm:$0xff]  ;;  %v7378_v48 = vmov 0 }
 0x38e   : > { %v5752_v54 = vmax.f32 %v1983_v61, 0.0  ;;  %v1836_v59 = vadd.f32 %v5542_v51, %v1746_v7  ;;  %2864 = vmatpush.msra.mxu0 %v2823_v24  ;;  %v597_v61 = vshra.s32 %v7372_v18, 4  ;;  %v1927_v15 = vpop.f32.mrf.mxu1  ;;  %v2820_v24 = vld [vmem:[#allocation5 + $0x340] sm:$0xff]  ;;  %v1523_v62 = vadd.f32 %v7376_v43, %v1434_v33  ;;  %v2819_v18 = vld [vmem:[#allocation5 + $0x338] sm:$0xff] }
 0x390   : > { %7369 = vst [vmem:[#allocation42_spill] sm:$0xff] %v5752_v54  ;;  %v1925_v1 = vadd.f32 %v1924_v53, %v1836_v59  ;;  %v2079_v5 = vsel %vm5747_vm10, %v5752_v54, 0.0  ;;  %2865 = vmatpush.msra.mxu0 %v2822_v27 }
 0x391   : > { %v2199_v60 = vrot.slane %v2079_v5, 1  ;;  %v2103_v51 = vsel %vm7374_vm9, %v2079_v5, 0.0  ;;  %vm7377_vm9 = vcmp.lt.s32.totalorder %v7149_v34, 1  ;;  %v2259_v5 = vld [vmem:[#allocation5 + $0xf8] sm:$0xff] }
 0x392   : > { %v1956_v7 = vadd.f32 %v1925_v1, %v1609_v8  ;;  %3363 = vmatmul.msk.f32.gmra.mxu3 %vm5555_vm7, %v5560_v12  ;;  %v2508_v22 = vpop.f32.mrf.mxu0  ;;  %v2151_v53 = vrot.slane %v2103_v51, 7  ;;  %2866 = vmatpush.msra.mxu0 %v2821_v56  ;;  %vm5777_vm7 = vmand %vm695_vm15, %vm719_vm1  ;;  %v2818_v51 = vld [vmem:[#allocation5 + $0x330] sm:$0xff]  ;;  %v1612_v56 = vadd.f32 %v1611_v0, %v1523_v62  ;;  %v7385_v12 = vld [vmem:[#allocation134_spill] sm:$0xff] }
 0x393   : > { %v5768_v59 = vsel %vm7364_vm14, %v2198_v63, %v2199_v60  ;;  %v7379_v48 = vsel %vm5777_vm7, 4294967295, %v7378_v48  ;;  %v672_v63 = vadd.s32 %v5072_v3, %v597_v61  ;;  %2649 = vmatpush.msrb.mxu2 %v2259_v5  ;;  %v7384_v61 = vld [vmem:[#allocation57_spill] sm:$0xff]  ;;  %vm7386_vm15 = vnez %v7385_v12  ;;  %v2817_v0 = vld [vmem:[#allocation5 + $0x328] sm:$0xff]  ;;  %v7387_v12 = vld [vmem:[#allocation118_spill] sm:$0xff] }
 0x394   : > { %7375 = vst [vmem:[#allocation126_spill] sm:$0xff] %v5768_v59  ;;  %v1984_v10 = vadd.f32 %v5709_v9, %v1956_v7  ;;  %v5774_v8 = vsel %vm7377_vm9, %v2150_v58, %v2151_v53  ;;  %2867 = vmatpush.msra.mxu0 %v2820_v24  ;;  %v7382_v58 = vld [vmem:[#allocation120_spill] sm:$0xff]  ;;  %v7383_v7 = vld [vmem:[#allocation150_spill] sm:$0xff] }
 0x395   : > { %v1749_v1 = vpop.f32.mrf.mxu3  ;;  %2553 = vmatmul.f32.gmra.mxu0 %v5768_v59  ;;  %7380 = vst [vmem:[#allocation96_spill] sm:$0xff] %v7379_v48  ;;  %v1437_v22 = vadd.f32 %v7383_v7, %v7382_v58  ;;  %vm696_vm1 = vcmp.ge.s32.totalorder %v672_v63, 0  ;;  %vm720_vm14 = vcmp.lt.s32.totalorder %v672_v63, 16  ;;  %v7390_v63 = vmov 0 }
 0x396   : > { %v5782_v27 = vmax.f32 %v1984_v10, 0.0  ;;  %v1839_v33 = vadd.f32 %v5585_v37, %v1749_v1  ;;  %2868 = vmatpush.msra.mxu0 %v2819_v18  ;;  %v598_v10 = vshra.s32 %v7384_v61, 4  ;;  %v2815_v61 = vld [vmem:[#allocation5 + $0x318] sm:$0xff] }
 0x397   : > { %v1526_v18 = vadd.f32 %v7387_v12, %v1437_v22 }
 0x398   : > { %7381 = vst [vmem:[#allocation94_spill] sm:$0xff] %v5782_v27  ;;  %v1928_v43 = vadd.f32 %v1927_v15, %v1839_v33  ;;  %v2080_v19 = vsel %vm5777_vm7, %v5782_v27, 0.0  ;;  %2869 = vmatpush.msra.mxu0 %v2818_v51  ;;  %v2816_v15 = vld [vmem:[#allocation5 + $0x320] sm:$0xff]  ;;  %v1614_v33 = vpop.f32.mrf.mxu2 }
 0x399   : > { %v2128_v37 = vsel %vm7386_vm15, %v2080_v19, 0.0  ;;  %v2152_v24 = vrot.slane %v2080_v19, 7  ;;  %vm7388_vm15 = vcmp.lt.s32.totalorder %v7149_v34, 7  ;;  %v1615_v12 = vadd.f32 %v1614_v33, %v1526_v18 }
 0x39a   : > { %v1957_v1 = vadd.f32 %v1928_v43, %v1612_v56  ;;  %3364 = vmatmul.msk.f32.gmra.mxu3 %vm5588_vm13, %v5593_v28  ;;  %v2510_v5 = vpop.f32.mrf.mxu0  ;;  %v2200_v58 = vrot.slane %v2128_v37, 1  ;;  %2870 = vmatpush.msra.mxu0 %v2817_v0  ;;  %v1930_v56 = vpop.f32.mrf.mxu1  ;;  %vm5807_vm13 = vmand %vm696_vm1, %vm720_vm14  ;;  %v2258_v37 = vld [vmem:[#allocation5 + $0xf0] sm:$0xff] }
 0x39b   : > { %v5798_v62 = vsel %vm7377_vm9, %v2151_v53, %v2152_v24  ;;  %v7391_v63 = vsel %vm5807_vm13, 4294967295, %v7390_v63  ;;  %v673_v53 = vadd.s32 %v5072_v3, %v598_v10  ;;  %2650 = vmatpush.msrb.mxu2 %v2258_v37  ;;  %v7395_v5 = vld [vmem:[#allocation151_spill] sm:$0xff]  ;;  %v7396_v10 = vld [vmem:[#allocation18_spill] sm:$0xff] }
 0x39c   : > { %v1985_v19 = vadd.f32 %v5709_v9, %v1957_v1  ;;  %v5804_v7 = vsel %vm7388_vm15, %v2199_v60, %v2200_v58  ;;  %7392 = vst [vmem:[#allocation51_spill] sm:$0xff] %v7391_v63  ;;  %2871 = vmatpush.msra.mxu0 %v2816_v15  ;;  %v2814_v60 = vld [vmem:[#allocation5 + $0x310] sm:$0xff]  ;;  %v7394_v1 = vld [vmem:[#allocation132_spill] sm:$0xff] }
 0x39d   : > { %7389 = vst [vmem:[#allocation131_spill] sm:$0xff] %v5804_v7  ;;  %v1752_v43 = vpop.f32.mrf.mxu3  ;;  %2556 = vmatmul.f32.gmra.mxu0 %v5804_v7  ;;  %v1440_v0 = vadd.f32 %v7395_v5, %v7394_v1  ;;  %v7397_v7 = vld [vmem:[#allocation17_spill] sm:$0xff]  ;;  %vm697_vm14 = vcmp.ge.s32.totalorder %v673_v53, 0  ;;  %vm721_vm9 = vcmp.lt.s32.totalorder %v673_v53, 16 }
 0x39e   : > { %v5812_v51 = vmax.f32 %v1985_v19, 0.0  ;;  %v1842_v22 = vadd.f32 %v5626_v6, %v1752_v43  ;;  %2872 = vmatpush.msra.mxu0 %v2815_v61  ;;  %v599_v19 = vshra.s32 %v7396_v10, 4  ;;  %vm7398_vm1 = vnez %v7397_v7  ;;  %v2812_v61 = vld [vmem:[#allocation5 + $0x300] sm:$0xff] }
 0x39f   : > { %v7399_v7 = vld [vmem:[#allocation123_spill] sm:$0xff] }
 0x3a0   : > { %7393 = vst [vmem:[#allocation48_spill] sm:$0xff] %v5812_v51  ;;  %v1931_v32 = vadd.f32 %v1930_v56, %v1842_v22  ;;  %v2081_v28 = vsel %vm5807_vm13, %v5812_v51, 0.0  ;;  %2873 = vmatpush.msra.mxu0 %v2814_v60  ;;  %v2813_v56 = vld [vmem:[#allocation5 + $0x308] sm:$0xff]  ;;  %v1529_v37 = vadd.f32 %v7399_v7, %v1440_v0 }
 0x3a1   : > { %v2105_v6 = vsel %vm7398_vm1, %v2081_v28, 0.0  ;;  %v2201_v15 = vrot.slane %v2081_v28, 1  ;;  %vm7400_vm1 = vcmp.lt.s32.totalorder %v7149_v34, 1 }
 0x3a2   : > { %v1958_v43 = vadd.f32 %v1931_v32, %v1615_v12  ;;  %3365 = vmatmul.msk.f32.gmra.mxu3 %vm5618_vm4, %v5623_v38  ;;  %v5826_v33 = vpop.f32.mrf.mxu0  ;;  %v2153_v18 = vrot.slane %v2105_v6, 7  ;;  %2874 = vmatpush.msra.mxu0 %v2813_v56  ;;  %vm5841_vm4 = vmand %vm697_vm14, %vm721_vm9  ;;  %v1617_v12 = vpop.f32.mrf.mxu2  ;;  %v7403_v56 = vld [vmem:[#allocation62_spill] sm:$0xff] }
 0x3a3   : > { %v5830_v22 = vsel %vm7388_vm15, %v2200_v58, %v2201_v15  ;;  %v674_v58 = vadd.s32 %v5072_v3, %v599_v19  ;;  %v1933_v10 = vpop.f32.mrf.mxu1  ;;  %vm7404_vm14 = vnez %v7403_v56 }
 0x3a4   : > { %v1986_v28 = vadd.f32 %v5709_v9, %v1958_v43  ;;  %v5836_v32 = vsel %vm7400_vm1, %v2152_v24, %v2153_v18  ;;  %2875 = vmatpush.msra.mxu0 %v2812_v61  ;;  %v1618_v24 = vadd.f32 %v1617_v12, %v1529_v37  ;;  %v2275_v61 = vld [vmem:[#allocation5 + $0x178] sm:$0xff]  ;;  %v2274_v12 = vld [vmem:[#allocation5 + $0x170] sm:$0xff] }
 0x3a5   : > { %v1755_v1 = vpop.f32.mrf.mxu3  ;;  %2559 = vmatmul.f32.gmra.mxu0 %v5830_v22  ;;  %vm698_vm9 = vcmp.ge.s32.totalorder %v674_v58, 0  ;;  %vm722_vm15 = vcmp.lt.s32.totalorder %v674_v58, 16  ;;  %2730 = vmatpush.msra.mxu3 %v2275_v61 }
 0x3a6   : > { %v5846_v5 = vmax.f32 %v1986_v28, 0.0  ;;  %v1845_v0 = vadd.f32 %v5664_v25, %v1755_v1 }
 0x3a7   : > { %2731 = vmatpush.msra.mxu3 %v2274_v12 }
 0x3a8   : > { %v1934_v6 = vadd.f32 %v1933_v10, %v1845_v0  ;;  %v2082_v43 = vsel %vm5841_vm4, %v5846_v5, 0.0 }
 0x3a9   : > { %v2154_v53 = vrot.slane %v2082_v43, 7  ;;  %v2130_v7 = vsel %vm7404_vm14, %v2082_v43, 0.0  ;;  %vm7405_vm14 = vcmp.lt.s32.totalorder %v7149_v34, 7 }
 0x3aa   : > { %v1959_v3 = vadd.f32 %v1934_v6, %v1618_v24  ;;  %3366 = vmatmul.msk.f32.gmra.mxu3 %vm5650_vm3, %v5655_v21  ;;  %v5857_v25 = vpop.f32.mrf.mxu0  ;;  %v2202_v19 = vrot.slane %v2130_v7, 1  ;;  %vm5870_vm3 = vmand %vm698_vm9, %vm722_vm15  ;;  %v2273_v24 = vld [vmem:[#allocation5 + $0x168] sm:$0xff]  ;;  %vm7414_vm15 = vcmp.lt.s32.totalorder %v7149_v34, 1 }
 0x3ab   : > { %v5861_v37 = vsel %vm7400_vm1, %v2153_v18, %v2154_v53  ;;  %v2257_v18 = vld [vmem:[#allocation5 + $0xe8] sm:$0xff]  ;;  %2732 = vmatpush.msra.mxu3 %v2273_v24  ;;  %vm7410_vm9 = vmmov %vm7405_vm14 }
 0x3ac   : > { %v1987_v28 = vadd.f32 %v5709_v9, %v1959_v3  ;;  %2584 = vmatmul.f32.vlgmr.msrb.gmra.mxu1 %v5861_v37  ;;  %v5867_v1 = vsel %vm7405_vm14, %v2201_v15, %v2202_v19  ;;  %2651 = vmatpush.msrb.mxu2 %v2257_v18  ;;  %v2272_v15 = vld [vmem:[#allocation5 + $0x160] sm:$0xff]  ;;  %v7408_v6 = vld [vmem:[#allocation20_spill] sm:$0xff]  ;;  %vm7415_vm14 = vmmov %vm7414_vm15 }
 0x3ad   : > { %v2423_v58 = vpop.f32.mrf.mxu3  ;;  %2561 = vmatmul.f32.gmra.mxu0 %v5867_v1  ;;  %vm7409_vm1 = vnez %v7408_v6  ;;  %2733 = vmatpush.msra.mxu3 %v2272_v15  ;;  %v2270_v6 = vld [vmem:[#allocation5 + $0x150] sm:$0xff]  ;;  %v2269_v15 = vld [vmem:[#allocation5 + $0x148] sm:$0xff] }
 0x3ae   : > { %v5874_v10 = vmax.f32 %v1987_v28, 0.0  ;;  %v2271_v28 = vld [vmem:[#allocation5 + $0x158] sm:$0xff]  ;;  %v7412_v58 = vld [vmem:[#allocation136_spill] sm:$0xff] }
 0x3af   : > { %v7413_v12 = vrot.slane %v7412_v58, 7  ;;  %2734 = vmatpush.msra.mxu3 %v2271_v28  ;;  %v2265_v34 = vld [vmem:[#allocation5 + $0x128] sm:$0xff] }
 0x3b0   : > { %v2083_v9 = vsel %vm5870_vm3, %v5874_v10, 0.0 }
 0x3b1   : > { %v2107_v43 = vsel %vm7409_vm1, %v2083_v9, 0.0  ;;  %v2203_v56 = vrot.slane %v2083_v9, 1  ;;  %2735 = vmatpush.msra.mxu3 %v2270_v6  ;;  %vm7417_vm1 = vmmov %vm7410_vm9  ;;  %v2266_v6 = vld [vmem:[#allocation5 + $0x130] sm:$0xff] }
 0x3b2   : > { %3367 = vmatmul.msk.f32.gmra.mxu3 %vm5682_vm8, %v5687_v40  ;;  %v5884_v7 = vpop.f32.mrf.mxu0  ;;  %v2155_v3 = vrot.slane %v2107_v43, 7 }
 0x3b3   : > { %v5888_v61 = vsel %vm7410_vm9, %v2202_v19, %v2203_v56  ;;  %v2256_v19 = vld [vmem:[#allocation5 + $0xe0] sm:$0xff]  ;;  %2736 = vmatpush.msra.mxu3 %v2269_v15 }
 0x3b4   : > { %7411 = vst [vmem:[#allocation135_spill] sm:$0xff] %v5888_v61  ;;  %v5894_v18 = vsel %vm7414_vm15, %v2155_v3, %v7413_v12  ;;  %v5898_v24 = vsel %vm7415_vm14, %v2154_v53, %v2155_v3  ;;  %2652 = vmatpush.msrb.mxu2 %v2256_v19  ;;  %v2268_v53 = vld [vmem:[#allocation5 + $0x140] sm:$0xff]  ;;  %v7419_v12 = vld [vmem:[#allocation129_spill] sm:$0xff] }
 0x3b5   : > { %2341 = vmatmul.f32.vlgmr.msra.gmra.mxu2 %v5894_v18  ;;  %v2425_v9 = vpop.f32.mrf.mxu3  ;;  %2563 = vmatmul.f32.gmra.mxu0 %v5888_v61  ;;  %v7416_v3 = vld [vmem:[#allocation139_spill] sm:$0xff] }
 0x3b6   : > { %2586 = vmatmul.f32.gmra.mxu1 %v5898_v24  ;;  %v5911_v58 = vsel %vm7417_vm1, %v2203_v56, %v7416_v3  ;;  %v2267_v9 = vld [vmem:[#allocation5 + $0x138] sm:$0xff]  ;;  %2737 = vmatpush.msra.mxu3 %v2268_v53  ;;  %v2264_v15 = vld [vmem:[#allocation5 + $0x120] sm:$0xff] }
 0x3b7   : > { %7418 = vst [vmem:[#allocation101_spill] sm:$0xff] %v5911_v58  ;;  %v2255_v53 = vld [vmem:[#allocation5 + $0xd8] sm:$0xff] }
 0x3b8   : > { %2738 = vmatpush.msra.mxu3 %v2267_v9  ;;  %2653 = vmatpush.msrb.mxu2 %v2255_v53  ;;  %v2263_v3 = vld [vmem:[#allocation5 + $0x118] sm:$0xff]  ;;  %v2262_v9 = vld [vmem:[#allocation5 + $0x110] sm:$0xff] }
 0x3ba   : > { %3368 = vmatmul.msk.f32.gmra.mxu3 %vm5717_vm2, %v5722_v49  ;;  %v5906_v43 = vpop.f32.mrf.mxu0 }
 0x3bb   : > { %2739 = vmatpush.msra.mxu3 %v2266_v6 }
 0x3bd   : > { %2343 = vmatmul.f32.gmra.mxu2 %v7419_v12  ;;  %v2427_v28 = vpop.f32.mrf.mxu3  ;;  %2565 = vmatmul.f32.gmra.mxu0 %v5911_v58 }
 0x3be   : > { %2588 = vmatmul.f32.gmra.mxu1 %v5894_v18  ;;  %2740 = vmatpush.msra.mxu3 %v2265_v34  ;;  %v2254_v34 = vld [vmem:[#allocation5 + $0xd0] sm:$0xff] }
 0x3bf   : > { %2654 = vmatpush.msrb.mxu2 %v2254_v34 }
 0x3c0   : > { %2741 = vmatpush.msra.mxu3 %v2264_v15  ;;  %v2260_v15 = vld [vmem:[#allocation5 + $0x100] sm:$0xff] }
 0x3c2   : > { %3369 = vmatmul.msk.f32.gmra.mxu3 %vm5747_vm10, %v5752_v54  ;;  %v5919_v19 = vpop.f32.mrf.mxu0  ;;  %v7423_v54 = vld [vmem:[#allocation76_spill] sm:$0xff] }
 0x3c3   : > { %2742 = vmatpush.msra.mxu3 %v2263_v3 }
 0x3c5   : > { %2345 = vmatmul.f32.gmra.mxu2 %v5190_v26  ;;  %v2429_v56 = vpop.f32.mrf.mxu3  ;;  %2876 = vmatmul.f32.vlgmr.msra.gmra.mxu0 %v5190_v26 }
 0x3c6   : > { %2590 = vmatmul.f32.gmra.mxu1 %v7419_v12  ;;  %v2261_v56 = vld [vmem:[#allocation5 + $0x108] sm:$0xff]  ;;  %2743 = vmatpush.msra.mxu3 %v2262_v9 }
 0x3c8   : > { %2744 = vmatpush.msra.mxu3 %v2261_v56  ;;  %v2253_v56 = vld [vmem:[#allocation5 + $0xc8] sm:$0xff] }
 0x3c9   : > { %2655 = vmatpush.msrb.mxu2 %v2253_v56 }
 0x3ca   : > { %3370 = vmatmul.msk.f32.gmra.mxu3 %vm5777_vm7, %v5782_v27  ;;  %v5927_v28 = vpop.f32.mrf.mxu0  ;;  %v7422_v27 = vld [vmem:[#allocation85_spill] sm:$0xff] }
 0x3cb   : > { %2745 = vmatpush.msra.mxu3 %v2260_v15  ;;  %v2252_v15 = vld [vmem:[#allocation5 + $0xc0] sm:$0xff] }
 0x3cc   : > { %2656 = vmatpush.msrb.mxu2 %v2252_v15  ;;  %v2251_v15 = vld [vmem:[#allocation5 + $0xb8] sm:$0xff] }
 0x3cd   : > { %2347 = vmatmul.f32.gmra.mxu2 %v5230_v39  ;;  %v5930_v6 = vpop.f32.mrf.mxu3  ;;  %2878 = vmatmul.f32.gmra.mxu0 %v5230_v39 }
 0x3ce   : > { %2592 = vmatmul.f32.gmra.mxu1 %v5190_v26  ;;  %2657 = vmatpush.msrb.mxu2 %v2251_v15 }
 0x3d2   : > { %3371 = vmatmul.msk.f32.gmra.mxu3 %vm5807_vm13, %v5812_v51  ;;  %v5937_v53 = vpop.f32.mrf.mxu0  ;;  %v7420_v51 = vld [vmem:[#allocation55_spill] sm:$0xff] }
 0x3d5   : > { %2349 = vmatmul.f32.gmra.mxu2 %v5260_v52  ;;  %v5940_v3 = vpop.f32.mrf.mxu3  ;;  %2880 = vmatmul.f32.gmra.mxu0 %v5260_v52 }
 0x3d6   : > { %2595 = vmatmul.f32.gmra.mxu1 %v5230_v39 }
 0x3da   : > { %3372 = vmatmul.msk.f32.gmra.mxu3 %vm5841_vm4, %v5846_v5  ;;  %v5947_v26 = vpop.f32.mrf.mxu0 }
 0x3dd   : > { %2352 = vmatmul.f32.gmra.mxu2 %v5300_v31  ;;  %v5950_v9 = vpop.f32.mrf.mxu3  ;;  %2882 = vmatmul.f32.gmra.mxu0 %v5300_v31 }
 0x3de   : > { %2598 = vmatmul.f32.gmra.mxu1 %v5260_v52 }
 0x3e2   : > { %3373 = vmatmul.msk.f32.gmra.mxu3 %vm5870_vm3, %v5874_v10  ;;  %v5957_v39 = vpop.f32.mrf.mxu0 }
 0x3e5   : > { %2355 = vmatmul.f32.gmra.mxu2 %v5330_v2  ;;  %v5960_v34 = vpop.f32.mrf.mxu3  ;;  %2884 = vmatmul.f32.gmra.mxu0 %v5330_v2 }
 0x3e6   : > { %2601 = vmatmul.f32.gmra.mxu1 %v5300_v31 }
 0x3ea   : > { %v5964_v63 = vpop.f32.mrf.mxu0  ;;  %2746 = vmatmul.f32.vlgmr.msra.gmra.mxu3 %v5888_v61 }
 0x3ed   : > { %2358 = vmatmul.f32.gmra.mxu2 %v5374_v13  ;;  %v5968_v52 = vpop.f32.mrf.mxu3  ;;  %2887 = vmatmul.f32.gmra.mxu0 %v5374_v13 }
 0x3ee   : > { %2604 = vmatmul.f32.gmra.mxu1 %v5330_v2 }
 0x3f2   : > { %v5972_v56 = vpop.f32.mrf.mxu0  ;;  %2748 = vmatmul.f32.gmra.mxu3 %v5911_v58  ;;  %v2250_v58 = vld [vmem:[#allocation5 + $0xb0] sm:$0xff] }
 0x3f3   : > { %2658 = vmatpush.msrb.mxu2 %v2250_v58  ;;  %v2249_v58 = vld [vmem:[#allocation5 + $0xa8] sm:$0xff] }
 0x3f5   : > { %2361 = vmatmul.f32.gmra.mxu2 %v5404_v20  ;;  %v5976_v31 = vpop.f32.mrf.mxu3  ;;  %2890 = vmatmul.f32.gmra.mxu0 %v5404_v20 }
 0x3f6   : > { %2607 = vmatmul.f32.gmra.mxu1 %v5374_v13  ;;  %2659 = vmatpush.msrb.mxu2 %v2249_v58 }
 0x3fa   : > { %v5980_v61 = vpop.f32.mrf.mxu0  ;;  %2750 = vmatmul.f32.gmra.mxu3 %v7420_v51  ;;  %v7421_v51 = vld [vmem:[#allocation75_spill] sm:$0xff] }
 0x3fd   : > { %2364 = vmatmul.f32.gmra.mxu2 %v5448_v45  ;;  %v5984_v2 = vpop.f32.mrf.mxu3  ;;  %2893 = vmatmul.f32.gmra.mxu0 %v5448_v45 }
 0x3fe   : > { %2610 = vmatmul.f32.gmra.mxu1 %v5404_v20 }
 0x402   : > { %v5988_v48 = vpop.f32.mrf.mxu0  ;;  %2752 = vmatmul.f32.gmra.mxu3 %v5196_v35 }
 0x405   : > { %2367 = vmatmul.f32.gmra.mxu2 %v5476_v30  ;;  %v5992_v13 = vpop.f32.mrf.mxu3  ;;  %2896 = vmatmul.f32.gmra.mxu0 %v5476_v30 }
 0x406   : > { %2613 = vmatmul.f32.gmra.mxu1 %v5448_v45 }
 0x40a   : > { %v5996_v15 = vpop.f32.mrf.mxu0  ;;  %2754 = vmatmul.f32.gmra.mxu3 %v7421_v51  ;;  %v2248_v51 = vld [vmem:[#allocation5 + $0xa0] sm:$0xff] }
 0x40b   : > { %2660 = vmatpush.msrb.mxu2 %v2248_v51  ;;  %v2247_v51 = vld [vmem:[#allocation5 + $0x98] sm:$0xff] }
 0x40d   : > { %2370 = vmatmul.f32.gmra.mxu2 %v5518_v50  ;;  %v6000_v20 = vpop.f32.mrf.mxu3  ;;  %2899 = vmatmul.f32.gmra.mxu0 %v5518_v50 }
 0x40e   : > { %2616 = vmatmul.f32.gmra.mxu1 %v5476_v30  ;;  %2661 = vmatpush.msrb.mxu2 %v2247_v51  ;;  %v2840_v51 = vld [vmem:[#allocation5 + $0x3e0] sm:$0xff] }
 0x410   : > { %2662 = vmatpush.msrb.mxu2 %v2246_v14 }
 0x412   : > { %v6004_v35 = vpop.f32.mrf.mxu0  ;;  %2757 = vmatmul.f32.gmra.mxu3 %v7422_v27  ;;  %2663 = vmatpush.msrb.mxu2 %v2245_v41 }
 0x415   : > { %2373 = vmatmul.f32.gmra.mxu2 %v5546_v46  ;;  %v6008_v45 = vpop.f32.mrf.mxu3  ;;  %2902 = vmatmul.f32.gmra.mxu0 %v5546_v46 }
 0x416   : > { %2619 = vmatmul.f32.gmra.mxu1 %v5518_v50 }
 0x41a   : > { %v6012_v4 = vpop.f32.mrf.mxu0  ;;  %2760 = vmatmul.f32.gmra.mxu3 %v7423_v54 }
 0x41d   : > { %2376 = vmatmul.f32.gmra.mxu2 %v5583_v11  ;;  %v6016_v30 = vpop.f32.mrf.mxu3  ;;  %2905 = vmatmul.f32.gmra.mxu0 %v5583_v11 }
 0x41e   : > { %2622 = vmatmul.f32.gmra.mxu1 %v5546_v46 }
 0x422   : > { %v2560_v58 = vpop.f32.mrf.mxu0  ;;  %2763 = vmatmul.f32.gmra.mxu3 %v5336_v29  ;;  %v2842_v29 = vld [vmem:[#allocation5 + $0x3f0] sm:$0xff] }
 0x423   : > { %v2843_v58 = vld [vmem:[#allocation5 + $0x3f8] sm:$0xff] }
 0x424   : > { %2941 = vmatpush.msra.mxu1 %v2843_v58 }
 0x425   : > { %2379 = vmatmul.f32.gmra.mxu2 %v5609_v36  ;;  %v6022_v50 = vpop.f32.mrf.mxu3  ;;  %2908 = vmatmul.f32.gmra.mxu0 %v5609_v36 }
 0x426   : > { %2625 = vmatmul.f32.gmra.mxu1 %v5583_v11 }
 0x427   : > { %2942 = vmatpush.msra.mxu1 %v2842_v29  ;;  %v2838_v29 = vld [vmem:[#allocation5 + $0x3d0] sm:$0xff] }
 0x429   : > { %v2585_v54 = vpop.f32.mrf.mxu1 }
 0x42a   : > { %v2562_v27 = vpop.f32.mrf.mxu0  ;;  %2766 = vmatmul.f32.gmra.mxu3 %v5368_v57  ;;  %v2841_v54 = vld [vmem:[#allocation5 + $0x3e8] sm:$0xff]  ;;  %v7424_v57 = vld [vmem:[#allocation39_spill] sm:$0xff] }
 0x42b   : > { %2943 = vmatpush.msra.mxu1 %v2841_v54  ;;  %v2837_v54 = vld [vmem:[#allocation5 + $0x3c8] sm:$0xff] }
 0x42d   : > { %2382 = vmatmul.f32.gmra.mxu2 %v5647_v23  ;;  %v6028_v46 = vpop.f32.mrf.mxu3  ;;  %2911 = vmatmul.f32.gmra.mxu0 %v5647_v23 }
 0x42e   : > { %2628 = vmatmul.f32.gmra.mxu1 %v5609_v36  ;;  %v2839_v36 = vld [vmem:[#allocation5 + $0x3d8] sm:$0xff] }
 0x42f   : > { %2944 = vmatpush.msra.mxu1 %v2840_v51 }
 0x431   : > { %2945 = vmatpush.msra.mxu1 %v2839_v36  ;;  %v2835_v36 = vld [vmem:[#allocation5 + $0x3b8] sm:$0xff] }
 0x432   : > { %v2564_v11 = vpop.f32.mrf.mxu0  ;;  %2769 = vmatmul.f32.gmra.mxu3 %v5410_v17 }
 0x433   : > { %v2587_v27 = vpop.f32.mrf.mxu1  ;;  %v7425_v11 = vld [vmem:[#allocation27_spill] sm:$0xff]  ;;  %2946 = vmatpush.msra.mxu1 %v2838_v29 }
 0x435   : > { %2385 = vmatmul.f32.gmra.mxu2 %v7424_v57  ;;  %v6034_v49 = vpop.f32.mrf.mxu3  ;;  %2914 = vmatmul.f32.gmra.mxu0 %v7424_v57 }
 0x436   : > { %2631 = vmatmul.f32.gmra.mxu1 %v5647_v23  ;;  %v2836_v23 = vld [vmem:[#allocation5 + $0x3c0] sm:$0xff] }
 0x437   : > { %2947 = vmatpush.msra.mxu1 %v2837_v54  ;;  %v2832_v54 = vld [vmem:[#allocation5 + $0x3a0] sm:$0xff] }
 0x438   : > { %v2342_v58 = vpop.f32.mrf.mxu2 }
 0x439   : > { %2948 = vmatpush.msra.mxu1 %v2836_v23  ;;  %v7426_v58 = vld [vmem:[#allocation88_spill] sm:$0xff]  ;;  %v7427_v23 = vld [vmem:[#allocation78_spill] sm:$0xff] }
 0x43a   : > { %v2566_v14 = vpop.f32.mrf.mxu0  ;;  %2772 = vmatmul.f32.gmra.mxu3 %v7425_v11 }
 0x43b   : > { %v2589_v17 = vpop.f32.mrf.mxu1  ;;  %2949 = vmatpush.msra.mxu1 %v2835_v36  ;;  %v2834_v14 = vld [vmem:[#allocation5 + $0x3b0] sm:$0xff]  ;;  %v2244_v36 = vld [vmem:[#allocation5 + $0x80] sm:$0xff] }
 0x43c   : > { %2664 = vmatpush.msrb.mxu2 %v2244_v36 }
 0x43d   : > { %2388 = vmatmul.f32.gmra.mxu2 %v5714_v47  ;;  %v6040_v27 = vpop.f32.mrf.mxu3  ;;  %2917 = vmatmul.f32.gmra.mxu0 %v5714_v47 }
 0x43e   : > { %2634 = vmatmul.f32.gmra.mxu1 %v7424_v57  ;;  %v2833_v57 = vld [vmem:[#allocation5 + $0x3a8] sm:$0xff] }
 0x43f   : > { %2950 = vmatpush.msra.mxu1 %v2834_v14 }
 0x440   : > { %v2344_v51 = vpop.f32.mrf.mxu2 }
 0x441   : > { %2951 = vmatpush.msra.mxu1 %v2833_v57  ;;  %v7428_v57 = vld [vmem:[#allocation33_spill] sm:$0xff] }
 0x442   : > { %2775 = vmatmul.f32.gmra.mxu3 %v7426_v58  ;;  %v2877_v17 = vpop.f32.mrf.mxu0 }
 0x443   : > { %v2591_v29 = vpop.f32.mrf.mxu1  ;;  %2952 = vmatpush.msra.mxu1 %v2832_v54  ;;  %v2828_v54 = vld [vmem:[#allocation5 + $0x380] sm:$0xff] }
 0x444   : > { %v2831_v29 = vld [vmem:[#allocation5 + $0x398] sm:$0xff] }
 0x445   : > { %2391 = vmatmul.f32.gmra.mxu2 %v5738_v42  ;;  %v6046_v11 = vpop.f32.mrf.mxu3  ;;  %2920 = vmatmul.f32.gmra.mxu0 %v5738_v42 }
 0x446   : > { %2637 = vmatmul.f32.gmra.mxu1 %v5714_v47  ;;  %v2830_v47 = vld [vmem:[#allocation5 + $0x390] sm:$0xff] }
 0x447   : > { %2953 = vmatpush.msra.mxu1 %v2831_v29 }
 0x448   : > { %v2346_v41 = vpop.f32.mrf.mxu2 }
 0x449   : > { %v2829_v41 = vld [vmem:[#allocation5 + $0x388] sm:$0xff]  ;;  %2954 = vmatpush.msra.mxu1 %v2830_v47 }
 0x44a   : > { %2778 = vmatmul.f32.gmra.mxu3 %v7427_v23  ;;  %v2879_v51 = vpop.f32.mrf.mxu0  ;;  %v7429_v47 = vld [vmem:[#allocation108_spill] sm:$0xff] }
 0x44b   : > { %v2593_v17 = vpop.f32.mrf.mxu1  ;;  %2955 = vmatpush.msra.mxu1 %v2829_v41 }
 0x44d   : > { %2394 = vmatmul.f32.gmra.mxu2 %v5774_v8  ;;  %v2479_v58 = vpop.f32.mrf.mxu3  ;;  %2923 = vmatmul.f32.gmra.mxu0 %v5774_v8 }
 0x44e   : > { %2640 = vmatmul.f32.gmra.mxu1 %v5738_v42  ;;  %v2859_v58 = vld [vmem:[#allocation5 + $0x478] sm:$0xff] }
 0x44f   : > { %2956 = vmatpush.msra.mxu1 %v2828_v54  ;;  %3022 = vmatpush.msra.mxu2 %v2859_v58  ;;  %v7430_v58 = vld [vmem:[#allocation24_spill] sm:$0xff] }
 0x450   : > { %v2348_v14 = vpop.f32.mrf.mxu2 }
 0x452   : > { %2781 = vmatmul.f32.gmra.mxu3 %v7428_v57  ;;  %v2881_v51 = vpop.f32.mrf.mxu0 }
 0x453   : > { %v2596_v23 = vpop.f32.mrf.mxu1 }
 0x455   : > { %2397 = vmatmul.f32.gmra.mxu2 %v5798_v62  ;;  %v2481_v36 = vpop.f32.mrf.mxu3  ;;  %2926 = vmatmul.f32.gmra.mxu0 %v5798_v62 }
 0x456   : > { %2642 = vmatmul.f32.gmra.mxu1 %v5774_v8 }
 0x458   : > { %v2350_v42 = vpop.f32.mrf.mxu2 }
 0x459   : > { %v2432_v29 = vadd.f32 %v5930_v6, %v2350_v42 }
 0x45a   : > { %2784 = vmatmul.f32.gmra.mxu3 %v7429_v47  ;;  %v2883_v14 = vpop.f32.mrf.mxu0 }
 0x45b   : > { %v2513_v51 = vadd.f32 %v5826_v33, %v2432_v29  ;;  %v2599_v41 = vpop.f32.mrf.mxu1  ;;  %v2858_v29 = vld [vmem:[#allocation5 + $0x470] sm:$0xff] }
 0x45c   : > { %3023 = vmatpush.msra.mxu2 %v2858_v29  ;;  %v7432_v14 = vld [vmem:[#allocation113_spill] sm:$0xff] }
 0x45d   : > { %2399 = vmatmul.f32.gmra.mxu2 %v5836_v32  ;;  %v2483_v57 = vpop.f32.mrf.mxu3  ;;  %2929 = vmatmul.f32.gmra.mxu0 %v5836_v32  ;;  %v6063_v36 = vadd.f32 %v2593_v17, %v2513_v51 }
 0x45e   : > { %2644 = vmatmul.f32.gmra.mxu1 %v5798_v62 }
 0x460   : > { %v2353_v8 = vpop.f32.mrf.mxu2 }
 0x461   : > { %v2435_v54 = vadd.f32 %v5940_v3, %v2353_v8 }
 0x462   : > { %2787 = vmatmul.f32.gmra.mxu3 %v7430_v58  ;;  %v6068_v6 = vpop.f32.mrf.mxu0 }
 0x463   : > { %7431 = vst [vmem:[#allocation98_spill] sm:$0xff] %v6068_v6  ;;  %v2516_v42 = vadd.f32 %v5857_v25, %v2435_v54  ;;  %v2602_v33 = vpop.f32.mrf.mxu1  ;;  %v7448_v6 = vld [vmem:[#allocation70_spill] sm:$0xff] }
 0x464   : > { %vm7449_vm9 = vnez %v7448_v6 }
 0x465   : > { %2401 = vmatmul.f32.gmra.mxu2 %v5861_v37  ;;  %v2485_v57 = vpop.f32.mrf.mxu3  ;;  %2932 = vmatmul.f32.gmra.mxu0 %v5861_v37  ;;  %v6073_v17 = vadd.f32 %v2596_v23, %v2516_v42  ;;  %v7434_v23 = vld [vmem:[#allocation59_spill] sm:$0xff] }
 0x466   : > { %2646 = vmatmul.f32.gmra.mxu1 %v5836_v32  ;;  %v2857_v32 = vld [vmem:[#allocation5 + $0x468] sm:$0xff] }
 0x467   : > { %3024 = vmatpush.msra.mxu2 %v2857_v32  ;;  %v7436_v57 = vld [vmem:[#allocation36_spill] sm:$0xff] }
 0x468   : > { %v2356_v62 = vpop.f32.mrf.mxu2 }
 0x469   : > { %v2438_v3 = vadd.f32 %v5950_v9, %v2356_v62 }
 0x46a   : > { %2790 = vmatmul.f32.gmra.mxu3 %v7432_v14  ;;  %v6078_v51 = vpop.f32.mrf.mxu0  ;;  %v2854_v14 = vld [vmem:[#allocation5 + $0x450] sm:$0xff] }
 0x46b   : > { %7433 = vst [vmem:[#allocation34_spill] sm:$0xff] %v6078_v51  ;;  %v2519_v25 = vadd.f32 %v5884_v7, %v2438_v3  ;;  %v2605_v8 = vpop.f32.mrf.mxu1  ;;  %v2856_v51 = vld [vmem:[#allocation5 + $0x460] sm:$0xff] }
 0x46c   : > { %3025 = vmatpush.msra.mxu2 %v2856_v51 }
 0x46d   : > { %2403 = vmatmul.f32.gmra.mxu2 %v5898_v24  ;;  %v2747_v54 = vpop.f32.mrf.mxu3  ;;  %2934 = vmatmul.f32.gmra.mxu0 %v5898_v24  ;;  %v6083_v37 = vadd.f32 %v2599_v41, %v2519_v25  ;;  %v7438_v25 = vld [vmem:[#allocation80_spill] sm:$0xff] }
 0x46e   : > { %3398 = vmatmul.msk.f32.vlgmr.msra.gmra.mxu1 %vm5163_vm0, %v7434_v23 }
 0x470   : > { %v2359_v9 = vpop.f32.mrf.mxu2 }
 0x471   : > { %v2441_v29 = vadd.f32 %v5960_v34, %v2359_v9  ;;  %v7440_v9 = vld [vmem:[#allocation117_spill] sm:$0xff] }
 0x472   : > { %2793 = vmatmul.f32.gmra.mxu3 %v7436_v57  ;;  %v6090_v7 = vpop.f32.mrf.mxu0  ;;  %v7455_v57 = vld [vmem:[#allocation15_spill] sm:$0xff] }
 0x473   : > { %7437 = vst [vmem:[#allocation138_spill] sm:$0xff] %v6090_v7  ;;  %v2522_v62 = vadd.f32 %v5906_v43, %v2441_v29  ;;  %v2608_v3 = vpop.f32.mrf.mxu1 }
 0x475   : > { %3374 = vmatmul.msk.f32.vlgmr.msrb.gmra.mxu2 %vm5841_vm4, %v5846_v5  ;;  %v2749_v24 = vpop.f32.mrf.mxu3  ;;  %2936 = vmatmul.f32.gmra.mxu0 %v5894_v18  ;;  %v6097_v41 = vadd.f32 %v2602_v33, %v2522_v62  ;;  %v7442_v62 = vld [vmem:[#allocation81_spill] sm:$0xff] }
 0x476   : > { %3399 = vmatmul.msk.f32.gmra.mxu1 %vm5199_vm5, %v7438_v25 }
 0x478   : > { %v2362_v34 = vpop.f32.mrf.mxu2 }
 0x479   : > { %v2444_v32 = vadd.f32 %v5968_v52, %v2362_v34 }
 0x47a   : > { %2796 = vmatmul.f32.gmra.mxu3 %v7440_v9  ;;  %v6104_v43 = vpop.f32.mrf.mxu0  ;;  %v2855_v9 = vld [vmem:[#allocation5 + $0x458] sm:$0xff] }
 0x47b   : > { %7441 = vst [vmem:[#allocation58_spill] sm:$0xff] %v6104_v43  ;;  %v2525_v29 = vadd.f32 %v5919_v19, %v2444_v32  ;;  %v2611_v7 = vpop.f32.mrf.mxu1  ;;  %v7445_v43 = vld [vmem:[#allocation49_spill] sm:$0xff]  ;;  %3026 = vmatpush.msra.mxu2 %v2855_v9 }
 0x47c   : > { %v7456_v9 = vld [vmem:[#allocation133_spill] sm:$0xff] }
 0x47d   : > { %3375 = vmatmul.msk.f32.gmra.mxu2 %vm5870_vm3, %v5874_v10  ;;  %v2751_v18 = vpop.f32.mrf.mxu3  ;;  %2938 = vmatmul.f32.gmra.mxu0 %v7419_v12  ;;  %v6111_v33 = vadd.f32 %v2605_v8, %v2525_v29  ;;  %v7447_v29 = vld [vmem:[#allocation90_spill] sm:$0xff]  ;;  %vm7457_vm14 = vnez %v7456_v9 }
 0x47e   : > { %3400 = vmatmul.msk.f32.gmra.mxu1 %vm5235_vm6, %v7442_v62  ;;  %3027 = vmatpush.msra.mxu2 %v2854_v14 }
 0x480   : > { %v2365_v24 = vpop.f32.mrf.mxu2 }
 0x481   : > { %v2447_v34 = vadd.f32 %v5976_v31, %v2365_v24 }
 0x482   : > { %2799 = vmatmul.f32.gmra.mxu3 %v5744_v44  ;;  %v6118_v19 = vpop.f32.mrf.mxu0  ;;  %v7451_v44 = vld [vmem:[#allocation127_spill] sm:$0xff] }
 0x483   : > { %7444 = vst [vmem:[#allocation54_spill] sm:$0xff] %v6118_v19  ;;  %v2528_v51 = vadd.f32 %v5927_v28, %v2447_v34  ;;  %v2614_v32 = vpop.f32.mrf.mxu1 }
 0x485   : > { %3376 = vmatmul.msk.f32.gmra.mxu2 %vm5104_vm12, %v7445_v43  ;;  %v2753_v12 = vpop.f32.mrf.mxu3  ;;  %v6124_v8 = vadd.f32 %v2608_v3, %v2528_v51 }
 0x486   : > { %3401 = vmatmul.msk.f32.gmra.mxu1 %vm7449_vm9, %v7447_v29  ;;  %v7452_v12 = vld [vmem:[#allocation52_spill] sm:$0xff] }
 0x487   : > { %vm7453_vm15 = vnez %v7452_v12 }
 0x488   : > { %v2368_v31 = vpop.f32.mrf.mxu2 }
 0x489   : > { %v2450_v24 = vadd.f32 %v5984_v2, %v2368_v31 }
 0x48a   : > { %2802 = vmatmul.f32.gmra.mxu3 %v5768_v59  ;;  %v6131_v28 = vpop.f32.mrf.mxu0  ;;  %v7458_v59 = vld [vmem:[#allocation131_spill] sm:$0xff] }
 0x48b   : > { %7450 = vst [vmem:[#allocation152_spill] sm:$0xff] %v6131_v28  ;;  %v2531_v34 = vadd.f32 %v5937_v53, %v2450_v24  ;;  %v2617_v19 = vpop.f32.mrf.mxu1 }
 0x48d   : > { %3377 = vmatmul.msk.f32.gmra.mxu2 %vm7453_vm15, %v7451_v44  ;;  %v6137_v3 = vpop.f32.mrf.mxu3  ;;  %v6139_v51 = vadd.f32 %v2611_v7, %v2531_v34 }
 0x48e   : > { %7454 = vst [vmem:[#allocation114_spill] sm:$0xff] %v6137_v3  ;;  %3402 = vmatmul.msk.f32.gmra.mxu1 %vm7457_vm14, %v7455_v57  ;;  %v7460_v3 = vld [vmem:[#allocation82_spill] sm:$0xff] }
 0x490   : > { %v2371_v2 = vpop.f32.mrf.mxu2 }
 0x491   : > { %v2453_v31 = vadd.f32 %v5992_v13, %v2371_v2 }
 0x492   : > { %2804 = vmatmul.f32.gmra.mxu3 %v7458_v59  ;;  %v6146_v28 = vpop.f32.mrf.mxu0 }
 0x493   : > { %7459 = vst [vmem:[#allocation141_spill] sm:$0xff] %v6146_v28  ;;  %v2534_v53 = vadd.f32 %v5947_v26, %v2453_v31  ;;  %v2620_v24 = vpop.f32.mrf.mxu1 }
 0x495   : > { %3378 = vmatmul.msk.f32.gmra.mxu2 %vm5163_vm0, %v7434_v23  ;;  %v6152_v7 = vpop.f32.mrf.mxu3  ;;  %v6154_v34 = vadd.f32 %v2614_v32, %v2534_v53  ;;  %v7463_v32 = vld [vmem:[#allocation72_spill] sm:$0xff]  ;;  %v7464_v53 = vld [vmem:[#allocation95_spill] sm:$0xff] }
 0x496   : > { %3403 = vmatmul.msk.f32.gmra.mxu1 %vm5339_vm11, %v7460_v3  ;;  %vm7465_vm0 = vnez %v7464_v53 }
 0x498   : > { %v2374_v13 = vpop.f32.mrf.mxu2 }
 0x499   : > { %v2456_v2 = vadd.f32 %v6000_v20, %v2374_v13  ;;  %v2853_v20 = vld [vmem:[#allocation5 + $0x448] sm:$0xff] }
 0x49a   : > { %2806 = vmatmul.f32.gmra.mxu3 %v5830_v22  ;;  %v6161_v26 = vpop.f32.mrf.mxu0  ;;  %3028 = vmatpush.msra.mxu2 %v2853_v20  ;;  %v7468_v20 = vld [vmem:[#allocation140_spill] sm:$0xff] }
 0x49b   : > { %7462 = vst [vmem:[#allocation107_spill] sm:$0xff] %v6161_v26  ;;  %v2537_v14 = vadd.f32 %v5957_v39, %v2456_v2  ;;  %v2623_v31 = vpop.f32.mrf.mxu1 }
 0x49d   : > { %3379 = vmatmul.msk.f32.gmra.mxu2 %vm5199_vm5, %v7438_v25  ;;  %v6167_v23 = vpop.f32.mrf.mxu3  ;;  %v6169_v42 = vadd.f32 %v2617_v19, %v2537_v14  ;;  %v7467_v14 = vld [vmem:[#allocation67_spill] sm:$0xff]  ;;  %vm7469_vm5 = vnez %v7468_v20 }
 0x49e   : > { %3404 = vmatmul.msk.f32.gmra.mxu1 %vm7465_vm0, %v7463_v32 }
 0x4a0   : > { %v2377_v13 = vpop.f32.mrf.mxu2 }
 0x4a1   : > { %v2459_v26 = vadd.f32 %v6008_v45, %v2377_v13 }
 0x4a2   : > { %2808 = vmatmul.f32.gmra.mxu3 %v5867_v1  ;;  %v6176_v39 = vpop.f32.mrf.mxu0 }
 0x4a3   : > { %7466 = vst [vmem:[#allocation104_spill] sm:$0xff] %v6176_v39  ;;  %v2540_v54 = vadd.f32 %v5964_v63, %v2459_v26  ;;  %v2626_v25 = vpop.f32.mrf.mxu1  ;;  %v2852_v39 = vld [vmem:[#allocation5 + $0x440] sm:$0xff] }
 0x4a4   : > { %3029 = vmatpush.msra.mxu2 %v2852_v39 }
 0x4a5   : > { %3380 = vmatmul.msk.f32.gmra.mxu2 %vm5235_vm6, %v7442_v62  ;;  %v6182_v19 = vpop.f32.mrf.mxu3  ;;  %v6184_v2 = vadd.f32 %v2620_v24, %v2540_v54  ;;  %v7471_v24 = vld [vmem:[#allocation23_spill] sm:$0xff]  ;;  %v7472_v54 = vld [vmem:[#allocation97_spill] sm:$0xff] }
 0x4a6   : > { %3405 = vmatmul.msk.f32.gmra.mxu1 %vm7469_vm5, %v7467_v14  ;;  %vm7473_vm6 = vnez %v7472_v54 }
 0x4a8   : > { %v2380_v45 = vpop.f32.mrf.mxu2 }
 0x4a9   : > { %v2462_v13 = vadd.f32 %v6016_v30, %v2380_v45 }
 0x4aa   : > { %v6190_v28 = vpop.f32.mrf.mxu0 }
 0x4ab   : > { %7470 = vst [vmem:[#allocation153_spill] sm:$0xff] %v6190_v28  ;;  %v2543_v63 = vadd.f32 %v5972_v56, %v2462_v13  ;;  %v2629_v26 = vpop.f32.mrf.mxu1  ;;  %v7477_v13 = vld [vmem:[#allocation100_spill] sm:$0xff] }
 0x4ac   : > { %vm7478_vm1 = vnez %v7477_v13 }
 0x4ad   : > { %3381 = vmatmul.msk.f32.gmra.mxu2 %vm7449_vm9, %v7447_v29  ;;  %v6196_v62 = vpop.f32.mrf.mxu3  ;;  %v6198_v52 = vadd.f32 %v2623_v31, %v2543_v63  ;;  %v7476_v31 = vld [vmem:[#allocation83_spill] sm:$0xff]  ;;  %v2851_v63 = vld [vmem:[#allocation5 + $0x438] sm:$0xff] }
 0x4ae   : > { %3406 = vmatmul.msk.f32.gmra.mxu1 %vm7473_vm6, %v7471_v24  ;;  %3030 = vmatpush.msra.mxu2 %v2851_v63 }
 0x4b0   : > { %v2383_v30 = vpop.f32.mrf.mxu2 }
 0x4b1   : > { %v2465_v45 = vadd.f32 %v6022_v50, %v2383_v30 }
 0x4b2   : > { %v6204_v28 = vpop.f32.mrf.mxu0 }
 0x4b3   : > { %7474 = vst [vmem:[#allocation109_spill] sm:$0xff] %v6204_v28  ;;  %v2546_v56 = vadd.f32 %v5980_v61, %v2465_v45  ;;  %v2632_v39 = vpop.f32.mrf.mxu1 }
 0x4b5   : > { %3382 = vmatmul.msk.f32.gmra.mxu2 %vm7457_vm14, %v7455_v57  ;;  %v6210_v6 = vpop.f32.mrf.mxu3  ;;  %v6212_v29 = vadd.f32 %v2626_v25, %v2546_v56  ;;  %v7480_v25 = vld [vmem:[#allocation103_spill] sm:$0xff]  ;;  %v7481_v56 = vld [vmem:[#allocation21_spill] sm:$0xff] }
 0x4b6   : > { %7475 = vst [vmem:[#allocation143_spill] sm:$0xff] %v6210_v6  ;;  %3407 = vmatmul.msk.f32.gmra.mxu1 %vm7478_vm1, %v7476_v31  ;;  %vm7482_vm9 = vnez %v7481_v56  ;;  %v2850_v6 = vld [vmem:[#allocation5 + $0x430] sm:$0xff] }
 0x4b7   : > { %3031 = vmatpush.msra.mxu2 %v2850_v6 }
 0x4b8   : > { %v2386_v50 = vpop.f32.mrf.mxu2 }
 0x4b9   : > { %v2468_v30 = vadd.f32 %v6028_v46, %v2386_v50 }
 0x4ba   : > { %v6218_v28 = vpop.f32.mrf.mxu0 }
 0x4bb   : > { %7479 = vst [vmem:[#allocation68_spill] sm:$0xff] %v6218_v28  ;;  %v2549_v61 = vadd.f32 %v5988_v48, %v2468_v30  ;;  %v2635_v45 = vpop.f32.mrf.mxu1 }
 0x4bd   : > { %3383 = vmatmul.msk.f32.gmra.mxu2 %vm5339_vm11, %v7460_v3  ;;  %v6224_v57 = vpop.f32.mrf.mxu3  ;;  %v6226_v9 = vadd.f32 %v2629_v26, %v2549_v61  ;;  %v7483_v26 = vld [vmem:[#allocation25_spill] sm:$0xff]  ;;  %v7484_v61 = vld [vmem:[#allocation30_spill] sm:$0xff] }
 0x4be   : > { %3408 = vmatmul.msk.f32.gmra.mxu1 %vm7482_vm9, %v7480_v25  ;;  %vm7485_vm11 = vnez %v7484_v61  ;;  %v7502_v61 = vld [vmem:[#allocation75_spill] sm:$0xff] }
 0x4c0   : > { %v2389_v63 = vpop.f32.mrf.mxu2 }
 0x4c1   : > { %v2471_v46 = vadd.f32 %v6034_v49, %v2389_v63 }
 0x4c2   : > { %v6232_v50 = vpop.f32.mrf.mxu0 }
 0x4c3   : > { %v2552_v48 = vadd.f32 %v5996_v15, %v2471_v46  ;;  %v2638_v30 = vpop.f32.mrf.mxu1  ;;  %v7488_v46 = vld [vmem:[#allocation89_spill] sm:$0xff] }
 0x4c4   : > { %vm7489_vm14 = vnez %v7488_v46 }
 0x4c5   : > { %3384 = vmatmul.msk.f32.gmra.mxu2 %vm7465_vm0, %v7463_v32  ;;  %v6238_v58 = vpop.f32.mrf.mxu3  ;;  %v6240_v3 = vadd.f32 %v2632_v39, %v2552_v48  ;;  %v7487_v39 = vld [vmem:[#allocation87_spill] sm:$0xff]  ;;  %v2849_v48 = vld [vmem:[#allocation5 + $0x428] sm:$0xff]  ;;  %vm7490_vm0 = vnez %v7322_v16 }
 0x4c6   : > { %3409 = vmatmul.msk.f32.gmra.mxu1 %vm7485_vm11, %v7483_v26  ;;  %3032 = vmatpush.msra.mxu2 %v2849_v48 }
 0x4c8   : > { %v2392_v28 = vpop.f32.mrf.mxu2 }
 0x4c9   : > { %v2474_v49 = vadd.f32 %v6040_v27, %v2392_v28 }
 0x4ca   : > { %v6246_v6 = vpop.f32.mrf.mxu0 }
 0x4cb   : > { %7486 = vst [vmem:[#allocation63_spill] sm:$0xff] %v6246_v6  ;;  %v2555_v15 = vadd.f32 %v6004_v35, %v2474_v49  ;;  %v2641_v63 = vpop.f32.mrf.mxu1 }
 0x4cd   : > { %3385 = vmatmul.msk.f32.gmra.mxu2 %vm7469_vm5, %v7467_v14  ;;  %v6252_v32 = vpop.f32.mrf.mxu3  ;;  %v6254_v53 = vadd.f32 %v2635_v45, %v2555_v15  ;;  %v2848_v15 = vld [vmem:[#allocation5 + $0x420] sm:$0xff]  ;;  %vm7491_vm5 = vnez %v7332_v55 }
 0x4ce   : > { %3410 = vmatmul.msk.f32.gmra.mxu1 %vm7489_vm14, %v7487_v39  ;;  %3033 = vmatpush.msra.mxu2 %v2848_v15  ;;  %v2846_v15 = vld [vmem:[#allocation5 + $0x410] sm:$0xff] }
 0x4d0   : > { %v2395_v27 = vpop.f32.mrf.mxu2 }
 0x4d1   : > { %v2477_v28 = vadd.f32 %v6046_v11, %v2395_v27 }
 0x4d2   : > { %v6260_v6 = vpop.f32.mrf.mxu0 }
 0x4d3   : > { %v2558_v35 = vadd.f32 %v6012_v4, %v2477_v28  ;;  %v2643_v49 = vpop.f32.mrf.mxu1 }
 0x4d5   : > { %3386 = vmatmul.msk.f32.gmra.mxu2 %vm7473_vm6, %v7471_v24  ;;  %v6266_v14 = vpop.f32.mrf.mxu3  ;;  %v6268_v20 = vadd.f32 %v2638_v30, %v2558_v35 }
 0x4d6   : > { %3411 = vmatmul.msk.f32.gmra.mxu1 %vm7490_vm0, %v5623_v38 }
 0x4d8   : > { %v2398_v45 = vpop.f32.mrf.mxu2 }
 0x4d9   : > { %v7493_v45 = vld [vmem:[#allocation91_spill] sm:$0xff] }
 0x4da   : > { %v6273_v11 = vpop.f32.mrf.mxu0 }
 0x4db   : > { %v2645_v63 = vpop.f32.mrf.mxu1 }
 0x4dd   : > { %3387 = vmatmul.msk.f32.gmra.mxu2 %vm7478_vm1, %v7476_v31  ;;  %v6278_v4 = vpop.f32.mrf.mxu3  ;;  %v2847_v31 = vld [vmem:[#allocation5 + $0x418] sm:$0xff] }
 0x4de   : > { %3412 = vmatmul.msk.f32.gmra.mxu1 %vm7491_vm5, %v5655_v21  ;;  %3034 = vmatpush.msra.mxu2 %v2847_v31 }
 0x4e0   : > { %v2400_v24 = vpop.f32.mrf.mxu2  ;;  %3035 = vmatpush.msra.mxu2 %v2846_v15 }
 0x4e2   : > { %v2933_v54 = vpop.f32.mrf.mxu0 }
 0x4e3   : > { %v2647_v30 = vpop.f32.mrf.mxu1 }
 0x4e4   : > { %v7495_v30 = vld [vmem:[#allocation42_spill] sm:$0xff] }
 0x4e5   : > { %3388 = vmatmul.msk.f32.gmra.mxu2 %vm7482_vm9, %v7480_v25  ;;  %v6286_v48 = vpop.f32.mrf.mxu3 }
 0x4e6   : > { %3413 = vmatmul.msk.f32.gmra.mxu1 %vm5682_vm8, %v5687_v40 }
 0x4e8   : > { %v2402_v13 = vpop.f32.mrf.mxu2 }
 0x4ea   : > { %v2935_v28 = vpop.f32.mrf.mxu0 }
 0x4eb   : > { %v2958_v35 = vpop.f32.mrf.mxu1 }
 0x4ec   : > { %v7497_v35 = vld [vmem:[#allocation94_spill] sm:$0xff] }
 0x4ed   : > { %3389 = vmatmul.msk.f32.gmra.mxu2 %vm7485_vm11, %v7483_v26  ;;  %v6294_v49 = vpop.f32.mrf.mxu3 }
 0x4ee   : > { %3414 = vmatmul.msk.f32.gmra.mxu1 %vm5717_vm2, %v7493_v45 }
 0x4f0   : > { %v2404_v25 = vpop.f32.mrf.mxu2 }
 0x4f2   : > { %v2937_v63 = vpop.f32.mrf.mxu0 }
 0x4f3   : > { %v2960_v24 = vpop.f32.mrf.mxu1 }
 0x4f4   : > { %v7500_v24 = vld [vmem:[#allocation48_spill] sm:$0xff] }
 0x4f5   : > { %3390 = vmatmul.msk.f32.gmra.mxu2 %vm7489_vm14, %v7487_v39  ;;  %v6302_v54 = vpop.f32.mrf.mxu3  ;;  %v2845_v39 = vld [vmem:[#allocation5 + $0x408] sm:$0xff] }
 0x4f6   : > { %3415 = vmatmul.msk.f32.gmra.mxu1 %vm5747_vm10, %v7495_v30  ;;  %3036 = vmatpush.msra.mxu2 %v2845_v39 }
 0x4f8   : > { %v2666_v26 = vpop.f32.mrf.mxu2 }
 0x4fa   : > { %v2939_v31 = vpop.f32.mrf.mxu0 }
 0x4fb   : > { %v2962_v13 = vpop.f32.mrf.mxu1  ;;  %v2844_v31 = vld [vmem:[#allocation5 + $0x400] sm:$0xff] }
 0x4fc   : > { %3037 = vmatpush.msra.mxu2 %v2844_v31 }
 0x4fd   : > { %3391 = vmatmul.msk.f32.gmra.mxu2 %vm7490_vm0, %v5623_v38  ;;  %v6310_v28 = vpop.f32.mrf.mxu3 }
 0x4fe   : > { %3416 = vmatmul.msk.f32.gmra.mxu1 %vm5777_vm7, %v7497_v35 }
 0x500   : > { %v2668_v46 = vpop.f32.mrf.mxu2 }
 0x503   : > { %v2964_v15 = vpop.f32.mrf.mxu1 }
 0x505   : > { %3392 = vmatmul.msk.f32.gmra.mxu2 %vm7491_vm5, %v5655_v21  ;;  %v6318_v63 = vpop.f32.mrf.mxu3 }
 0x506   : > { %7499 = vst [vmem:[#allocation99_spill] sm:$0xff] %v6318_v63  ;;  %3417 = vmatmul.msk.f32.gmra.mxu1 %vm5807_vm13, %v7500_v24 }
 0x508   : > { %v2670_v16 = vpop.f32.mrf.mxu2 }
 0x50b   : > { %v6323_v38 = vpop.f32.mrf.mxu1 }
 0x50d   : > { %3393 = vmatmul.msk.f32.gmra.mxu2 %vm5682_vm8, %v5687_v40  ;;  %v2803_v13 = vpop.f32.mrf.mxu3 }
 0x50e   : > { %3418 = vmatmul.msk.f32.gmra.mxu1 %vm5841_vm4, %v5846_v5 }
 0x510   : > { %v2672_v55 = vpop.f32.mrf.mxu2 }
 0x513   : > { %v6331_v21 = vpop.f32.mrf.mxu1 }
 0x515   : > { %3394 = vmatmul.msk.f32.gmra.mxu2 %vm5717_vm2, %v7493_v45  ;;  %v2805_v39 = vpop.f32.mrf.mxu3 }
 0x516   : > { %3419 = vmatmul.msk.f32.gmra.mxu1 %vm5870_vm3, %v5874_v10 }
 0x518   : > { %v2674_v46 = vpop.f32.mrf.mxu2 }
 0x519   : > { %v6340_v40 = vadd.f32 %v2674_v46, %v6063_v36 }
 0x51b   : > { %v6342_v27 = vpop.f32.mrf.mxu1 }
 0x51d   : > { %3395 = vmatmul.msk.f32.gmra.mxu2 %vm5747_vm10, %v7495_v30  ;;  %v2807_v60 = vpop.f32.mrf.mxu3 }
 0x51e   : > { %3420 = vmatmul.msk.f32.gmra.mxu1 %vm5104_vm12, %v7445_v43 }
 0x520   : > { %v2677_v5 = vpop.f32.mrf.mxu2 }
 0x521   : > { %v6351_v45 = vadd.f32 %v2677_v5, %v6073_v17 }
 0x523   : > { %v6353_v0 = vpop.f32.mrf.mxu1 }
 0x525   : > { %3396 = vmatmul.msk.f32.gmra.mxu2 %vm5777_vm7, %v7497_v35  ;;  %v2809_v10 = vpop.f32.mrf.mxu3  ;;  %v7503_v35 = vld [vmem:[#allocation85_spill] sm:$0xff] }
 0x526   : > { %3421 = vmatmul.msk.f32.gmra.mxu1 %vm7453_vm15, %v7451_v44 }
 0x528   : > { %v2680_v36 = vpop.f32.mrf.mxu2 }
 0x529   : > { %v6362_v56 = vadd.f32 %v2680_v36, %v6083_v37 }
 0x52b   : > { %v6364_v43 = vpop.f32.mrf.mxu1 }
 0x52d   : > { %3397 = vmatmul.msk.f32.gmra.mxu2 %vm5807_vm13, %v7500_v24 }
 0x530   : > { %v2683_v17 = vpop.f32.mrf.mxu2 }
 0x531   : > { %v6370_v18 = vadd.f32 %v2683_v17, %v6097_v41  ;;  %v7504_v41 = vld [vmem:[#allocation76_spill] sm:$0xff] }
 0x533   : > { %v6372_v30 = vpop.f32.mrf.mxu1 }
 0x535   : > { %3038 = vmatmul.f32.vlgmr.msra.gmra.mxu2 %v7502_v61 }
 0x538   : > { %v2686_v12 = vpop.f32.mrf.mxu2 }
 0x539   : > { %v6376_v44 = vadd.f32 %v2686_v12, %v6111_v33  ;;  %v7505_v33 = vld [vmem:[#allocation92_spill] sm:$0xff] }
 0x53b   : > { %v6378_v37 = vpop.f32.mrf.mxu1 }
 0x53d   : > { %3040 = vmatmul.f32.gmra.mxu2 %v7503_v35 }
 0x540   : > { %v2689_v25 = vpop.f32.mrf.mxu2 }
 0x541   : > { %v6382_v15 = vadd.f32 %v2689_v25, %v6124_v8  ;;  %v7506_v8 = vld [vmem:[#allocation137_spill] sm:$0xff] }
 0x543   : > { %v6384_v24 = vpop.f32.mrf.mxu1 }
 0x545   : > { %3042 = vmatmul.f32.gmra.mxu2 %v7504_v41 }
 0x548   : > { %v2692_v26 = vpop.f32.mrf.mxu2 }
 0x549   : > { %v6388_v16 = vadd.f32 %v2692_v26, %v6139_v51  ;;  %v7507_v51 = vld [vmem:[#allocation86_spill] sm:$0xff] }
 0x54b   : > { %v6390_v31 = vpop.f32.mrf.mxu1 }
 0x54d   : > { %3044 = vmatmul.f32.gmra.mxu2 %v7505_v33 }
 0x550   : > { %v2695_v13 = vpop.f32.mrf.mxu2 }
 0x551   : > { %v6394_v55 = vadd.f32 %v2695_v13, %v6154_v34  ;;  %v7508_v34 = vld [vmem:[#allocation27_spill] sm:$0xff] }
 0x553   : > { %v6396_v39 = vpop.f32.mrf.mxu1 }
 0x555   : > { %3046 = vmatmul.f32.gmra.mxu2 %v7506_v8 }
 0x558   : > { %v2698_v46 = vpop.f32.mrf.mxu2 }
 0x559   : > { %v6400_v60 = vadd.f32 %v2698_v46, %v6169_v42  ;;  %v7509_v42 = vld [vmem:[#allocation88_spill] sm:$0xff] }
 0x55b   : > { %v6402_v5 = vpop.f32.mrf.mxu1 }
 0x55d   : > { %3049 = vmatmul.f32.gmra.mxu2 %v7507_v51 }
 0x560   : > { %v2701_v10 = vpop.f32.mrf.mxu2 }
 0x561   : > { %v6406_v36 = vadd.f32 %v2701_v10, %v6184_v2  ;;  %v7510_v2 = vld [vmem:[#allocation78_spill] sm:$0xff] }
 0x563   : > { %v6408_v17 = vpop.f32.mrf.mxu1 }
 0x565   : > { %3052 = vmatmul.f32.gmra.mxu2 %v7508_v34 }
 0x568   : > { %v2704_v61 = vpop.f32.mrf.mxu2 }
 0x569   : > { %v6412_v12 = vadd.f32 %v2704_v61, %v6198_v52  ;;  %v7511_v52 = vld [vmem:[#allocation33_spill] sm:$0xff] }
 0x56b   : > { %v6414_v35 = vpop.f32.mrf.mxu1 }
 0x56d   : > { %3055 = vmatmul.f32.gmra.mxu2 %v7509_v42  ;;  %v7513_v42 = vld [vmem:[#allocation24_spill] sm:$0xff] }
 0x570   : > { %v2707_v25 = vpop.f32.mrf.mxu2 }
 0x571   : > { %v6418_v41 = vadd.f32 %v2707_v25, %v6212_v29 }
 0x573   : > { %v6420_v26 = vpop.f32.mrf.mxu1 }
 0x575   : > { %3058 = vmatmul.f32.gmra.mxu2 %v7510_v2 }
 0x578   : > { %v2710_v33 = vpop.f32.mrf.mxu2 }
 0x579   : > { %v6424_v13 = vadd.f32 %v2710_v33, %v6226_v9  ;;  %v7514_v33 = vld [vmem:[#allocation113_spill] sm:$0xff] }
 0x57b   : > { %v6426_v8 = vpop.f32.mrf.mxu1 }
 0x57d   : > { %3061 = vmatmul.f32.gmra.mxu2 %v7511_v52 }
 0x580   : > { %v2713_v46 = vpop.f32.mrf.mxu2 }
 0x581   : > { %v6430_v51 = vadd.f32 %v2713_v46, %v6240_v3  ;;  %v7515_v46 = vld [vmem:[#allocation36_spill] sm:$0xff] }
 0x583   : > { %v6432_v10 = vpop.f32.mrf.mxu1 }
 0x584   : > { %7512 = vst [vmem:[#allocation40_spill] sm:$0xff] %v6432_v10  ;;  %v7516_v10 = vld [vmem:[#allocation117_spill] sm:$0xff] }
 0x585   : > { %3064 = vmatmul.f32.gmra.mxu2 %v7429_v47 }
 0x588   : > { %v2716_v29 = vpop.f32.mrf.mxu2 }
 0x589   : > { %v6436_v34 = vadd.f32 %v2716_v29, %v6254_v53  ;;  %v7517_v29 = vld [vmem:[#allocation121_spill] sm:$0xff] }
 0x58b   : > { %v3014_v61 = vpop.f32.mrf.mxu1 }
 0x58d   : > { %3067 = vmatmul.f32.gmra.mxu2 %v7513_v42  ;;  %v7518_v42 = vld [vmem:[#allocation126_spill] sm:$0xff] }
 0x590   : > { %v2719_v9 = vpop.f32.mrf.mxu2 }
 0x591   : > { %v6440_v25 = vadd.f32 %v2719_v9, %v6268_v20 }
 0x593   : > { %v3016_v2 = vpop.f32.mrf.mxu1 }
 0x595   : > { %3070 = vmatmul.f32.gmra.mxu2 %v7514_v33  ;;  %v7519_v33 = vld [vmem:[#allocation135_spill] sm:$0xff] }
 0x598   : > { %v2722_v3 = vpop.f32.mrf.mxu2 }
 0x59b   : > { %v3018_v52 = vpop.f32.mrf.mxu1 }
 0x59d   : > { %3073 = vmatmul.f32.gmra.mxu2 %v7515_v46  ;;  %v7521_v46 = vld [vmem:[#allocation114_spill] sm:$0xff] }
 0x5a0   : > { %v2724_v63 = vpop.f32.mrf.mxu2 }
 0x5a3   : > { %v3020_v47 = vpop.f32.mrf.mxu1 }
 0x5a4   : > { %v2756_v47 = vadd.f32 %v7521_v46, %v6340_v40  ;;  %v2759_v40 = vadd.f32 %v6152_v7, %v6351_v45  ;;  %v2762_v7 = vadd.f32 %v6167_v23, %v6362_v56  ;;  %v7527_v45 = vld [vmem:[#allocation26_spill] sm:$0xff] }
 0x5a5   : > { %3076 = vmatmul.f32.gmra.mxu2 %v7516_v10  ;;  %v7520_v10 = vld [vmem:[#allocation98_spill] sm:$0xff] }
 0x5a6   : > { %v2967_v3 = vadd.f32 %v6323_v38, %v7520_v10 }
 0x5a8   : > { %v2726_v53 = vpop.f32.mrf.mxu2 }
 0x5ad   : > { %3079 = vmatmul.f32.gmra.mxu2 %v7517_v29  ;;  %v7522_v29 = vld [vmem:[#allocation101_spill] sm:$0xff] }
 0x5b0   : > { %v2728_v61 = vpop.f32.mrf.mxu2 }
 0x5b1   : > { %v7523_v61 = vld [vmem:[#allocation34_spill] sm:$0xff] }
 0x5b2   : > { %v2970_v38 = vadd.f32 %v6331_v21, %v7523_v61  ;;  %v7528_v61 = vld [vmem:[#allocation64_spill] sm:$0xff] }
 0x5b5   : > { %3082 = vmatmul.f32.gmra.mxu2 %v7518_v42 }
 0x5b8   : > { %v3039_v20 = vpop.f32.mrf.mxu2 }
 0x5bd   : > { %3085 = vmatmul.f32.gmra.mxu2 %v7458_v59  ;;  %v6458_v59 = vld [vmem:[%s6627_s5] ss:$0 sm:$0xff] }
 0x5c0   : > { %v3041_v9 = vpop.f32.mrf.mxu2 }
 0x5c1   : > { %v7524_v9 = vld [vmem:[#allocation22_spill] sm:$0xff] }
 0x5c5   : > { %3088 = vmatmul.f32.gmra.mxu2 %v5830_v22 }
 0x5c8   : > { %v3043_v2 = vpop.f32.mrf.mxu2 }
 0x5cd   : > { %3091 = vmatmul.f32.gmra.mxu2 %v5867_v1 }
 0x5d0   : > { %v3045_v63 = vpop.f32.mrf.mxu2 }
 0x5d5   : > { %3094 = vmatmul.f32.gmra.mxu2 %v7519_v33 }
 0x5d8   : > { %v3047_v52 = vpop.f32.mrf.mxu2 }
 0x5d9   : > { %v3048_v53 = vadd.f32 %v3047_v52, %v2967_v3  ;;  %v7525_v3 = vld [vmem:[#allocation55_spill] sm:$0xff]  ;;  %v7526_v52 = vld [vmem:[#allocation138_spill] sm:$0xff] }
 0x5da   : > { %v2973_v21 = vadd.f32 %v6342_v27, %v7526_v52 }
 0x5db   : > { %v3103_v22 = vadd.f32 %v3048_v53, %v2756_v47 }
 0x5dd   : > { %v3123_v1 = vadd.f32 %v6458_v59, %v3103_v22  ;;  %3096 = vmatmul.f32.gmra.mxu2 %v7522_v29 }
 0x5df   : > { %v3139_v42 = vmax.f32 %v3123_v1, 0.0 }
 0x5e0   : > { %v3050_v20 = vpop.f32.mrf.mxu2 }
 0x5e1   : > { %v3155_v2 = vadd.f32 %v3139_v42, %v7524_v9  ;;  %v3051_v63 = vadd.f32 %v3050_v20, %v2970_v38  ;;  %v7529_v38 = vld [vmem:[#allocation58_spill] sm:$0xff]  ;;  %v7530_v9 = vld [vmem:[#allocation29_spill] sm:$0xff] }
 0x5e2   : > { %v2976_v42 = vadd.f32 %v6353_v0, %v7529_v38  ;;  %v2768_v0 = vadd.f32 %v6196_v62, %v6376_v44 }
 0x5e3   : > { %3171 = vst [vmem:[%s6470_s17] sm:$0xff] %v3155_v2  ;;  %v3104_v33 = vadd.f32 %v3051_v63, %v2759_v40  ;;  %v2765_v40 = vadd.f32 %v6182_v19, %v6370_v18 }
 0x5e5   : > { %v3124_v10 = vadd.f32 %v6458_v59, %v3104_v33  ;;  %3098 = vmatmul.f32.gmra.mxu2 %v7525_v3  ;;  %v7531_v33 = vld [vmem:[#allocation54_spill] sm:$0xff] }
 0x5e7   : > { %v3140_v46 = vmax.f32 %v3124_v10, 0.0  ;;  %v2979_v10 = vadd.f32 %v6364_v43, %v7531_v33  ;;  %v7534_v43 = vld [vmem:[#allocation143_spill] sm:$0xff] }
 0x5e8   : > { %v3053_v47 = vpop.f32.mrf.mxu2 }
 0x5e9   : > { %v3156_v53 = vadd.f32 %v3140_v46, %v7527_v45  ;;  %v3054_v22 = vadd.f32 %v3053_v47, %v2973_v21  ;;  %v7532_v21 = vld [vmem:[#allocation32_spill] sm:$0xff] }
 0x5eb   : > { %3172 = vst [vmem:[%s6470_s17 + $0x8] sm:$0xff] %v3156_v53  ;;  %v3105_v1 = vadd.f32 %v3054_v22, %v2762_v7  ;;  %v7533_v7 = vld [vmem:[#allocation152_spill] sm:$0xff] }
 0x5ec   : > { %v2982_v45 = vadd.f32 %v6372_v30, %v7533_v7  ;;  %v2774_v30 = vadd.f32 %v6224_v57, %v6388_v16  ;;  %v7541_v7 = vld [vmem:[#allocation44_spill] sm:$0xff] }
 0x5ed   : > { %v3125_v29 = vadd.f32 %v6458_v59, %v3105_v1  ;;  %3100 = vmatmul.f32.gmra.mxu2 %v7528_v61  ;;  %v2771_v1 = vadd.f32 %v7534_v43, %v6382_v15 }
 0x5ef   : > { %v3141_v27 = vmax.f32 %v3125_v29, 0.0  ;;  %v7535_v29 = vld [vmem:[#allocation35_spill] sm:$0xff] }
 0x5f0   : > { %v3056_v20 = vpop.f32.mrf.mxu2 }
 0x5f1   : > { %v3157_v23 = vadd.f32 %v3141_v27, %v7530_v9  ;;  %v3057_v56 = vadd.f32 %v3056_v20, %v2976_v42  ;;  %v7536_v42 = vld [vmem:[#allocation141_spill] sm:$0xff]  ;;  %v7537_v9 = vld [vmem:[#allocation38_spill] sm:$0xff] }
 0x5f2   : > { %v2985_v27 = vadd.f32 %v6378_v37, %v7536_v42  ;;  %v2777_v37 = vadd.f32 %v6238_v58, %v6394_v55 }
 0x5f3   : > { %3173 = vst [vmem:[%s6470_s17 + $0x10] sm:$0xff] %v3157_v23  ;;  %v3106_v2 = vadd.f32 %v3057_v56, %v2765_v40 }
 0x5f5   : > { %v3126_v63 = vadd.f32 %v6458_v59, %v3106_v2 }
 0x5f7   : > { %v3142_v3 = vmax.f32 %v3126_v63, 0.0  ;;  %v7538_v63 = vld [vmem:[#allocation107_spill] sm:$0xff] }
 0x5f8   : > { %v3059_v52 = vpop.f32.mrf.mxu2  ;;  %v2988_v33 = vadd.f32 %v6384_v24, %v7538_v63  ;;  %v2780_v24 = vadd.f32 %v6252_v32, %v6400_v60  ;;  %v7547_v63 = vld [vmem:[#allocation53_spill] sm:$0xff] }
 0x5f9   : > { %v3158_v46 = vadd.f32 %v3142_v3, %v7532_v21  ;;  %v3060_v47 = vadd.f32 %v3059_v52, %v2979_v10  ;;  %v7539_v52 = vld [vmem:[#allocation41_spill] sm:$0xff] }
 0x5fb   : > { %3174 = vst [vmem:[%s6470_s17 + $0x18] sm:$0xff] %v3158_v46  ;;  %v3107_v19 = vadd.f32 %v3060_v47, %v2768_v0  ;;  %v7540_v46 = vld [vmem:[#allocation104_spill] sm:$0xff] }
 0x5fc   : > { %v2991_v47 = vadd.f32 %v6390_v31, %v7540_v46  ;;  %v2783_v31 = vadd.f32 %v6266_v14, %v6406_v36 }
 0x5fd   : > { %v3127_v18 = vadd.f32 %v6458_v59, %v3107_v19 }
 0x5ff   : > { %v3143_v53 = vmax.f32 %v3127_v18, 0.0 }
 0x600   : > { %v3062_v22 = vpop.f32.mrf.mxu2 }
 0x601   : > { %v3159_v61 = vadd.f32 %v3143_v53, %v7535_v29  ;;  %v3063_v38 = vadd.f32 %v3062_v22, %v2982_v45  ;;  %v7542_v22 = vld [vmem:[#allocation153_spill] sm:$0xff] }
 0x602   : > { %v2994_v43 = vadd.f32 %v6396_v39, %v7542_v22  ;;  %v2786_v39 = vadd.f32 %v6278_v4, %v6412_v12 }
 0x603   : > { %3175 = vst [vmem:[%s6470_s17 + $0x20] sm:$0xff] %v3159_v61  ;;  %v3108_v62 = vadd.f32 %v3063_v38, %v2771_v1  ;;  %v7543_v61 = vld [vmem:[#allocation47_spill] sm:$0xff] }
 0x605   : > { %v3128_v44 = vadd.f32 %v6458_v59, %v3108_v62 }
 0x607   : > { %v3144_v20 = vmax.f32 %v3128_v44, 0.0  ;;  %v7544_v44 = vld [vmem:[#allocation109_spill] sm:$0xff] }
 0x608   : > { %v3065_v40 = vpop.f32.mrf.mxu2  ;;  %v2997_v42 = vadd.f32 %v6402_v5, %v7544_v44  ;;  %v2789_v5 = vadd.f32 %v6286_v48, %v6418_v41 }
 0x609   : > { %v3160_v23 = vadd.f32 %v3144_v20, %v7537_v9  ;;  %v3066_v56 = vadd.f32 %v3065_v40, %v2985_v27  ;;  %v7545_v40 = vld [vmem:[#allocation50_spill] sm:$0xff] }
 0x60b   : > { %3176 = vst [vmem:[%s6470_s17 + $0x28] sm:$0xff] %v3160_v23  ;;  %v3109_v15 = vadd.f32 %v3066_v56, %v2774_v30  ;;  %v7546_v23 = vld [vmem:[#allocation68_spill] sm:$0xff] }
 0x60c   : > { %v3000_v56 = vadd.f32 %v6408_v17, %v7546_v23  ;;  %v2792_v17 = vadd.f32 %v6294_v49, %v6424_v13 }
 0x60d   : > { %v3129_v2 = vadd.f32 %v6458_v59, %v3109_v15 }
 0x60f   : > { %v3145_v10 = vmax.f32 %v3129_v2, 0.0 }
 0x610   : > { %v3068_v3 = vpop.f32.mrf.mxu2 }
 0x611   : > { %v3161_v0 = vadd.f32 %v3145_v10, %v7539_v52  ;;  %v3069_v21 = vadd.f32 %v3068_v3, %v2988_v33  ;;  %v3003_v3 = vadd.f32 %v6414_v35, %v6232_v50  ;;  %v2795_v35 = vadd.f32 %v6302_v54, %v6430_v51 }
 0x613   : > { %3177 = vst [vmem:[%s6470_s17 + $0x30] sm:$0xff] %v3161_v0  ;;  %v3110_v57 = vadd.f32 %v3069_v21, %v2777_v37  ;;  %v7548_v0 = vld [vmem:[#allocation56_spill] sm:$0xff] }
 0x615   : > { %v3130_v16 = vadd.f32 %v6458_v59, %v3110_v57 }
 0x617   : > { %v3146_v19 = vmax.f32 %v3130_v16, 0.0  ;;  %v7549_v16 = vld [vmem:[#allocation63_spill] sm:$0xff] }
 0x618   : > { %v3071_v18 = vpop.f32.mrf.mxu2  ;;  %v3006_v46 = vadd.f32 %v6420_v26, %v7549_v16  ;;  %v2798_v26 = vadd.f32 %v6310_v28, %v6436_v34  ;;  %v7553_v28 = vld [vmem:[#allocation99_spill] sm:$0xff] }
 0x619   : > { %v3162_v45 = vadd.f32 %v3146_v19, %v7541_v7  ;;  %v3072_v53 = vadd.f32 %v3071_v18, %v2991_v47  ;;  %v7550_v19 = vld [vmem:[#allocation61_spill] sm:$0xff]  ;;  %v3009_v7 = vadd.f32 %v6426_v8, %v6260_v6  ;;  %v2801_v34 = vadd.f32 %v7553_v28, %v6440_v25 }
 0x61b   : > { %3178 = vst [vmem:[%s6470_s17 + $0x38] sm:$0xff] %v3162_v45  ;;  %v3111_v58 = vadd.f32 %v3072_v53, %v2780_v24 }
 0x61d   : > { %v3131_v55 = vadd.f32 %v6458_v59, %v3111_v58  ;;  %v7551_v58 = vld [vmem:[#allocation66_spill] sm:$0xff] }
 0x61f   : > { %v3147_v1 = vmax.f32 %v3131_v55, 0.0 }
 0x620   : > { %v3074_v29 = vpop.f32.mrf.mxu2 }
 0x621   : > { %v3163_v38 = vadd.f32 %v3147_v1, %v7543_v61  ;;  %v3075_v62 = vadd.f32 %v3074_v29, %v2994_v43  ;;  %v7552_v43 = vld [vmem:[#allocation40_spill] sm:$0xff]  ;;  %v7554_v29 = vld [vmem:[#allocation73_spill] sm:$0xff] }
 0x622   : > { %v3012_v6 = vadd.f32 %v7552_v43, %v6273_v11 }
 0x623   : > { %3179 = vst [vmem:[%s6470_s17 + $0x40] sm:$0xff] %v3163_v38  ;;  %v3112_v32 = vadd.f32 %v3075_v62, %v2783_v31 }
 0x625   : > { %v3132_v60 = vadd.f32 %v6458_v59, %v3112_v32 }
 0x627   : > { %v3148_v27 = vmax.f32 %v3132_v60, 0.0  ;;  %v7555_v60 = vld [vmem:[#allocation79_spill] sm:$0xff] }
 0x628   : > { %v3077_v20 = vpop.f32.mrf.mxu2 }
 0x629   : > { %v3164_v30 = vadd.f32 %v3148_v27, %v7545_v40  ;;  %v3078_v9 = vadd.f32 %v3077_v20, %v2997_v42 }
 0x62b   : > { %3180 = vst [vmem:[%s6470_s17 + $0x48] sm:$0xff] %v3164_v30  ;;  %v3113_v14 = vadd.f32 %v3078_v9, %v2786_v39 }
 0x62d   : > { %v3133_v36 = vadd.f32 %v6458_v59, %v3113_v14 }
 0x62f   : > { %v3149_v15 = vmax.f32 %v3133_v36, 0.0 }
 0x630   : > { %v3080_v2 = vpop.f32.mrf.mxu2 }
 0x631   : > { %v3165_v33 = vadd.f32 %v3149_v15, %v7547_v63  ;;  %v3081_v10 = vadd.f32 %v3080_v2, %v3000_v56 }
 0x633   : > { %3181 = vst [vmem:[%s6470_s17 + $0x50] sm:$0xff] %v3165_v33  ;;  %v3114_v4 = vadd.f32 %v3081_v10, %v2789_v5 }
 0x635   : > { %v3134_v12 = vadd.f32 %v6458_v59, %v3114_v4 }
 0x637   : > { %v3150_v37 = vmax.f32 %v3134_v12, 0.0 }
 0x638   : > { %v3083_v52 = vpop.f32.mrf.mxu2 }
 0x639   : > { %v3166_v21 = vadd.f32 %v3150_v37, %v7548_v0  ;;  %v3084_v57 = vadd.f32 %v3083_v52, %v3003_v3 }
 0x63b   : > { %3182 = vst [vmem:[%s6470_s17 + $0x58] sm:$0xff] %v3166_v21  ;;  %v3115_v48 = vadd.f32 %v3084_v57, %v2792_v17 }
 0x63d   : > { %v3135_v41 = vadd.f32 %v6458_v59, %v3115_v48 }
 0x63f   : > { %v3151_v47 = vmax.f32 %v3135_v41, 0.0 }
 0x640   : > { %v3086_v50 = vpop.f32.mrf.mxu2 }
 0x641   : > { %v3167_v49 = vadd.f32 %v3151_v47, %v7550_v19  ;;  %v3087_v13 = vadd.f32 %v3086_v50, %v3006_v46 }
 0x643   : > { %3183 = vst [vmem:[%s6470_s17 + $0x60] sm:$0xff] %v3167_v49  ;;  %v3116_v18 = vadd.f32 %v3087_v13, %v2795_v35 }
 0x645   : > { %v3136_v24 = vadd.f32 %v6458_v59, %v3116_v18 }
 0x647   : > { %v3152_v45 = vmax.f32 %v3136_v24, 0.0 }
 0x648   : > { %v3089_v53 = vpop.f32.mrf.mxu2 }
 0x649   : > { %v3168_v55 = vadd.f32 %v3152_v45, %v7551_v58  ;;  %v3090_v22 = vadd.f32 %v3089_v53, %v3009_v7 }
 0x64b   : > { %3184 = vst [vmem:[%s6470_s17 + $0x68] sm:$0xff] %v3168_v55  ;;  %v3117_v54 = vadd.f32 %v3090_v22, %v2798_v26 }
 0x64d   : > { %v3137_v51 = vadd.f32 %v6458_v59, %v3117_v54 }
 0x64f   : > { %v3153_v8 = vmax.f32 %v3137_v51, 0.0 }
 0x650   : > { %v3092_v1 = vpop.f32.mrf.mxu2 }
 0x651   : > { %v3169_v31 = vadd.f32 %v3153_v8, %v7554_v29  ;;  %v3093_v61 = vadd.f32 %v3092_v1, %v3012_v6 }
 0x653   : > { %3185 = vst [vmem:[%s6470_s17 + $0x70] sm:$0xff] %v3169_v31  ;;  %v3118_v38 = vadd.f32 %v3093_v61, %v2801_v34 }
 0x655   : > { %v3138_v11 = vadd.f32 %v6458_v59, %v3118_v38 }
 0x657   : > { %v3154_v62 = vmax.f32 %v3138_v11, 0.0 }
 0x658   : > { %v3095_v32 = vpop.f32.mrf.mxu2 }
 0x659   : > { %v3170_v25 = vadd.f32 %v3154_v62, %v7555_v60 }
 0x65b   : > { %3186 = vst [vmem:[%s6470_s17 + $0x78] sm:$0xff] %v3170_v25 }
 0x65c   : > { %3649 = shalt.err (!%p3646_p11)
}
 0x65d   : > { %s3730_s9 = smov 128   ;;  %s3731_s17 = smov 8  }
 0x65e   : > { %3471 = dma.vmem_to_hbm [thread:$0]  (%p3819_p3), %s3203_s13, 2048, %s3205_s29, %s3188_s14, %s3730_s9, %s3730_s9, %s3731_s17  }
 0x660   : > { %v3097_v59 = vpop.f32.mrf.mxu2 }
 0x668   : > { %v3099_v44 = vpop.f32.mrf.mxu2 }
 0x670   : > { %v3101_v42 = vpop.f32.mrf.mxu2 }
 0x671 PF: > { %p3488_p12 = scmp.ge.s32.totalorder %s3724_s28, 2  ;;  %s3219_s19 = sand.u32 1, %s3696_s21  }
 0x672   : > { %s3220_s30 = scalar_lea.sflag [#allocation4], %s3219_s19 }
 0x673   : > { %p3481_p13 = pnand %p3488_p12, %p3828_p8 }
 0x675   : > { %p3482_p0 = pneg %p3481_p13 }
 0x677   : > { %3691 = dma.done.wait (%p3482_p0), %s3220_s30, 2048  }
 0x678   : > { %3693 = vsyncadd (%p3482_p0), %s3220_s30, 4294965248  ;;  %s21_s28 = sadd.s32 1, %s3724_s28   ;;  %s7556_s24 = sld [smem:[#allocation11_spill]] }
 0x679   : > { %p18_p1 = scmp.ge.s32.totalorder %s21_s28, 6   ;;  %s7557_s25 = sld [smem:[#allocation12_spill]] }
 0x67a   : > { %s7558_s26 = sld [smem:[#allocation13_spill]]  ;;  %s7560_s21 = smov %s3700_s22 }
 0x67b   : > { %s7559_s27 = sld [smem:[#allocation14_spill]]  ;;  %s7561_s22 = smov %s3704_s23 }
 0x67c   : > { %s7562_s23 = smov %s3849_s20  ;;  %20 = sbr.rel (!%p18_p1) target bundleno = 7 (0x7), region = 92 }
 0x681   :  { %3226 = vsyncpa [#allocation3], 1 }
 0x682   :  { %3228 = vsyncpa [#allocation3 + $0x1], 1 }
 0x683   :  { %3229 = vsyncpa [#allocation6], 1 }
 0x684   :  { %3230 = vsyncpa [#allocation4], 1 }
 0x685   :  { %3232 = vsyncpa [#allocation4 + $0x1], 1 }

</bundles_post_ra>
